<compile_context>
chip_gen: v7x
topology: tpu7x:2x2x1
jax: 0.10.0
libtpu: 0.0.40
codegen_flags: <defaults>
</compile_context>

<pallas_src>
import jax
import jax.numpy as jnp
from jax.experimental import pallas as pl
from jax.experimental.pallas import tpu as pltpu

LANE = 128  # per-gate lane-aligned width (>= hidden_size)


def _sigmoid(x):
    # sigmoid(x) == 0.5 * tanh(0.5 * x) + 0.5  : one EUP push per call.
    return 0.5 * jnp.tanh(0.5 * x) + 0.5


# ----------------------------------------------------------------------------
# Fused Pallas kernel: 2 skewed LSTM layers + linear head, single invocation
# ----------------------------------------------------------------------------
def fused_forecaster_kernel(x_ref, wih0_ref, b0_ref, wf_ref, b1_ref,
                            wlin_ref, blin_ref, y_ref):
    """Single-invocation kernel (no grid).

    x_ref    : (B, T)            input sequence (input_size==1, squeezed)
    wih0_ref : (1, 4*Hp)         layer-0 input->hidden, gate-lane-aligned
    b0_ref   : (1, 4*Hp)         layer-0 combined bias (b_ih + b_hh), aligned
    wf_ref   : (2*Hp, 8*Hp) bf16 fused block-diagonal recurrent weight
                                 rows [0:Hp]   = h0 -> [whh0 | wih1]
                                 rows [Hp:2Hp] = h1 -> [  0  | whh1]
    b1_ref   : (1, 4*Hp)         layer-1 combined bias, aligned
    wlin_ref : (1, Hp)           linear head weight row (zero-padded)
    blin_ref : (1, 1)            linear head bias
    y_ref    : (B, 1)            output prediction
    """
    B, T = x_ref.shape
    Hp = b0_ref.shape[1] // 4           # lane-aligned per-gate width (128)

    def cell(gates, c_prev):
        # gate order matches nn.LSTM: [i, f, g, o]; slices are tile-aligned.
        i = _sigmoid(gates[:, 0 * Hp:1 * Hp])
        f = _sigmoid(gates[:, 1 * Hp:2 * Hp])
        g = jnp.tanh(gates[:, 2 * Hp:3 * Hp])
        o = _sigmoid(gates[:, 3 * Hp:4 * Hp])
        c_new = f * c_prev + i * g
        return o * jnp.tanh(c_new), c_new

    x = x_ref[...]          # (B, T)  one vreg
    wih0 = wih0_ref[...]    # (1, 4Hp)
    b0 = b0_ref[...]        # (1, 4Hp)
    b1 = b1_ref[...]        # (1, 4Hp)
    wf = wf_ref[...]        # (2Hp, 8Hp) bf16, VMEM-resident

    # Hoisted layer-0 input projection: depends only on x, so it sits off the
    # recurrence critical path (Din == 1 -> outer product == VPU broadcast mul).
    xp0 = [x[:, t:t + 1] * wih0 + b0 for t in range(T)]     # each (B, 4Hp) f32

    h0 = jnp.zeros((B, Hp), jnp.float32)
    c0 = jnp.zeros((B, Hp), jnp.float32)
    h1 = jnp.zeros((B, Hp), jnp.float32)
    c1 = jnp.zeros((B, Hp), jnp.float32)

    # Skewed recurrence: combined step s computes layer-0 step s (s < T) and
    # layer-1 step s-1 (s >= 1) from ONE block-diagonal matmul whose LHS is
    # [h0^{s-1} | h1^{s-2}].  Fully unrolled: T is small and static.
    for s in range(T + 1):
        if s == 0:
            # h0^{-1} == 0 and h1^{-2} == 0 -> the matmul contribution is zero.
            h0, c0 = cell(xp0[0], c0)
            continue
        lhs = jnp.concatenate(
            [h0.astype(jnp.bfloat16), h1.astype(jnp.bfloat16)], axis=-1)
        fused = jnp.dot(lhs, wf, preferred_element_type=jnp.float32)  # (B, 8Hp)
        if s < T:
            h0_new, c0_new = cell(fused[:, :4 * Hp] + xp0[s], c0)
        h1, c1 = cell(fused[:, 4 * Hp:] + b1, c1)
        if s < T:
            h0, c0 = h0_new, c0_new

    # Linear head: VPU multiply + lane reduce (padded lanes are exactly zero).
    y_ref[...] = (jnp.sum(h1 * wlin_ref[...], axis=-1, keepdims=True)
                  + blin_ref[...])


# ----------------------------------------------------------------------------
# Wrapper
# ----------------------------------------------------------------------------
@jax.jit
def lstm_forecaster_forward(x, kparams):
    """x: (B, T, input_size=1), batch-first like the PyTorch module."""
    x = x.astype(jnp.float32)
    B, T, din = x.shape
    assert din == 1, "kernel specialized to input_size == 1 (module default)"
    assert T <= 64, "recurrence is fully unrolled; guard trace size"

    x2d = x[:, :, 0]   # trailing-singleton squeeze only — no transpose / copy
    vmem = pl.BlockSpec(memory_space=pltpu.MemorySpace.VMEM)

    return pl.pallas_call(
        fused_forecaster_kernel,
        out_shape=jax.ShapeDtypeStruct((B, 1), jnp.float32),
        in_specs=[vmem] * 7,
        out_specs=vmem,
    )(x2d, kparams["wih0"], kparams["b0"], kparams["w_fused"],
      kparams["b1"], kparams["w_lin"], kparams["b_lin"])


# ----------------------------------------------------------------------------
# Parameter init (torch layout) + packing into kernel layout
# ----------------------------------------------------------------------------
def init_params(key, input_size=1, hidden_size=50, num_layers=2):
    H = hidden_size
    k = 1.0 / jnp.sqrt(jnp.float32(H))
    lstm = []
    for layer in range(num_layers):
        din = input_size if layer == 0 else H
        key, k1, k2, k3, k4 = jax.random.split(key, 5)
        w_ih = jax.random.uniform(k1, (4 * H, din), jnp.float32, -k, k)
        w_hh = jax.random.uniform(k2, (4 * H, H), jnp.float32, -k, k)
        b_ih = jax.random.uniform(k3, (4 * H,), jnp.float32, -k, k)
        b_hh = jax.random.uniform(k4, (4 * H,), jnp.float32, -k, k)
        lstm.append((w_ih, w_hh, b_ih, b_hh))
    key, k5, k6 = jax.random.split(key, 3)
    w_lin = jax.random.uniform(k5, (1, H), jnp.float32, -k, k)   # torch (out,in)
    b_lin = jax.random.uniform(k6, (1,), jnp.float32, -k, k)
    return {"lstm": lstm, "linear": (w_lin, b_lin)}


def pack_kernel_params(torch_lstm, torch_lin, H, Hp=LANE):
    """Build the lane-aligned / block-diagonal-fused kernel weights."""
    assert len(torch_lstm) == 2, "kernel specialized to num_layers == 2"
    (wih0_t, whh0_t, bih0, bhh0), (wih1_t, whh1_t, bih1, bhh1) = torch_lstm
    assert wih0_t.shape == (4 * H, 1) and wih1_t.shape == (4 * H, H)
    w_lin_t, b_lin_t = torch_lin

    def place_gate_blocks(dst, src_t, row_off, col_off):
        # src_t: torch (4H, K); place src_t[gate].T (K, H) into the gate's
        # 128-lane-aligned column block.  Padding stays zero.
        K = src_t.shape[1]
        for g in range(4):
            dst = dst.at[row_off:row_off + K,
                         col_off + g * Hp: col_off + g * Hp + H].set(
                             src_t[g * H:(g + 1) * H, :].T)
        return dst

    def pack_row(vec_4h):
        out = jnp.zeros((1, 4 * Hp), jnp.float32)
        for g in range(4):
            out = out.at[0, g * Hp:g * Hp + H].set(vec_4h[g * H:(g + 1) * H])
        return out

    wih0 = pack_row(wih0_t[:, 0])            # (1, 4Hp) layer-0 input weights
    b0 = pack_row(bih0 + bhh0)                # (1, 4Hp)
    b1 = pack_row(bih1 + bhh1)                # (1, 4Hp)

    # Fused block-diagonal recurrent weight (2Hp, 8Hp).
    wf = jnp.zeros((2 * Hp, 8 * Hp), jnp.float32)
    wf = place_gate_blocks(wf, whh0_t, 0, 0)           # h0 -> layer-0 gates
    wf = place_gate_blocks(wf, wih1_t, 0, 4 * Hp)      # h0 -> layer-1 gates
    wf = place_gate_blocks(wf, whh1_t, Hp, 4 * Hp)     # h1 -> layer-1 gates
    wf = wf.astype(jnp.bfloat16)   # MXU operand dtype; accumulation stays f32

    w_lin = jnp.zeros((1, Hp), jnp.float32).at[0, :H].set(w_lin_t[0, :])
    b_lin = b_lin_t.reshape(1, 1).astype(jnp.float32)

    return {"wih0": wih0, "b0": b0, "w_fused": wf, "b1": b1,
            "w_lin": w_lin, "b_lin": b_lin}


# ----------------------------------------------------------------------------
# Pure-JAX reference (mirrors nn.LSTM semantics) for correctness check
# ----------------------------------------------------------------------------
def reference_forward(x, params):
    B, T, _ = x.shape
    out = x.astype(jnp.float32)
    for (w_ih, w_hh, b_ih, b_hh) in params["lstm"]:
        H = w_hh.shape[1]
        h = jnp.zeros((B, H), jnp.float32)
        c = jnp.zeros((B, H), jnp.float32)
        hs = []
        for t in range(T):
            gates = out[:, t, :] @ w_ih.T + h @ w_hh.T + b_ih + b_hh
            i = jax.nn.sigmoid(gates[:, 0:H])
            f = jax.nn.sigmoid(gates[:, H:2 * H])
            g = jnp.tanh(gates[:, 2 * H:3 * H])
            o = jax.nn.sigmoid(gates[:, 3 * H:4 * H])
            c = f * c + i * g
            h = o * jnp.tanh(c)
            hs.append(h)
        out = jnp.stack(hs, axis=1)
    w_lin, b_lin = params["linear"]
    return out[:, -1, :] @ w_lin.T + b_lin


# ----------------------------------------------------------------------------
if __name__ == "__main__":
    B, T, INPUT, HIDDEN, LAYERS = 2, 8, 1, 50, 2
    root = jax.random.PRNGKey(0)
    k_x, k_p = jax.random.split(root)
    x = jax.random.normal(k_x, (B, T, INPUT), jnp.float32)

    params = init_params(k_p, INPUT, HIDDEN, LAYERS)
    kparams = pack_kernel_params(params["lstm"], params["linear"], HIDDEN)

    y = jax.block_until_ready(lstm_forecaster_forward(x, kparams))
    y_ref = reference_forward(x, params)

    assert y.shape == (B, 1)
    # Tolerance loosened vs fp32 reference because the recurrent matmul uses
    # bf16 operands (fp32 accumulation + fp32 gate math bound the drift).
    assert jnp.allclose(y, y_ref, atol=1e-2, rtol=1e-2), (y, y_ref)

    print("KERNEL_OK")
</pallas_src>

<mosaic_0001>
module attributes {stable_mosaic.version = 11 : i64} {
  func.func @fused_forecaster_kernel(%arg0: memref<2x8xf32, #tpu.memory_space<vmem>>, %arg1: memref<1x512xf32, #tpu.memory_space<vmem>>, %arg2: memref<1x512xf32, #tpu.memory_space<vmem>>, %arg3: memref<256x1024xbf16, #tpu.memory_space<vmem>>, %arg4: memref<1x512xf32, #tpu.memory_space<vmem>>, %arg5: memref<1x128xf32, #tpu.memory_space<vmem>>, %arg6: memref<1x1xf32, #tpu.memory_space<vmem>>, %arg7: memref<2x1xf32, #tpu.memory_space<vmem>>) attributes {dimension_semantics = [], scalar_prefetch = 0 : i64, scratch_operands = 0 : i64, tpu.core_type = #tpu.core_type<tc>} {
    %c0 = arith.constant 0 : index
    %c0_0 = arith.constant 0 : index
    %0 = vector.load %arg0[%c0, %c0_0] : memref<2x8xf32, #tpu.memory_space<vmem>>, vector<2x8xf32>
    %c0_1 = arith.constant 0 : index
    %c0_2 = arith.constant 0 : index
    %1 = vector.load %arg1[%c0_1, %c0_2] : memref<1x512xf32, #tpu.memory_space<vmem>>, vector<1x512xf32>
    %c0_3 = arith.constant 0 : index
    %c0_4 = arith.constant 0 : index
    %2 = vector.load %arg2[%c0_3, %c0_4] : memref<1x512xf32, #tpu.memory_space<vmem>>, vector<1x512xf32>
    %c0_5 = arith.constant 0 : index
    %c0_6 = arith.constant 0 : index
    %3 = vector.load %arg4[%c0_5, %c0_6] : memref<1x512xf32, #tpu.memory_space<vmem>>, vector<1x512xf32>
    %c0_7 = arith.constant 0 : index
    %c0_8 = arith.constant 0 : index
    %4 = vector.load %arg3[%c0_7, %c0_8] : memref<256x1024xbf16, #tpu.memory_space<vmem>>, vector<256x1024xbf16>
    %5 = vector.extract_strided_slice %0 {offsets = [0, 0], sizes = [2, 1], strides = [1, 1]} : vector<2x8xf32> to vector<2x1xf32>
    %6 = vector.broadcast %5 : vector<2x1xf32> to vector<2x512xf32>
    %7 = vector.broadcast %1 : vector<1x512xf32> to vector<2x512xf32>
    %8 = arith.mulf %6, %7 : vector<2x512xf32>
    %9 = vector.broadcast %2 : vector<1x512xf32> to vector<2x512xf32>
    %10 = arith.addf %8, %9 : vector<2x512xf32>
    %11 = vector.extract_strided_slice %0 {offsets = [0, 1], sizes = [2, 1], strides = [1, 1]} : vector<2x8xf32> to vector<2x1xf32>
    %12 = vector.broadcast %11 : vector<2x1xf32> to vector<2x512xf32>
    %13 = vector.broadcast %1 : vector<1x512xf32> to vector<2x512xf32>
    %14 = arith.mulf %12, %13 : vector<2x512xf32>
    %15 = vector.broadcast %2 : vector<1x512xf32> to vector<2x512xf32>
    %16 = arith.addf %14, %15 : vector<2x512xf32>
    %17 = vector.extract_strided_slice %0 {offsets = [0, 2], sizes = [2, 1], strides = [1, 1]} : vector<2x8xf32> to vector<2x1xf32>
    %18 = vector.broadcast %17 : vector<2x1xf32> to vector<2x512xf32>
    %19 = vector.broadcast %1 : vector<1x512xf32> to vector<2x512xf32>
    %20 = arith.mulf %18, %19 : vector<2x512xf32>
    %21 = vector.broadcast %2 : vector<1x512xf32> to vector<2x512xf32>
    %22 = arith.addf %20, %21 : vector<2x512xf32>
    %23 = vector.extract_strided_slice %0 {offsets = [0, 3], sizes = [2, 1], strides = [1, 1]} : vector<2x8xf32> to vector<2x1xf32>
    %24 = vector.broadcast %23 : vector<2x1xf32> to vector<2x512xf32>
    %25 = vector.broadcast %1 : vector<1x512xf32> to vector<2x512xf32>
    %26 = arith.mulf %24, %25 : vector<2x512xf32>
    %27 = vector.broadcast %2 : vector<1x512xf32> to vector<2x512xf32>
    %28 = arith.addf %26, %27 : vector<2x512xf32>
    %29 = vector.extract_strided_slice %0 {offsets = [0, 4], sizes = [2, 1], strides = [1, 1]} : vector<2x8xf32> to vector<2x1xf32>
    %30 = vector.broadcast %29 : vector<2x1xf32> to vector<2x512xf32>
    %31 = vector.broadcast %1 : vector<1x512xf32> to vector<2x512xf32>
    %32 = arith.mulf %30, %31 : vector<2x512xf32>
    %33 = vector.broadcast %2 : vector<1x512xf32> to vector<2x512xf32>
    %34 = arith.addf %32, %33 : vector<2x512xf32>
    %35 = vector.extract_strided_slice %0 {offsets = [0, 5], sizes = [2, 1], strides = [1, 1]} : vector<2x8xf32> to vector<2x1xf32>
    %36 = vector.broadcast %35 : vector<2x1xf32> to vector<2x512xf32>
    %37 = vector.broadcast %1 : vector<1x512xf32> to vector<2x512xf32>
    %38 = arith.mulf %36, %37 : vector<2x512xf32>
    %39 = vector.broadcast %2 : vector<1x512xf32> to vector<2x512xf32>
    %40 = arith.addf %38, %39 : vector<2x512xf32>
    %41 = vector.extract_strided_slice %0 {offsets = [0, 6], sizes = [2, 1], strides = [1, 1]} : vector<2x8xf32> to vector<2x1xf32>
    %42 = vector.broadcast %41 : vector<2x1xf32> to vector<2x512xf32>
    %43 = vector.broadcast %1 : vector<1x512xf32> to vector<2x512xf32>
    %44 = arith.mulf %42, %43 : vector<2x512xf32>
    %45 = vector.broadcast %2 : vector<1x512xf32> to vector<2x512xf32>
    %46 = arith.addf %44, %45 : vector<2x512xf32>
    %47 = vector.extract_strided_slice %0 {offsets = [0, 7], sizes = [2, 1], strides = [1, 1]} : vector<2x8xf32> to vector<2x1xf32>
    %48 = vector.broadcast %47 : vector<2x1xf32> to vector<2x512xf32>
    %49 = vector.broadcast %1 : vector<1x512xf32> to vector<2x512xf32>
    %50 = arith.mulf %48, %49 : vector<2x512xf32>
    %51 = vector.broadcast %2 : vector<1x512xf32> to vector<2x512xf32>
    %52 = arith.addf %50, %51 : vector<2x512xf32>
    %cst = arith.constant 0.000000e+00 : f32
    %53 = vector.broadcast %cst : f32 to vector<2x128xf32>
    %cst_9 = arith.constant 0.000000e+00 : f32
    %54 = vector.broadcast %cst_9 : f32 to vector<2x128xf32>
    %cst_10 = arith.constant 0.000000e+00 : f32
    %55 = vector.broadcast %cst_10 : f32 to vector<2x128xf32>
    %56 = vector.extract_strided_slice %10 {offsets = [0, 0], sizes = [2, 128], strides = [1, 1]} : vector<2x512xf32> to vector<2x128xf32>
    %cst_11 = arith.constant 5.000000e-01 : f32
    %57 = vector.broadcast %cst_11 : f32 to vector<2x128xf32>
    %58 = arith.mulf %57, %56 : vector<2x128xf32>
    %59 = math.tanh %58 : vector<2x128xf32>
    %cst_12 = arith.constant 5.000000e-01 : f32
    %60 = vector.broadcast %cst_12 : f32 to vector<2x128xf32>
    %61 = arith.mulf %60, %59 : vector<2x128xf32>
    %cst_13 = arith.constant 5.000000e-01 : f32
    %62 = vector.broadcast %cst_13 : f32 to vector<2x128xf32>
    %63 = arith.addf %61, %62 : vector<2x128xf32>
    %64 = vector.extract_strided_slice %10 {offsets = [0, 128], sizes = [2, 128], strides = [1, 1]} : vector<2x512xf32> to vector<2x128xf32>
    %cst_14 = arith.constant 5.000000e-01 : f32
    %65 = vector.broadcast %cst_14 : f32 to vector<2x128xf32>
    %66 = arith.mulf %65, %64 : vector<2x128xf32>
    %67 = math.tanh %66 : vector<2x128xf32>
    %cst_15 = arith.constant 5.000000e-01 : f32
    %68 = vector.broadcast %cst_15 : f32 to vector<2x128xf32>
    %69 = arith.mulf %68, %67 : vector<2x128xf32>
    %cst_16 = arith.constant 5.000000e-01 : f32
    %70 = vector.broadcast %cst_16 : f32 to vector<2x128xf32>
    %71 = arith.addf %69, %70 : vector<2x128xf32>
    %72 = vector.extract_strided_slice %10 {offsets = [0, 256], sizes = [2, 128], strides = [1, 1]} : vector<2x512xf32> to vector<2x128xf32>
    %73 = math.tanh %72 : vector<2x128xf32>
    %74 = vector.extract_strided_slice %10 {offsets = [0, 384], sizes = [2, 128], strides = [1, 1]} : vector<2x512xf32> to vector<2x128xf32>
    %cst_17 = arith.constant 5.000000e-01 : f32
    %75 = vector.broadcast %cst_17 : f32 to vector<2x128xf32>
    %76 = arith.mulf %75, %74 : vector<2x128xf32>
    %77 = math.tanh %76 : vector<2x128xf32>
    %cst_18 = arith.constant 5.000000e-01 : f32
    %78 = vector.broadcast %cst_18 : f32 to vector<2x128xf32>
    %79 = arith.mulf %78, %77 : vector<2x128xf32>
    %cst_19 = arith.constant 5.000000e-01 : f32
    %80 = vector.broadcast %cst_19 : f32 to vector<2x128xf32>
    %81 = arith.addf %79, %80 : vector<2x128xf32>
    %82 = arith.mulf %71, %53 : vector<2x128xf32>
    %83 = arith.mulf %63, %73 : vector<2x128xf32>
    %84 = arith.addf %82, %83 : vector<2x128xf32>
    %85 = math.tanh %84 : vector<2x128xf32>
    %86 = arith.mulf %81, %85 : vector<2x128xf32>
    %87 = arith.truncf %86 : vector<2x128xf32> to vector<2x128xbf16>
    %88 = arith.truncf %54 : vector<2x128xf32> to vector<2x128xbf16>
    %89 = tpu.concatenate %87, %88 in 1 : vector<2x128xbf16>, vector<2x128xbf16> -> vector<2x256xbf16>
    %cst_20 = arith.constant dense<0.000000e+00> : vector<2x1024xf32>
    %90 = tpu.matmul %89, %4, %cst_20 {dimension_numbers = #tpu.dot_dimension_numbers<[1], [0], [0], [1], [0, 0, 1, 1], [], []>} : vector<2x256xbf16>, vector<256x1024xbf16>, vector<2x1024xf32> -> vector<2x1024xf32>
    %91 = vector.extract_strided_slice %90 {offsets = [0, 0], sizes = [2, 512], strides = [1, 1]} : vector<2x1024xf32> to vector<2x512xf32>
    %92 = arith.addf %91, %16 : vector<2x512xf32>
    %93 = vector.extract_strided_slice %92 {offsets = [0, 0], sizes = [2, 128], strides = [1, 1]} : vector<2x512xf32> to vector<2x128xf32>
    %cst_21 = arith.constant 5.000000e-01 : f32
    %94 = vector.broadcast %cst_21 : f32 to vector<2x128xf32>
    %95 = arith.mulf %94, %93 : vector<2x128xf32>
    %96 = math.tanh %95 : vector<2x128xf32>
    %cst_22 = arith.constant 5.000000e-01 : f32
    %97 = vector.broadcast %cst_22 : f32 to vector<2x128xf32>
    %98 = arith.mulf %97, %96 : vector<2x128xf32>
    %cst_23 = arith.constant 5.000000e-01 : f32
    %99 = vector.broadcast %cst_23 : f32 to vector<2x128xf32>
    %100 = arith.addf %98, %99 : vector<2x128xf32>
    %101 = vector.extract_strided_slice %92 {offsets = [0, 128], sizes = [2, 128], strides = [1, 1]} : vector<2x512xf32> to vector<2x128xf32>
    %cst_24 = arith.constant 5.000000e-01 : f32
    %102 = vector.broadcast %cst_24 : f32 to vector<2x128xf32>
    %103 = arith.mulf %102, %101 : vector<2x128xf32>
    %104 = math.tanh %103 : vector<2x128xf32>
    %cst_25 = arith.constant 5.000000e-01 : f32
    %105 = vector.broadcast %cst_25 : f32 to vector<2x128xf32>
    %106 = arith.mulf %105, %104 : vector<2x128xf32>
    %cst_26 = arith.constant 5.000000e-01 : f32
    %107 = vector.broadcast %cst_26 : f32 to vector<2x128xf32>
    %108 = arith.addf %106, %107 : vector<2x128xf32>
    %109 = vector.extract_strided_slice %92 {offsets = [0, 256], sizes = [2, 128], strides = [1, 1]} : vector<2x512xf32> to vector<2x128xf32>
    %110 = math.tanh %109 : vector<2x128xf32>
    %111 = vector.extract_strided_slice %92 {offsets = [0, 384], sizes = [2, 128], strides = [1, 1]} : vector<2x512xf32> to vector<2x128xf32>
    %cst_27 = arith.constant 5.000000e-01 : f32
    %112 = vector.broadcast %cst_27 : f32 to vector<2x128xf32>
    %113 = arith.mulf %112, %111 : vector<2x128xf32>
    %114 = math.tanh %113 : vector<2x128xf32>
    %cst_28 = arith.constant 5.000000e-01 : f32
    %115 = vector.broadcast %cst_28 : f32 to vector<2x128xf32>
    %116 = arith.mulf %115, %114 : vector<2x128xf32>
    %cst_29 = arith.constant 5.000000e-01 : f32
    %117 = vector.broadcast %cst_29 : f32 to vector<2x128xf32>
    %118 = arith.addf %116, %117 : vector<2x128xf32>
    %119 = arith.mulf %108, %84 : vector<2x128xf32>
    %120 = arith.mulf %100, %110 : vector<2x128xf32>
    %121 = arith.addf %119, %120 : vector<2x128xf32>
    %122 = math.tanh %121 : vector<2x128xf32>
    %123 = arith.mulf %118, %122 : vector<2x128xf32>
    %124 = vector.extract_strided_slice %90 {offsets = [0, 512], sizes = [2, 512], strides = [1, 1]} : vector<2x1024xf32> to vector<2x512xf32>
    %125 = vector.broadcast %3 : vector<1x512xf32> to vector<2x512xf32>
    %126 = arith.addf %124, %125 : vector<2x512xf32>
    %127 = vector.extract_strided_slice %126 {offsets = [0, 0], sizes = [2, 128], strides = [1, 1]} : vector<2x512xf32> to vector<2x128xf32>
    %cst_30 = arith.constant 5.000000e-01 : f32
    %128 = vector.broadcast %cst_30 : f32 to vector<2x128xf32>
    %129 = arith.mulf %128, %127 : vector<2x128xf32>
    %130 = math.tanh %129 : vector<2x128xf32>
    %cst_31 = arith.constant 5.000000e-01 : f32
    %131 = vector.broadcast %cst_31 : f32 to vector<2x128xf32>
    %132 = arith.mulf %131, %130 : vector<2x128xf32>
    %cst_32 = arith.constant 5.000000e-01 : f32
    %133 = vector.broadcast %cst_32 : f32 to vector<2x128xf32>
    %134 = arith.addf %132, %133 : vector<2x128xf32>
    %135 = vector.extract_strided_slice %126 {offsets = [0, 128], sizes = [2, 128], strides = [1, 1]} : vector<2x512xf32> to vector<2x128xf32>
    %cst_33 = arith.constant 5.000000e-01 : f32
    %136 = vector.broadcast %cst_33 : f32 to vector<2x128xf32>
    %137 = arith.mulf %136, %135 : vector<2x128xf32>
    %138 = math.tanh %137 : vector<2x128xf32>
    %cst_34 = arith.constant 5.000000e-01 : f32
    %139 = vector.broadcast %cst_34 : f32 to vector<2x128xf32>
    %140 = arith.mulf %139, %138 : vector<2x128xf32>
    %cst_35 = arith.constant 5.000000e-01 : f32
    %141 = vector.broadcast %cst_35 : f32 to vector<2x128xf32>
    %142 = arith.addf %140, %141 : vector<2x128xf32>
    %143 = vector.extract_strided_slice %126 {offsets = [0, 256], sizes = [2, 128], strides = [1, 1]} : vector<2x512xf32> to vector<2x128xf32>
    %144 = math.tanh %143 : vector<2x128xf32>
    %145 = vector.extract_strided_slice %126 {offsets = [0, 384], sizes = [2, 128], strides = [1, 1]} : vector<2x512xf32> to vector<2x128xf32>
    %cst_36 = arith.constant 5.000000e-01 : f32
    %146 = vector.broadcast %cst_36 : f32 to vector<2x128xf32>
    %147 = arith.mulf %146, %145 : vector<2x128xf32>
    %148 = math.tanh %147 : vector<2x128xf32>
    %cst_37 = arith.constant 5.000000e-01 : f32
    %149 = vector.broadcast %cst_37 : f32 to vector<2x128xf32>
    %150 = arith.mulf %149, %148 : vector<2x128xf32>
    %cst_38 = arith.constant 5.000000e-01 : f32
    %151 = vector.broadcast %cst_38 : f32 to vector<2x128xf32>
    %152 = arith.addf %150, %151 : vector<2x128xf32>
    %153 = arith.mulf %142, %55 : vector<2x128xf32>
    %154 = arith.mulf %134, %144 : vector<2x128xf32>
    %155 = arith.addf %153, %154 : vector<2x128xf32>
    %156 = math.tanh %155 : vector<2x128xf32>
    %157 = arith.mulf %152, %156 : vector<2x128xf32>
    %158 = arith.truncf %123 : vector<2x128xf32> to vector<2x128xbf16>
    %159 = arith.truncf %157 : vector<2x128xf32> to vector<2x128xbf16>
    %160 = tpu.concatenate %158, %159 in 1 : vector<2x128xbf16>, vector<2x128xbf16> -> vector<2x256xbf16>
    %cst_39 = arith.constant dense<0.000000e+00> : vector<2x1024xf32>
    %161 = tpu.matmul %160, %4, %cst_39 {dimension_numbers = #tpu.dot_dimension_numbers<[1], [0], [0], [1], [0, 0, 1, 1], [], []>} : vector<2x256xbf16>, vector<256x1024xbf16>, vector<2x1024xf32> -> vector<2x1024xf32>
    %162 = vector.extract_strided_slice %161 {offsets = [0, 0], sizes = [2, 512], strides = [1, 1]} : vector<2x1024xf32> to vector<2x512xf32>
    %163 = arith.addf %162, %22 : vector<2x512xf32>
    %164 = vector.extract_strided_slice %163 {offsets = [0, 0], sizes = [2, 128], strides = [1, 1]} : vector<2x512xf32> to vector<2x128xf32>
    %cst_40 = arith.constant 5.000000e-01 : f32
    %165 = vector.broadcast %cst_40 : f32 to vector<2x128xf32>
    %166 = arith.mulf %165, %164 : vector<2x128xf32>
    %167 = math.tanh %166 : vector<2x128xf32>
    %cst_41 = arith.constant 5.000000e-01 : f32
    %168 = vector.broadcast %cst_41 : f32 to vector<2x128xf32>
    %169 = arith.mulf %168, %167 : vector<2x128xf32>
    %cst_42 = arith.constant 5.000000e-01 : f32
    %170 = vector.broadcast %cst_42 : f32 to vector<2x128xf32>
    %171 = arith.addf %169, %170 : vector<2x128xf32>
    %172 = vector.extract_strided_slice %163 {offsets = [0, 128], sizes = [2, 128], strides = [1, 1]} : vector<2x512xf32> to vector<2x128xf32>
    %cst_43 = arith.constant 5.000000e-01 : f32
    %173 = vector.broadcast %cst_43 : f32 to vector<2x128xf32>
    %174 = arith.mulf %173, %172 : vector<2x128xf32>
    %175 = math.tanh %174 : vector<2x128xf32>
    %cst_44 = arith.constant 5.000000e-01 : f32
    %176 = vector.broadcast %cst_44 : f32 to vector<2x128xf32>
    %177 = arith.mulf %176, %175 : vector<2x128xf32>
    %cst_45 = arith.constant 5.000000e-01 : f32
    %178 = vector.broadcast %cst_45 : f32 to vector<2x128xf32>
    %179 = arith.addf %177, %178 : vector<2x128xf32>
    %180 = vector.extract_strided_slice %163 {offsets = [0, 256], sizes = [2, 128], strides = [1, 1]} : vector<2x512xf32> to vector<2x128xf32>
    %181 = math.tanh %180 : vector<2x128xf32>
    %182 = vector.extract_strided_slice %163 {offsets = [0, 384], sizes = [2, 128], strides = [1, 1]} : vector<2x512xf32> to vector<2x128xf32>
    %cst_46 = arith.constant 5.000000e-01 : f32
    %183 = vector.broadcast %cst_46 : f32 to vector<2x128xf32>
    %184 = arith.mulf %183, %182 : vector<2x128xf32>
    %185 = math.tanh %184 : vector<2x128xf32>
    %cst_47 = arith.constant 5.000000e-01 : f32
    %186 = vector.broadcast %cst_47 : f32 to vector<2x128xf32>
    %187 = arith.mulf %186, %185 : vector<2x128xf32>
    %cst_48 = arith.constant 5.000000e-01 : f32
    %188 = vector.broadcast %cst_48 : f32 to vector<2x128xf32>
    %189 = arith.addf %187, %188 : vector<2x128xf32>
    %190 = arith.mulf %179, %121 : vector<2x128xf32>
    %191 = arith.mulf %171, %181 : vector<2x128xf32>
    %192 = arith.addf %190, %191 : vector<2x128xf32>
    %193 = math.tanh %192 : vector<2x128xf32>
    %194 = arith.mulf %189, %193 : vector<2x128xf32>
    %195 = vector.extract_strided_slice %161 {offsets = [0, 512], sizes = [2, 512], strides = [1, 1]} : vector<2x1024xf32> to vector<2x512xf32>
    %196 = vector.broadcast %3 : vector<1x512xf32> to vector<2x512xf32>
    %197 = arith.addf %195, %196 : vector<2x512xf32>
    %198 = vector.extract_strided_slice %197 {offsets = [0, 0], sizes = [2, 128], strides = [1, 1]} : vector<2x512xf32> to vector<2x128xf32>
    %cst_49 = arith.constant 5.000000e-01 : f32
    %199 = vector.broadcast %cst_49 : f32 to vector<2x128xf32>
    %200 = arith.mulf %199, %198 : vector<2x128xf32>
    %201 = math.tanh %200 : vector<2x128xf32>
    %cst_50 = arith.constant 5.000000e-01 : f32
    %202 = vector.broadcast %cst_50 : f32 to vector<2x128xf32>
    %203 = arith.mulf %202, %201 : vector<2x128xf32>
    %cst_51 = arith.constant 5.000000e-01 : f32
    %204 = vector.broadcast %cst_51 : f32 to vector<2x128xf32>
    %205 = arith.addf %203, %204 : vector<2x128xf32>
    %206 = vector.extract_strided_slice %197 {offsets = [0, 128], sizes = [2, 128], strides = [1, 1]} : vector<2x512xf32> to vector<2x128xf32>
    %cst_52 = arith.constant 5.000000e-01 : f32
    %207 = vector.broadcast %cst_52 : f32 to vector<2x128xf32>
    %208 = arith.mulf %207, %206 : vector<2x128xf32>
    %209 = math.tanh %208 : vector<2x128xf32>
    %cst_53 = arith.constant 5.000000e-01 : f32
    %210 = vector.broadcast %cst_53 : f32 to vector<2x128xf32>
    %211 = arith.mulf %210, %209 : vector<2x128xf32>
    %cst_54 = arith.constant 5.000000e-01 : f32
    %212 = vector.broadcast %cst_54 : f32 to vector<2x128xf32>
    %213 = arith.addf %211, %212 : vector<2x128xf32>
    %214 = vector.extract_strided_slice %197 {offsets = [0, 256], sizes = [2, 128], strides = [1, 1]} : vector<2x512xf32> to vector<2x128xf32>
    %215 = math.tanh %214 : vector<2x128xf32>
    %216 = vector.extract_strided_slice %197 {offsets = [0, 384], sizes = [2, 128], strides = [1, 1]} : vector<2x512xf32> to vector<2x128xf32>
    %cst_55 = arith.constant 5.000000e-01 : f32
    %217 = vector.broadcast %cst_55 : f32 to vector<2x128xf32>
    %218 = arith.mulf %217, %216 : vector<2x128xf32>
    %219 = math.tanh %218 : vector<2x128xf32>
    %cst_56 = arith.constant 5.000000e-01 : f32
    %220 = vector.broadcast %cst_56 : f32 to vector<2x128xf32>
    %221 = arith.mulf %220, %219 : vector<2x128xf32>
    %cst_57 = arith.constant 5.000000e-01 : f32
    %222 = vector.broadcast %cst_57 : f32 to vector<2x128xf32>
    %223 = arith.addf %221, %222 : vector<2x128xf32>
    %224 = arith.mulf %213, %155 : vector<2x128xf32>
    %225 = arith.mulf %205, %215 : vector<2x128xf32>
    %226 = arith.addf %224, %225 : vector<2x128xf32>
    %227 = math.tanh %226 : vector<2x128xf32>
    %228 = arith.mulf %223, %227 : vector<2x128xf32>
    %229 = arith.truncf %194 : vector<2x128xf32> to vector<2x128xbf16>
    %230 = arith.truncf %228 : vector<2x128xf32> to vector<2x128xbf16>
    %231 = tpu.concatenate %229, %230 in 1 : vector<2x128xbf16>, vector<2x128xbf16> -> vector<2x256xbf16>
    %cst_58 = arith.constant dense<0.000000e+00> : vector<2x1024xf32>
    %232 = tpu.matmul %231, %4, %cst_58 {dimension_numbers = #tpu.dot_dimension_numbers<[1], [0], [0], [1], [0, 0, 1, 1], [], []>} : vector<2x256xbf16>, vector<256x1024xbf16>, vector<2x1024xf32> -> vector<2x1024xf32>
    %233 = vector.extract_strided_slice %232 {offsets = [0, 0], sizes = [2, 512], strides = [1, 1]} : vector<2x1024xf32> to vector<2x512xf32>
    %234 = arith.addf %233, %28 : vector<2x512xf32>
    %235 = vector.extract_strided_slice %234 {offsets = [0, 0], sizes = [2, 128], strides = [1, 1]} : vector<2x512xf32> to vector<2x128xf32>
    %cst_59 = arith.constant 5.000000e-01 : f32
    %236 = vector.broadcast %cst_59 : f32 to vector<2x128xf32>
    %237 = arith.mulf %236, %235 : vector<2x128xf32>
    %238 = math.tanh %237 : vector<2x128xf32>
    %cst_60 = arith.constant 5.000000e-01 : f32
    %239 = vector.broadcast %cst_60 : f32 to vector<2x128xf32>
    %240 = arith.mulf %239, %238 : vector<2x128xf32>
    %cst_61 = arith.constant 5.000000e-01 : f32
    %241 = vector.broadcast %cst_61 : f32 to vector<2x128xf32>
    %242 = arith.addf %240, %241 : vector<2x128xf32>
    %243 = vector.extract_strided_slice %234 {offsets = [0, 128], sizes = [2, 128], strides = [1, 1]} : vector<2x512xf32> to vector<2x128xf32>
    %cst_62 = arith.constant 5.000000e-01 : f32
    %244 = vector.broadcast %cst_62 : f32 to vector<2x128xf32>
    %245 = arith.mulf %244, %243 : vector<2x128xf32>
    %246 = math.tanh %245 : vector<2x128xf32>
    %cst_63 = arith.constant 5.000000e-01 : f32
    %247 = vector.broadcast %cst_63 : f32 to vector<2x128xf32>
    %248 = arith.mulf %247, %246 : vector<2x128xf32>
    %cst_64 = arith.constant 5.000000e-01 : f32
    %249 = vector.broadcast %cst_64 : f32 to vector<2x128xf32>
    %250 = arith.addf %248, %249 : vector<2x128xf32>
    %251 = vector.extract_strided_slice %234 {offsets = [0, 256], sizes = [2, 128], strides = [1, 1]} : vector<2x512xf32> to vector<2x128xf32>
    %252 = math.tanh %251 : vector<2x128xf32>
    %253 = vector.extract_strided_slice %234 {offsets = [0, 384], sizes = [2, 128], strides = [1, 1]} : vector<2x512xf32> to vector<2x128xf32>
    %cst_65 = arith.constant 5.000000e-01 : f32
    %254 = vector.broadcast %cst_65 : f32 to vector<2x128xf32>
    %255 = arith.mulf %254, %253 : vector<2x128xf32>
    %256 = math.tanh %255 : vector<2x128xf32>
    %cst_66 = arith.constant 5.000000e-01 : f32
    %257 = vector.broadcast %cst_66 : f32 to vector<2x128xf32>
    %258 = arith.mulf %257, %256 : vector<2x128xf32>
    %cst_67 = arith.constant 5.000000e-01 : f32
    %259 = vector.broadcast %cst_67 : f32 to vector<2x128xf32>
    %260 = arith.addf %258, %259 : vector<2x128xf32>
    %261 = arith.mulf %250, %192 : vector<2x128xf32>
    %262 = arith.mulf %242, %252 : vector<2x128xf32>
    %263 = arith.addf %261, %262 : vector<2x128xf32>
    %264 = math.tanh %263 : vector<2x128xf32>
    %265 = arith.mulf %260, %264 : vector<2x128xf32>
    %266 = vector.extract_strided_slice %232 {offsets = [0, 512], sizes = [2, 512], strides = [1, 1]} : vector<2x1024xf32> to vector<2x512xf32>
    %267 = vector.broadcast %3 : vector<1x512xf32> to vector<2x512xf32>
    %268 = arith.addf %266, %267 : vector<2x512xf32>
    %269 = vector.extract_strided_slice %268 {offsets = [0, 0], sizes = [2, 128], strides = [1, 1]} : vector<2x512xf32> to vector<2x128xf32>
    %cst_68 = arith.constant 5.000000e-01 : f32
    %270 = vector.broadcast %cst_68 : f32 to vector<2x128xf32>
    %271 = arith.mulf %270, %269 : vector<2x128xf32>
    %272 = math.tanh %271 : vector<2x128xf32>
    %cst_69 = arith.constant 5.000000e-01 : f32
    %273 = vector.broadcast %cst_69 : f32 to vector<2x128xf32>
    %274 = arith.mulf %273, %272 : vector<2x128xf32>
    %cst_70 = arith.constant 5.000000e-01 : f32
    %275 = vector.broadcast %cst_70 : f32 to vector<2x128xf32>
    %276 = arith.addf %274, %275 : vector<2x128xf32>
    %277 = vector.extract_strided_slice %268 {offsets = [0, 128], sizes = [2, 128], strides = [1, 1]} : vector<2x512xf32> to vector<2x128xf32>
    %cst_71 = arith.constant 5.000000e-01 : f32
    %278 = vector.broadcast %cst_71 : f32 to vector<2x128xf32>
    %279 = arith.mulf %278, %277 : vector<2x128xf32>
    %280 = math.tanh %279 : vector<2x128xf32>
    %cst_72 = arith.constant 5.000000e-01 : f32
    %281 = vector.broadcast %cst_72 : f32 to vector<2x128xf32>
    %282 = arith.mulf %281, %280 : vector<2x128xf32>
    %cst_73 = arith.constant 5.000000e-01 : f32
    %283 = vector.broadcast %cst_73 : f32 to vector<2x128xf32>
    %284 = arith.addf %282, %283 : vector<2x128xf32>
    %285 = vector.extract_strided_slice %268 {offsets = [0, 256], sizes = [2, 128], strides = [1, 1]} : vector<2x512xf32> to vector<2x128xf32>
    %286 = math.tanh %285 : vector<2x128xf32>
    %287 = vector.extract_strided_slice %268 {offsets = [0, 384], sizes = [2, 128], strides = [1, 1]} : vector<2x512xf32> to vector<2x128xf32>
    %cst_74 = arith.constant 5.000000e-01 : f32
    %288 = vector.broadcast %cst_74 : f32 to vector<2x128xf32>
    %289 = arith.mulf %288, %287 : vector<2x128xf32>
    %290 = math.tanh %289 : vector<2x128xf32>
    %cst_75 = arith.constant 5.000000e-01 : f32
    %291 = vector.broadcast %cst_75 : f32 to vector<2x128xf32>
    %292 = arith.mulf %291, %290 : vector<2x128xf32>
    %cst_76 = arith.constant 5.000000e-01 : f32
    %293 = vector.broadcast %cst_76 : f32 to vector<2x128xf32>
    %294 = arith.addf %292, %293 : vector<2x128xf32>
    %295 = arith.mulf %284, %226 : vector<2x128xf32>
    %296 = arith.mulf %276, %286 : vector<2x128xf32>
    %297 = arith.addf %295, %296 : vector<2x128xf32>
    %298 = math.tanh %297 : vector<2x128xf32>
    %299 = arith.mulf %294, %298 : vector<2x128xf32>
    %300 = arith.truncf %265 : vector<2x128xf32> to vector<2x128xbf16>
    %301 = arith.truncf %299 : vector<2x128xf32> to vector<2x128xbf16>
    %302 = tpu.concatenate %300, %301 in 1 : vector<2x128xbf16>, vector<2x128xbf16> -> vector<2x256xbf16>
    %cst_77 = arith.constant dense<0.000000e+00> : vector<2x1024xf32>
    %303 = tpu.matmul %302, %4, %cst_77 {dimension_numbers = #tpu.dot_dimension_numbers<[1], [0], [0], [1], [0, 0, 1, 1], [], []>} : vector<2x256xbf16>, vector<256x1024xbf16>, vector<2x1024xf32> -> vector<2x1024xf32>
    %304 = vector.extract_strided_slice %303 {offsets = [0, 0], sizes = [2, 512], strides = [1, 1]} : vector<2x1024xf32> to vector<2x512xf32>
    %305 = arith.addf %304, %34 : vector<2x512xf32>
    %306 = vector.extract_strided_slice %305 {offsets = [0, 0], sizes = [2, 128], strides = [1, 1]} : vector<2x512xf32> to vector<2x128xf32>
    %cst_78 = arith.constant 5.000000e-01 : f32
    %307 = vector.broadcast %cst_78 : f32 to vector<2x128xf32>
    %308 = arith.mulf %307, %306 : vector<2x128xf32>
    %309 = math.tanh %308 : vector<2x128xf32>
    %cst_79 = arith.constant 5.000000e-01 : f32
    %310 = vector.broadcast %cst_79 : f32 to vector<2x128xf32>
    %311 = arith.mulf %310, %309 : vector<2x128xf32>
    %cst_80 = arith.constant 5.000000e-01 : f32
    %312 = vector.broadcast %cst_80 : f32 to vector<2x128xf32>
    %313 = arith.addf %311, %312 : vector<2x128xf32>
    %314 = vector.extract_strided_slice %305 {offsets = [0, 128], sizes = [2, 128], strides = [1, 1]} : vector<2x512xf32> to vector<2x128xf32>
    %cst_81 = arith.constant 5.000000e-01 : f32
    %315 = vector.broadcast %cst_81 : f32 to vector<2x128xf32>
    %316 = arith.mulf %315, %314 : vector<2x128xf32>
    %317 = math.tanh %316 : vector<2x128xf32>
    %cst_82 = arith.constant 5.000000e-01 : f32
    %318 = vector.broadcast %cst_82 : f32 to vector<2x128xf32>
    %319 = arith.mulf %318, %317 : vector<2x128xf32>
    %cst_83 = arith.constant 5.000000e-01 : f32
    %320 = vector.broadcast %cst_83 : f32 to vector<2x128xf32>
    %321 = arith.addf %319, %320 : vector<2x128xf32>
    %322 = vector.extract_strided_slice %305 {offsets = [0, 256], sizes = [2, 128], strides = [1, 1]} : vector<2x512xf32> to vector<2x128xf32>
    %323 = math.tanh %322 : vector<2x128xf32>
    %324 = vector.extract_strided_slice %305 {offsets = [0, 384], sizes = [2, 128], strides = [1, 1]} : vector<2x512xf32> to vector<2x128xf32>
    %cst_84 = arith.constant 5.000000e-01 : f32
    %325 = vector.broadcast %cst_84 : f32 to vector<2x128xf32>
    %326 = arith.mulf %325, %324 : vector<2x128xf32>
    %327 = math.tanh %326 : vector<2x128xf32>
    %cst_85 = arith.constant 5.000000e-01 : f32
    %328 = vector.broadcast %cst_85 : f32 to vector<2x128xf32>
    %329 = arith.mulf %328, %327 : vector<2x128xf32>
    %cst_86 = arith.constant 5.000000e-01 : f32
    %330 = vector.broadcast %cst_86 : f32 to vector<2x128xf32>
    %331 = arith.addf %329, %330 : vector<2x128xf32>
    %332 = arith.mulf %321, %263 : vector<2x128xf32>
    %333 = arith.mulf %313, %323 : vector<2x128xf32>
    %334 = arith.addf %332, %333 : vector<2x128xf32>
    %335 = math.tanh %334 : vector<2x128xf32>
    %336 = arith.mulf %331, %335 : vector<2x128xf32>
    %337 = vector.extract_strided_slice %303 {offsets = [0, 512], sizes = [2, 512], strides = [1, 1]} : vector<2x1024xf32> to vector<2x512xf32>
    %338 = vector.broadcast %3 : vector<1x512xf32> to vector<2x512xf32>
    %339 = arith.addf %337, %338 : vector<2x512xf32>
    %340 = vector.extract_strided_slice %339 {offsets = [0, 0], sizes = [2, 128], strides = [1, 1]} : vector<2x512xf32> to vector<2x128xf32>
    %cst_87 = arith.constant 5.000000e-01 : f32
    %341 = vector.broadcast %cst_87 : f32 to vector<2x128xf32>
    %342 = arith.mulf %341, %340 : vector<2x128xf32>
    %343 = math.tanh %342 : vector<2x128xf32>
    %cst_88 = arith.constant 5.000000e-01 : f32
    %344 = vector.broadcast %cst_88 : f32 to vector<2x128xf32>
    %345 = arith.mulf %344, %343 : vector<2x128xf32>
    %cst_89 = arith.constant 5.000000e-01 : f32
    %346 = vector.broadcast %cst_89 : f32 to vector<2x128xf32>
    %347 = arith.addf %345, %346 : vector<2x128xf32>
    %348 = vector.extract_strided_slice %339 {offsets = [0, 128], sizes = [2, 128], strides = [1, 1]} : vector<2x512xf32> to vector<2x128xf32>
    %cst_90 = arith.constant 5.000000e-01 : f32
    %349 = vector.broadcast %cst_90 : f32 to vector<2x128xf32>
    %350 = arith.mulf %349, %348 : vector<2x128xf32>
    %351 = math.tanh %350 : vector<2x128xf32>
    %cst_91 = arith.constant 5.000000e-01 : f32
    %352 = vector.broadcast %cst_91 : f32 to vector<2x128xf32>
    %353 = arith.mulf %352, %351 : vector<2x128xf32>
    %cst_92 = arith.constant 5.000000e-01 : f32
    %354 = vector.broadcast %cst_92 : f32 to vector<2x128xf32>
    %355 = arith.addf %353, %354 : vector<2x128xf32>
    %356 = vector.extract_strided_slice %339 {offsets = [0, 256], sizes = [2, 128], strides = [1, 1]} : vector<2x512xf32> to vector<2x128xf32>
    %357 = math.tanh %356 : vector<2x128xf32>
    %358 = vector.extract_strided_slice %339 {offsets = [0, 384], sizes = [2, 128], strides = [1, 1]} : vector<2x512xf32> to vector<2x128xf32>
    %cst_93 = arith.constant 5.000000e-01 : f32
    %359 = vector.broadcast %cst_93 : f32 to vector<2x128xf32>
    %360 = arith.mulf %359, %358 : vector<2x128xf32>
    %361 = math.tanh %360 : vector<2x128xf32>
    %cst_94 = arith.constant 5.000000e-01 : f32
    %362 = vector.broadcast %cst_94 : f32 to vector<2x128xf32>
    %363 = arith.mulf %362, %361 : vector<2x128xf32>
    %cst_95 = arith.constant 5.000000e-01 : f32
    %364 = vector.broadcast %cst_95 : f32 to vector<2x128xf32>
    %365 = arith.addf %363, %364 : vector<2x128xf32>
    %366 = arith.mulf %355, %297 : vector<2x128xf32>
    %367 = arith.mulf %347, %357 : vector<2x128xf32>
    %368 = arith.addf %366, %367 : vector<2x128xf32>
    %369 = math.tanh %368 : vector<2x128xf32>
    %370 = arith.mulf %365, %369 : vector<2x128xf32>
    %371 = arith.truncf %336 : vector<2x128xf32> to vector<2x128xbf16>
    %372 = arith.truncf %370 : vector<2x128xf32> to vector<2x128xbf16>
    %373 = tpu.concatenate %371, %372 in 1 : vector<2x128xbf16>, vector<2x128xbf16> -> vector<2x256xbf16>
    %cst_96 = arith.constant dense<0.000000e+00> : vector<2x1024xf32>
    %374 = tpu.matmul %373, %4, %cst_96 {dimension_numbers = #tpu.dot_dimension_numbers<[1], [0], [0], [1], [0, 0, 1, 1], [], []>} : vector<2x256xbf16>, vector<256x1024xbf16>, vector<2x1024xf32> -> vector<2x1024xf32>
    %375 = vector.extract_strided_slice %374 {offsets = [0, 0], sizes = [2, 512], strides = [1, 1]} : vector<2x1024xf32> to vector<2x512xf32>
    %376 = arith.addf %375, %40 : vector<2x512xf32>
    %377 = vector.extract_strided_slice %376 {offsets = [0, 0], sizes = [2, 128], strides = [1, 1]} : vector<2x512xf32> to vector<2x128xf32>
    %cst_97 = arith.constant 5.000000e-01 : f32
    %378 = vector.broadcast %cst_97 : f32 to vector<2x128xf32>
    %379 = arith.mulf %378, %377 : vector<2x128xf32>
    %380 = math.tanh %379 : vector<2x128xf32>
    %cst_98 = arith.constant 5.000000e-01 : f32
    %381 = vector.broadcast %cst_98 : f32 to vector<2x128xf32>
    %382 = arith.mulf %381, %380 : vector<2x128xf32>
    %cst_99 = arith.constant 5.000000e-01 : f32
    %383 = vector.broadcast %cst_99 : f32 to vector<2x128xf32>
    %384 = arith.addf %382, %383 : vector<2x128xf32>
    %385 = vector.extract_strided_slice %376 {offsets = [0, 128], sizes = [2, 128], strides = [1, 1]} : vector<2x512xf32> to vector<2x128xf32>
    %cst_100 = arith.constant 5.000000e-01 : f32
    %386 = vector.broadcast %cst_100 : f32 to vector<2x128xf32>
    %387 = arith.mulf %386, %385 : vector<2x128xf32>
    %388 = math.tanh %387 : vector<2x128xf32>
    %cst_101 = arith.constant 5.000000e-01 : f32
    %389 = vector.broadcast %cst_101 : f32 to vector<2x128xf32>
    %390 = arith.mulf %389, %388 : vector<2x128xf32>
    %cst_102 = arith.constant 5.000000e-01 : f32
    %391 = vector.broadcast %cst_102 : f32 to vector<2x128xf32>
    %392 = arith.addf %390, %391 : vector<2x128xf32>
    %393 = vector.extract_strided_slice %376 {offsets = [0, 256], sizes = [2, 128], strides = [1, 1]} : vector<2x512xf32> to vector<2x128xf32>
    %394 = math.tanh %393 : vector<2x128xf32>
    %395 = vector.extract_strided_slice %376 {offsets = [0, 384], sizes = [2, 128], strides = [1, 1]} : vector<2x512xf32> to vector<2x128xf32>
    %cst_103 = arith.constant 5.000000e-01 : f32
    %396 = vector.broadcast %cst_103 : f32 to vector<2x128xf32>
    %397 = arith.mulf %396, %395 : vector<2x128xf32>
    %398 = math.tanh %397 : vector<2x128xf32>
    %cst_104 = arith.constant 5.000000e-01 : f32
    %399 = vector.broadcast %cst_104 : f32 to vector<2x128xf32>
    %400 = arith.mulf %399, %398 : vector<2x128xf32>
    %cst_105 = arith.constant 5.000000e-01 : f32
    %401 = vector.broadcast %cst_105 : f32 to vector<2x128xf32>
    %402 = arith.addf %400, %401 : vector<2x128xf32>
    %403 = arith.mulf %392, %334 : vector<2x128xf32>
    %404 = arith.mulf %384, %394 : vector<2x128xf32>
    %405 = arith.addf %403, %404 : vector<2x128xf32>
    %406 = math.tanh %405 : vector<2x128xf32>
    %407 = arith.mulf %402, %406 : vector<2x128xf32>
    %408 = vector.extract_strided_slice %374 {offsets = [0, 512], sizes = [2, 512], strides = [1, 1]} : vector<2x1024xf32> to vector<2x512xf32>
    %409 = vector.broadcast %3 : vector<1x512xf32> to vector<2x512xf32>
    %410 = arith.addf %408, %409 : vector<2x512xf32>
    %411 = vector.extract_strided_slice %410 {offsets = [0, 0], sizes = [2, 128], strides = [1, 1]} : vector<2x512xf32> to vector<2x128xf32>
    %cst_106 = arith.constant 5.000000e-01 : f32
    %412 = vector.broadcast %cst_106 : f32 to vector<2x128xf32>
    %413 = arith.mulf %412, %411 : vector<2x128xf32>
    %414 = math.tanh %413 : vector<2x128xf32>
    %cst_107 = arith.constant 5.000000e-01 : f32
    %415 = vector.broadcast %cst_107 : f32 to vector<2x128xf32>
    %416 = arith.mulf %415, %414 : vector<2x128xf32>
    %cst_108 = arith.constant 5.000000e-01 : f32
    %417 = vector.broadcast %cst_108 : f32 to vector<2x128xf32>
    %418 = arith.addf %416, %417 : vector<2x128xf32>
    %419 = vector.extract_strided_slice %410 {offsets = [0, 128], sizes = [2, 128], strides = [1, 1]} : vector<2x512xf32> to vector<2x128xf32>
    %cst_109 = arith.constant 5.000000e-01 : f32
    %420 = vector.broadcast %cst_109 : f32 to vector<2x128xf32>
    %421 = arith.mulf %420, %419 : vector<2x128xf32>
    %422 = math.tanh %421 : vector<2x128xf32>
    %cst_110 = arith.constant 5.000000e-01 : f32
    %423 = vector.broadcast %cst_110 : f32 to vector<2x128xf32>
    %424 = arith.mulf %423, %422 : vector<2x128xf32>
    %cst_111 = arith.constant 5.000000e-01 : f32
    %425 = vector.broadcast %cst_111 : f32 to vector<2x128xf32>
    %426 = arith.addf %424, %425 : vector<2x128xf32>
    %427 = vector.extract_strided_slice %410 {offsets = [0, 256], sizes = [2, 128], strides = [1, 1]} : vector<2x512xf32> to vector<2x128xf32>
    %428 = math.tanh %427 : vector<2x128xf32>
    %429 = vector.extract_strided_slice %410 {offsets = [0, 384], sizes = [2, 128], strides = [1, 1]} : vector<2x512xf32> to vector<2x128xf32>
    %cst_112 = arith.constant 5.000000e-01 : f32
    %430 = vector.broadcast %cst_112 : f32 to vector<2x128xf32>
    %431 = arith.mulf %430, %429 : vector<2x128xf32>
    %432 = math.tanh %431 : vector<2x128xf32>
    %cst_113 = arith.constant 5.000000e-01 : f32
    %433 = vector.broadcast %cst_113 : f32 to vector<2x128xf32>
    %434 = arith.mulf %433, %432 : vector<2x128xf32>
    %cst_114 = arith.constant 5.000000e-01 : f32
    %435 = vector.broadcast %cst_114 : f32 to vector<2x128xf32>
    %436 = arith.addf %434, %435 : vector<2x128xf32>
    %437 = arith.mulf %426, %368 : vector<2x128xf32>
    %438 = arith.mulf %418, %428 : vector<2x128xf32>
    %439 = arith.addf %437, %438 : vector<2x128xf32>
    %440 = math.tanh %439 : vector<2x128xf32>
    %441 = arith.mulf %436, %440 : vector<2x128xf32>
    %442 = arith.truncf %407 : vector<2x128xf32> to vector<2x128xbf16>
    %443 = arith.truncf %441 : vector<2x128xf32> to vector<2x128xbf16>
    %444 = tpu.concatenate %442, %443 in 1 : vector<2x128xbf16>, vector<2x128xbf16> -> vector<2x256xbf16>
    %cst_115 = arith.constant dense<0.000000e+00> : vector<2x1024xf32>
    %445 = tpu.matmul %444, %4, %cst_115 {dimension_numbers = #tpu.dot_dimension_numbers<[1], [0], [0], [1], [0, 0, 1, 1], [], []>} : vector<2x256xbf16>, vector<256x1024xbf16>, vector<2x1024xf32> -> vector<2x1024xf32>
    %446 = vector.extract_strided_slice %445 {offsets = [0, 0], sizes = [2, 512], strides = [1, 1]} : vector<2x1024xf32> to vector<2x512xf32>
    %447 = arith.addf %446, %46 : vector<2x512xf32>
    %448 = vector.extract_strided_slice %447 {offsets = [0, 0], sizes = [2, 128], strides = [1, 1]} : vector<2x512xf32> to vector<2x128xf32>
    %cst_116 = arith.constant 5.000000e-01 : f32
    %449 = vector.broadcast %cst_116 : f32 to vector<2x128xf32>
    %450 = arith.mulf %449, %448 : vector<2x128xf32>
    %451 = math.tanh %450 : vector<2x128xf32>
    %cst_117 = arith.constant 5.000000e-01 : f32
    %452 = vector.broadcast %cst_117 : f32 to vector<2x128xf32>
    %453 = arith.mulf %452, %451 : vector<2x128xf32>
    %cst_118 = arith.constant 5.000000e-01 : f32
    %454 = vector.broadcast %cst_118 : f32 to vector<2x128xf32>
    %455 = arith.addf %453, %454 : vector<2x128xf32>
    %456 = vector.extract_strided_slice %447 {offsets = [0, 128], sizes = [2, 128], strides = [1, 1]} : vector<2x512xf32> to vector<2x128xf32>
    %cst_119 = arith.constant 5.000000e-01 : f32
    %457 = vector.broadcast %cst_119 : f32 to vector<2x128xf32>
    %458 = arith.mulf %457, %456 : vector<2x128xf32>
    %459 = math.tanh %458 : vector<2x128xf32>
    %cst_120 = arith.constant 5.000000e-01 : f32
    %460 = vector.broadcast %cst_120 : f32 to vector<2x128xf32>
    %461 = arith.mulf %460, %459 : vector<2x128xf32>
    %cst_121 = arith.constant 5.000000e-01 : f32
    %462 = vector.broadcast %cst_121 : f32 to vector<2x128xf32>
    %463 = arith.addf %461, %462 : vector<2x128xf32>
    %464 = vector.extract_strided_slice %447 {offsets = [0, 256], sizes = [2, 128], strides = [1, 1]} : vector<2x512xf32> to vector<2x128xf32>
    %465 = math.tanh %464 : vector<2x128xf32>
    %466 = vector.extract_strided_slice %447 {offsets = [0, 384], sizes = [2, 128], strides = [1, 1]} : vector<2x512xf32> to vector<2x128xf32>
    %cst_122 = arith.constant 5.000000e-01 : f32
    %467 = vector.broadcast %cst_122 : f32 to vector<2x128xf32>
    %468 = arith.mulf %467, %466 : vector<2x128xf32>
    %469 = math.tanh %468 : vector<2x128xf32>
    %cst_123 = arith.constant 5.000000e-01 : f32
    %470 = vector.broadcast %cst_123 : f32 to vector<2x128xf32>
    %471 = arith.mulf %470, %469 : vector<2x128xf32>
    %cst_124 = arith.constant 5.000000e-01 : f32
    %472 = vector.broadcast %cst_124 : f32 to vector<2x128xf32>
    %473 = arith.addf %471, %472 : vector<2x128xf32>
    %474 = arith.mulf %463, %405 : vector<2x128xf32>
    %475 = arith.mulf %455, %465 : vector<2x128xf32>
    %476 = arith.addf %474, %475 : vector<2x128xf32>
    %477 = math.tanh %476 : vector<2x128xf32>
    %478 = arith.mulf %473, %477 : vector<2x128xf32>
    %479 = vector.extract_strided_slice %445 {offsets = [0, 512], sizes = [2, 512], strides = [1, 1]} : vector<2x1024xf32> to vector<2x512xf32>
    %480 = vector.broadcast %3 : vector<1x512xf32> to vector<2x512xf32>
    %481 = arith.addf %479, %480 : vector<2x512xf32>
    %482 = vector.extract_strided_slice %481 {offsets = [0, 0], sizes = [2, 128], strides = [1, 1]} : vector<2x512xf32> to vector<2x128xf32>
    %cst_125 = arith.constant 5.000000e-01 : f32
    %483 = vector.broadcast %cst_125 : f32 to vector<2x128xf32>
    %484 = arith.mulf %483, %482 : vector<2x128xf32>
    %485 = math.tanh %484 : vector<2x128xf32>
    %cst_126 = arith.constant 5.000000e-01 : f32
    %486 = vector.broadcast %cst_126 : f32 to vector<2x128xf32>
    %487 = arith.mulf %486, %485 : vector<2x128xf32>
    %cst_127 = arith.constant 5.000000e-01 : f32
    %488 = vector.broadcast %cst_127 : f32 to vector<2x128xf32>
    %489 = arith.addf %487, %488 : vector<2x128xf32>
    %490 = vector.extract_strided_slice %481 {offsets = [0, 128], sizes = [2, 128], strides = [1, 1]} : vector<2x512xf32> to vector<2x128xf32>
    %cst_128 = arith.constant 5.000000e-01 : f32
    %491 = vector.broadcast %cst_128 : f32 to vector<2x128xf32>
    %492 = arith.mulf %491, %490 : vector<2x128xf32>
    %493 = math.tanh %492 : vector<2x128xf32>
    %cst_129 = arith.constant 5.000000e-01 : f32
    %494 = vector.broadcast %cst_129 : f32 to vector<2x128xf32>
    %495 = arith.mulf %494, %493 : vector<2x128xf32>
    %cst_130 = arith.constant 5.000000e-01 : f32
    %496 = vector.broadcast %cst_130 : f32 to vector<2x128xf32>
    %497 = arith.addf %495, %496 : vector<2x128xf32>
    %498 = vector.extract_strided_slice %481 {offsets = [0, 256], sizes = [2, 128], strides = [1, 1]} : vector<2x512xf32> to vector<2x128xf32>
    %499 = math.tanh %498 : vector<2x128xf32>
    %500 = vector.extract_strided_slice %481 {offsets = [0, 384], sizes = [2, 128], strides = [1, 1]} : vector<2x512xf32> to vector<2x128xf32>
    %cst_131 = arith.constant 5.000000e-01 : f32
    %501 = vector.broadcast %cst_131 : f32 to vector<2x128xf32>
    %502 = arith.mulf %501, %500 : vector<2x128xf32>
    %503 = math.tanh %502 : vector<2x128xf32>
    %cst_132 = arith.constant 5.000000e-01 : f32
    %504 = vector.broadcast %cst_132 : f32 to vector<2x128xf32>
    %505 = arith.mulf %504, %503 : vector<2x128xf32>
    %cst_133 = arith.constant 5.000000e-01 : f32
    %506 = vector.broadcast %cst_133 : f32 to vector<2x128xf32>
    %507 = arith.addf %505, %506 : vector<2x128xf32>
    %508 = arith.mulf %497, %439 : vector<2x128xf32>
    %509 = arith.mulf %489, %499 : vector<2x128xf32>
    %510 = arith.addf %508, %509 : vector<2x128xf32>
    %511 = math.tanh %510 : vector<2x128xf32>
    %512 = arith.mulf %507, %511 : vector<2x128xf32>
    %513 = arith.truncf %478 : vector<2x128xf32> to vector<2x128xbf16>
    %514 = arith.truncf %512 : vector<2x128xf32> to vector<2x128xbf16>
    %515 = tpu.concatenate %513, %514 in 1 : vector<2x128xbf16>, vector<2x128xbf16> -> vector<2x256xbf16>
    %cst_134 = arith.constant dense<0.000000e+00> : vector<2x1024xf32>
    %516 = tpu.matmul %515, %4, %cst_134 {dimension_numbers = #tpu.dot_dimension_numbers<[1], [0], [0], [1], [0, 0, 1, 1], [], []>} : vector<2x256xbf16>, vector<256x1024xbf16>, vector<2x1024xf32> -> vector<2x1024xf32>
    %517 = vector.extract_strided_slice %516 {offsets = [0, 0], sizes = [2, 512], strides = [1, 1]} : vector<2x1024xf32> to vector<2x512xf32>
    %518 = arith.addf %517, %52 : vector<2x512xf32>
    %519 = vector.extract_strided_slice %518 {offsets = [0, 0], sizes = [2, 128], strides = [1, 1]} : vector<2x512xf32> to vector<2x128xf32>
    %cst_135 = arith.constant 5.000000e-01 : f32
    %520 = vector.broadcast %cst_135 : f32 to vector<2x128xf32>
    %521 = arith.mulf %520, %519 : vector<2x128xf32>
    %522 = math.tanh %521 : vector<2x128xf32>
    %cst_136 = arith.constant 5.000000e-01 : f32
    %523 = vector.broadcast %cst_136 : f32 to vector<2x128xf32>
    %524 = arith.mulf %523, %522 : vector<2x128xf32>
    %cst_137 = arith.constant 5.000000e-01 : f32
    %525 = vector.broadcast %cst_137 : f32 to vector<2x128xf32>
    %526 = arith.addf %524, %525 : vector<2x128xf32>
    %527 = vector.extract_strided_slice %518 {offsets = [0, 128], sizes = [2, 128], strides = [1, 1]} : vector<2x512xf32> to vector<2x128xf32>
    %cst_138 = arith.constant 5.000000e-01 : f32
    %528 = vector.broadcast %cst_138 : f32 to vector<2x128xf32>
    %529 = arith.mulf %528, %527 : vector<2x128xf32>
    %530 = math.tanh %529 : vector<2x128xf32>
    %cst_139 = arith.constant 5.000000e-01 : f32
    %531 = vector.broadcast %cst_139 : f32 to vector<2x128xf32>
    %532 = arith.mulf %531, %530 : vector<2x128xf32>
    %cst_140 = arith.constant 5.000000e-01 : f32
    %533 = vector.broadcast %cst_140 : f32 to vector<2x128xf32>
    %534 = arith.addf %532, %533 : vector<2x128xf32>
    %535 = vector.extract_strided_slice %518 {offsets = [0, 256], sizes = [2, 128], strides = [1, 1]} : vector<2x512xf32> to vector<2x128xf32>
    %536 = math.tanh %535 : vector<2x128xf32>
    %537 = vector.extract_strided_slice %518 {offsets = [0, 384], sizes = [2, 128], strides = [1, 1]} : vector<2x512xf32> to vector<2x128xf32>
    %cst_141 = arith.constant 5.000000e-01 : f32
    %538 = vector.broadcast %cst_141 : f32 to vector<2x128xf32>
    %539 = arith.mulf %538, %537 : vector<2x128xf32>
    %540 = math.tanh %539 : vector<2x128xf32>
    %cst_142 = arith.constant 5.000000e-01 : f32
    %541 = vector.broadcast %cst_142 : f32 to vector<2x128xf32>
    %542 = arith.mulf %541, %540 : vector<2x128xf32>
    %cst_143 = arith.constant 5.000000e-01 : f32
    %543 = vector.broadcast %cst_143 : f32 to vector<2x128xf32>
    %544 = arith.addf %542, %543 : vector<2x128xf32>
    %545 = arith.mulf %534, %476 : vector<2x128xf32>
    %546 = arith.mulf %526, %536 : vector<2x128xf32>
    %547 = arith.addf %545, %546 : vector<2x128xf32>
    %548 = math.tanh %547 : vector<2x128xf32>
    %549 = arith.mulf %544, %548 : vector<2x128xf32>
    %550 = vector.extract_strided_slice %516 {offsets = [0, 512], sizes = [2, 512], strides = [1, 1]} : vector<2x1024xf32> to vector<2x512xf32>
    %551 = vector.broadcast %3 : vector<1x512xf32> to vector<2x512xf32>
    %552 = arith.addf %550, %551 : vector<2x512xf32>
    %553 = vector.extract_strided_slice %552 {offsets = [0, 0], sizes = [2, 128], strides = [1, 1]} : vector<2x512xf32> to vector<2x128xf32>
    %cst_144 = arith.constant 5.000000e-01 : f32
    %554 = vector.broadcast %cst_144 : f32 to vector<2x128xf32>
    %555 = arith.mulf %554, %553 : vector<2x128xf32>
    %556 = math.tanh %555 : vector<2x128xf32>
    %cst_145 = arith.constant 5.000000e-01 : f32
    %557 = vector.broadcast %cst_145 : f32 to vector<2x128xf32>
    %558 = arith.mulf %557, %556 : vector<2x128xf32>
    %cst_146 = arith.constant 5.000000e-01 : f32
    %559 = vector.broadcast %cst_146 : f32 to vector<2x128xf32>
    %560 = arith.addf %558, %559 : vector<2x128xf32>
    %561 = vector.extract_strided_slice %552 {offsets = [0, 128], sizes = [2, 128], strides = [1, 1]} : vector<2x512xf32> to vector<2x128xf32>
    %cst_147 = arith.constant 5.000000e-01 : f32
    %562 = vector.broadcast %cst_147 : f32 to vector<2x128xf32>
    %563 = arith.mulf %562, %561 : vector<2x128xf32>
    %564 = math.tanh %563 : vector<2x128xf32>
    %cst_148 = arith.constant 5.000000e-01 : f32
    %565 = vector.broadcast %cst_148 : f32 to vector<2x128xf32>
    %566 = arith.mulf %565, %564 : vector<2x128xf32>
    %cst_149 = arith.constant 5.000000e-01 : f32
    %567 = vector.broadcast %cst_149 : f32 to vector<2x128xf32>
    %568 = arith.addf %566, %567 : vector<2x128xf32>
    %569 = vector.extract_strided_slice %552 {offsets = [0, 256], sizes = [2, 128], strides = [1, 1]} : vector<2x512xf32> to vector<2x128xf32>
    %570 = math.tanh %569 : vector<2x128xf32>
    %571 = vector.extract_strided_slice %552 {offsets = [0, 384], sizes = [2, 128], strides = [1, 1]} : vector<2x512xf32> to vector<2x128xf32>
    %cst_150 = arith.constant 5.000000e-01 : f32
    %572 = vector.broadcast %cst_150 : f32 to vector<2x128xf32>
    %573 = arith.mulf %572, %571 : vector<2x128xf32>
    %574 = math.tanh %573 : vector<2x128xf32>
    %cst_151 = arith.constant 5.000000e-01 : f32
    %575 = vector.broadcast %cst_151 : f32 to vector<2x128xf32>
    %576 = arith.mulf %575, %574 : vector<2x128xf32>
    %cst_152 = arith.constant 5.000000e-01 : f32
    %577 = vector.broadcast %cst_152 : f32 to vector<2x128xf32>
    %578 = arith.addf %576, %577 : vector<2x128xf32>
    %579 = arith.mulf %568, %510 : vector<2x128xf32>
    %580 = arith.mulf %560, %570 : vector<2x128xf32>
    %581 = arith.addf %579, %580 : vector<2x128xf32>
    %582 = math.tanh %581 : vector<2x128xf32>
    %583 = arith.mulf %578, %582 : vector<2x128xf32>
    %584 = arith.truncf %549 : vector<2x128xf32> to vector<2x128xbf16>
    %585 = arith.truncf %583 : vector<2x128xf32> to vector<2x128xbf16>
    %586 = tpu.concatenate %584, %585 in 1 : vector<2x128xbf16>, vector<2x128xbf16> -> vector<2x256xbf16>
    %cst_153 = arith.constant dense<0.000000e+00> : vector<2x1024xf32>
    %587 = tpu.matmul %586, %4, %cst_153 {dimension_numbers = #tpu.dot_dimension_numbers<[1], [0], [0], [1], [0, 0, 1, 1], [], []>} : vector<2x256xbf16>, vector<256x1024xbf16>, vector<2x1024xf32> -> vector<2x1024xf32>
    %588 = vector.extract_strided_slice %587 {offsets = [0, 512], sizes = [2, 512], strides = [1, 1]} : vector<2x1024xf32> to vector<2x512xf32>
    %589 = vector.broadcast %3 : vector<1x512xf32> to vector<2x512xf32>
    %590 = arith.addf %588, %589 : vector<2x512xf32>
    %591 = vector.extract_strided_slice %590 {offsets = [0, 0], sizes = [2, 128], strides = [1, 1]} : vector<2x512xf32> to vector<2x128xf32>
    %cst_154 = arith.constant 5.000000e-01 : f32
    %592 = vector.broadcast %cst_154 : f32 to vector<2x128xf32>
    %593 = arith.mulf %592, %591 : vector<2x128xf32>
    %594 = math.tanh %593 : vector<2x128xf32>
    %cst_155 = arith.constant 5.000000e-01 : f32
    %595 = vector.broadcast %cst_155 : f32 to vector<2x128xf32>
    %596 = arith.mulf %595, %594 : vector<2x128xf32>
    %cst_156 = arith.constant 5.000000e-01 : f32
    %597 = vector.broadcast %cst_156 : f32 to vector<2x128xf32>
    %598 = arith.addf %596, %597 : vector<2x128xf32>
    %599 = vector.extract_strided_slice %590 {offsets = [0, 128], sizes = [2, 128], strides = [1, 1]} : vector<2x512xf32> to vector<2x128xf32>
    %cst_157 = arith.constant 5.000000e-01 : f32
    %600 = vector.broadcast %cst_157 : f32 to vector<2x128xf32>
    %601 = arith.mulf %600, %599 : vector<2x128xf32>
    %602 = math.tanh %601 : vector<2x128xf32>
    %cst_158 = arith.constant 5.000000e-01 : f32
    %603 = vector.broadcast %cst_158 : f32 to vector<2x128xf32>
    %604 = arith.mulf %603, %602 : vector<2x128xf32>
    %cst_159 = arith.constant 5.000000e-01 : f32
    %605 = vector.broadcast %cst_159 : f32 to vector<2x128xf32>
    %606 = arith.addf %604, %605 : vector<2x128xf32>
    %607 = vector.extract_strided_slice %590 {offsets = [0, 256], sizes = [2, 128], strides = [1, 1]} : vector<2x512xf32> to vector<2x128xf32>
    %608 = math.tanh %607 : vector<2x128xf32>
    %609 = vector.extract_strided_slice %590 {offsets = [0, 384], sizes = [2, 128], strides = [1, 1]} : vector<2x512xf32> to vector<2x128xf32>
    %cst_160 = arith.constant 5.000000e-01 : f32
    %610 = vector.broadcast %cst_160 : f32 to vector<2x128xf32>
    %611 = arith.mulf %610, %609 : vector<2x128xf32>
    %612 = math.tanh %611 : vector<2x128xf32>
    %cst_161 = arith.constant 5.000000e-01 : f32
    %613 = vector.broadcast %cst_161 : f32 to vector<2x128xf32>
    %614 = arith.mulf %613, %612 : vector<2x128xf32>
    %cst_162 = arith.constant 5.000000e-01 : f32
    %615 = vector.broadcast %cst_162 : f32 to vector<2x128xf32>
    %616 = arith.addf %614, %615 : vector<2x128xf32>
    %617 = arith.mulf %606, %581 : vector<2x128xf32>
    %618 = arith.mulf %598, %608 : vector<2x128xf32>
    %619 = arith.addf %617, %618 : vector<2x128xf32>
    %620 = math.tanh %619 : vector<2x128xf32>
    %621 = arith.mulf %616, %620 : vector<2x128xf32>
    %c0_163 = arith.constant 0 : index
    %c0_164 = arith.constant 0 : index
    %622 = vector.load %arg5[%c0_163, %c0_164] : memref<1x128xf32, #tpu.memory_space<vmem>>, vector<1x128xf32>
    %623 = vector.broadcast %622 : vector<1x128xf32> to vector<2x128xf32>
    %624 = arith.mulf %621, %623 : vector<2x128xf32>
    %cst_165 = arith.constant dense<0.000000e+00> : vector<2xf32>
    %625 = vector.multi_reduction <add>, %624, %cst_165 [1] : vector<2x128xf32> to vector<2xf32>
    %626 = vector.shape_cast %625 : vector<2xf32> to vector<2x1xf32>
    %c0_166 = arith.constant 0 : index
    %c0_167 = arith.constant 0 : index
    %627 = vector.load %arg6[%c0_166, %c0_167] : memref<1x1xf32, #tpu.memory_space<vmem>>, vector<1x1xf32>
    %628 = vector.broadcast %627 : vector<1x1xf32> to vector<2x1xf32>
    %629 = arith.addf %626, %628 : vector<2x1xf32>
    %c0_168 = arith.constant 0 : index
    %c0_169 = arith.constant 0 : index
    %630 = vector.load %arg7[%c0_168, %c0_169] : memref<2x1xf32, #tpu.memory_space<vmem>>, vector<2x1xf32>
    tpu.vector_store %arg7[%c0_168, %c0_169], %629 {strides = array<i32>} : memref<2x1xf32, #tpu.memory_space<vmem>>, vector<2x1xf32>,
    return
  }
}

</mosaic_0001>

<bundles_post_ra>
// kernel: lstm_forecaster_forward.1
= control target key start
LH: loop header
LB: loop body
LE: loop exit
PB: predicated region body
PF: predicated region fallthrough
CT: control target
= control target key end

     0   :  { %s4506_s0 = inlined_call_operand.vmem [shape: f32[2,8], index: 0, kind: input, shape index: {}]   ;;  %s4507_s1 = inlined_call_operand.vmem [shape: f32[1,512], index: 1, kind: input, shape index: {}]   ;;  %s4508_s2 = inlined_call_operand.vmem [shape: f32[1,512], index: 2, kind: input, shape index: {}]   ;;  %s4509_s3 = inlined_call_operand.hbm [shape: bf16[256,1024], index: 3, kind: input, shape index: {}]   ;;  %s4510_s4 = inlined_call_operand.vmem [shape: f32[1,512], index: 4, kind: input, shape index: {}]   ;;  %s4511_s5 = inlined_call_operand.vmem [shape: f32[1,128], index: 5, kind: input, shape index: {}]   ;;  %s4512_s6 = inlined_call_operand.<no memory space> [shape: f32[1,1], index: 6, kind: input, shape index: {}]   ;;  %s4513_s7 = inlined_call_operand.vmem [shape: f32[2,1], index: 7, kind: output, shape index: {}]  }
   0x1   :  { %v12_v0 = vstv %s4512_s6 }
   0x2   :  { %13 = vst [vmem:[#allocation2] sm:$0x1] %v12_v0 }
   0x3   :  { %14 = vsyncpa [#allocation4], 0  ;;  %s2931_s26 = smov [#allocation3]   ;;  %s2907_s30 = scalar_lea.hbm %s4509_s3, 16384 }
   0x4   :  { %s26_s27 = sshll.u32 %s2931_s26, 4  ;;  %p2908_p0 = scmp.ne.s32.totalorder %s4509_s3, %s2907_s30  ;;  %s27_s27 = int_to_ptr.vmem [resolvable:$true] %s26_s27 }
   0x5   :  { %p2911_p1 = scmp.lt.u32.totalorder %s2907_s30, %s4509_s3 }
   0x7   :  { %p2913_p2 = pnand %p2911_p1, %p2908_p0 }
   0x9   :  { %2916 = shalt.err (!%p2913_p2)
}
   0xa   :  { %s2917_s6 = scalar_lea.vmem %s27_s27, 16384  ;;  %p2922_p4 = scmp.lt.s32.totalorder %s27_s27, %s27_s27 }
   0xb   :  { %p2918_p3 = scmp.ne.s32.totalorder %s27_s27, %s2917_s6  ;;  %p2923_p5 = scmp.lt.s32.totalorder %s2917_s6, %s2917_s6 }
   0xd   :  { %p2924_p6 = por %p2923_p5, %p2922_p4 }
   0xf   :  { %p2925_p7 = pnand %p2924_p6, %p2918_p3 }
  0x11   :  { %2928 = shalt.err (!%p2925_p7)
}
  0x12   :  { %s2932_s12 = smov 512   ;;  %s2933_s13 = smov 32  }
  0x13   :  { %32 = dma.hbm_to_vmem [thread:$0]  %s4509_s3, 16384, %s27_s27, [#allocation4], %s2932_s12, %s2932_s12, %s2933_s13  }
  0x14   :  { %2929 = dma.done.wait [#allocation4], 16384  }
  0x15   :  { %2930 = vsyncadd [#allocation4], 4294950912  ;;  %v4514_v1 = vmov 0   ;;  %v3003_v2 = vld [vmem:[%s4506_s0] sm:$0x3]  ;;  %v48_v6 = vld [vmem:[#allocation3 + $0x8] sm:$0xff] }
  0x16   :  { %2736 = vset.pattern.permute.xlu0 %v4514_v1  ;;  %1005 = vmatprep.mubr.bf16.mxu0 %v4514_v1  ;;  %v47_v3 = vld [vmem:[#allocation3] sm:$0xff]  ;;  %v52_v7 = vld [vmem:[#allocation3 + $0x28] sm:$0xff]  ;;  %vm2576_vm0 = vcmask 1041408   ;;  %vm2588_vm1 = vcmask 1024  }
  0x17   :  { %1046 = vmatprep.mubr.bf16.mxu1 %v4514_v1  ;;  %v51_v4 = vld [vmem:[#allocation3 + $0x20] sm:$0xff]  ;;  %177 = vperm.xlu0 %2736, %v3003_v2   ;;  %v3010_v10 = vcombine.high %v48_v6, %v52_v7  ;;  %v3012_v11 = vcombine.low %v48_v6, %v52_v7  ;;  %v56_v13 = vld [vmem:[#allocation3 + $0x48] sm:$0xff] }
  0x18   :  { %v3006_v5 = vcombine.high %v47_v3, %v51_v4  ;;  %v3008_v8 = vcombine.low %v47_v3, %v51_v4  ;;  %v55_v9 = vld [vmem:[#allocation3 + $0x40] sm:$0xff]  ;;  %v60_v14 = vld [vmem:[#allocation3 + $0x68] sm:$0xff] }
  0x19   :  { %4827 = vst [vmem:[#allocation8_spill] sm:$0xff] %v3010_v10  ;;  %4828 = vst [vmem:[#allocation9_spill] sm:$0xff] %v3012_v11  ;;  %v59_v12 = vld [vmem:[#allocation3 + $0x60] sm:$0xff]  ;;  %v3017_v16 = vcombine.high %v56_v13, %v60_v14  ;;  %v64_v19 = vld [vmem:[#allocation3 + $0x88] sm:$0xff]  ;;  %1014 = vmatprep.subr.bf16.mxu1 %v3010_v10  ;;  %v3025_v22 = vcombine.low %v56_v13, %v60_v14 }
  0x1a   :  { %4825 = vst [vmem:[#allocation6_spill] sm:$0xff] %v3006_v5  ;;  %4826 = vst [vmem:[#allocation7_spill] sm:$0xff] %v3008_v8  ;;  %973 = vmatprep.subr.bf16.mxu0 %v3006_v5  ;;  %v3015_v15 = vcombine.high %v55_v9, %v59_v12  ;;  %v63_v17 = vld [vmem:[#allocation3 + $0x80] sm:$0xff]  ;;  %v3021_v20 = vcombine.low %v55_v9, %v59_v12  ;;  %v68_v21 = vld [vmem:[#allocation3 + $0xa8] sm:$0xff]  ;;  %1015 = vmatpush1.bf16.msra.mxu1 %v3012_v11 }
  0x1b   :  { %4830 = vst [vmem:[#allocation11_spill] sm:$0xff] %v3017_v16  ;;  %v67_v18 = vld [vmem:[#allocation3 + $0xa0] sm:$0xff]  ;;  %974 = vmatpush1.bf16.msra.mxu0 %v3008_v8  ;;  %4832 = vst [vmem:[#allocation13_spill] sm:$0xff] %v3025_v22  ;;  %1016 = vmatprep.subr.bf16.mxu1 %v3017_v16  ;;  %v3030_v24 = vcombine.high %v64_v19, %v68_v21  ;;  %v72_v27 = vld [vmem:[#allocation3 + $0xc8] sm:$0xff]  ;;  %v3037_v30 = vcombine.low %v64_v19, %v68_v21 }
  0x1c   :  { %4829 = vst [vmem:[#allocation10_spill] sm:$0xff] %v3015_v15  ;;  %4831 = vst [vmem:[#allocation12_spill] sm:$0xff] %v3021_v20  ;;  %975 = vmatprep.subr.bf16.mxu0 %v3015_v15  ;;  %v3027_v23 = vcombine.high %v63_v17, %v67_v18  ;;  %v71_v25 = vld [vmem:[#allocation3 + $0xc0] sm:$0xff]  ;;  %v76_v28 = vld [vmem:[#allocation3 + $0xe8] sm:$0xff]  ;;  %v3033_v29 = vcombine.low %v63_v17, %v67_v18 }
  0x1d   :  { %4834 = vst [vmem:[#allocation15_spill] sm:$0xff] %v3030_v24  ;;  %v75_v26 = vld [vmem:[#allocation3 + $0xe0] sm:$0xff]  ;;  %4836 = vst [vmem:[#allocation17_spill] sm:$0xff] %v3037_v30  ;;  %v3042_v32 = vcombine.high %v72_v27, %v76_v28  ;;  %v80_v35 = vld [vmem:[#allocation3 + $0x108] sm:$0xff]  ;;  %v3049_v38 = vcombine.low %v72_v27, %v76_v28 }
  0x1e   :  { %4833 = vst [vmem:[#allocation14_spill] sm:$0xff] %v3027_v23  ;;  %4835 = vst [vmem:[#allocation16_spill] sm:$0xff] %v3033_v29  ;;  %1017 = vmatpush1.bf16.msra.mxu1 %v3025_v22  ;;  %v3039_v31 = vcombine.high %v71_v25, %v75_v26  ;;  %v79_v33 = vld [vmem:[#allocation3 + $0x100] sm:$0xff]  ;;  %v84_v36 = vld [vmem:[#allocation3 + $0x128] sm:$0xff]  ;;  %v3045_v37 = vcombine.low %v71_v25, %v75_v26 }
  0x1f   :  { %976 = vmatpush1.bf16.msra.mxu0 %v3021_v20  ;;  %1018 = vmatprep.subr.bf16.mxu1 %v3030_v24  ;;  %4838 = vst [vmem:[#allocation19_spill] sm:$0xff] %v3042_v32  ;;  %v83_v34 = vld [vmem:[#allocation3 + $0x120] sm:$0xff]  ;;  %4840 = vst [vmem:[#allocation21_spill] sm:$0xff] %v3049_v38  ;;  %v3054_v40 = vcombine.high %v80_v35, %v84_v36  ;;  %v88_v43 = vld [vmem:[#allocation3 + $0x148] sm:$0xff]  ;;  %v3061_v46 = vcombine.low %v80_v35, %v84_v36 }
  0x20   :  { %977 = vmatprep.subr.bf16.mxu0 %v3027_v23  ;;  %4837 = vst [vmem:[#allocation18_spill] sm:$0xff] %v3039_v31  ;;  %4839 = vst [vmem:[#allocation20_spill] sm:$0xff] %v3045_v37  ;;  %v3051_v39 = vcombine.high %v79_v33, %v83_v34  ;;  %v87_v41 = vld [vmem:[#allocation3 + $0x140] sm:$0xff]  ;;  %v92_v44 = vld [vmem:[#allocation3 + $0x168] sm:$0xff]  ;;  %v3057_v45 = vcombine.low %v79_v33, %v83_v34 }
  0x21   :  { %4842 = vst [vmem:[#allocation23_spill] sm:$0xff] %v3054_v40  ;;  %v91_v42 = vld [vmem:[#allocation3 + $0x160] sm:$0xff]  ;;  %4844 = vst [vmem:[#allocation25_spill] sm:$0xff] %v3061_v46  ;;  %v3066_v48 = vcombine.high %v88_v43, %v92_v44  ;;  %v96_v51 = vld [vmem:[#allocation3 + $0x188] sm:$0xff]  ;;  %v3073_v54 = vcombine.low %v88_v43, %v92_v44 }
  0x22   :  { %1019 = vmatpush1.bf16.msra.mxu1 %v3037_v30  ;;  %4841 = vst [vmem:[#allocation22_spill] sm:$0xff] %v3051_v39  ;;  %4843 = vst [vmem:[#allocation24_spill] sm:$0xff] %v3057_v45  ;;  %v3063_v47 = vcombine.high %v87_v41, %v91_v42  ;;  %v95_v49 = vld [vmem:[#allocation3 + $0x180] sm:$0xff]  ;;  %v100_v52 = vld [vmem:[#allocation3 + $0x1a8] sm:$0xff]  ;;  %v3069_v53 = vcombine.low %v87_v41, %v91_v42 }
  0x23   :  { %978 = vmatpush1.bf16.msra.mxu0 %v3033_v29  ;;  %1020 = vmatprep.subr.bf16.mxu1 %v3042_v32  ;;  %4846 = vst [vmem:[#allocation27_spill] sm:$0xff] %v3066_v48  ;;  %v99_v50 = vld [vmem:[#allocation3 + $0x1a0] sm:$0xff]  ;;  %4848 = vst [vmem:[#allocation29_spill] sm:$0xff] %v3073_v54  ;;  %v3078_v56 = vcombine.high %v96_v51, %v100_v52  ;;  %v104_v59 = vld [vmem:[#allocation3 + $0x1c8] sm:$0xff]  ;;  %v3085_v62 = vcombine.low %v96_v51, %v100_v52 }
  0x24   :  { %979 = vmatprep.subr.bf16.mxu0 %v3039_v31  ;;  %4845 = vst [vmem:[#allocation26_spill] sm:$0xff] %v3063_v47  ;;  %4847 = vst [vmem:[#allocation28_spill] sm:$0xff] %v3069_v53  ;;  %v3075_v55 = vcombine.high %v95_v49, %v99_v50  ;;  %v103_v57 = vld [vmem:[#allocation3 + $0x1c0] sm:$0xff]  ;;  %v108_v60 = vld [vmem:[#allocation3 + $0x1e8] sm:$0xff]  ;;  %v3081_v61 = vcombine.low %v95_v49, %v99_v50 }
  0x25   :  { %4850 = vst [vmem:[#allocation31_spill] sm:$0xff] %v3078_v56  ;;  %v107_v58 = vld [vmem:[#allocation3 + $0x1e0] sm:$0xff]  ;;  %4852 = vst [vmem:[#allocation33_spill] sm:$0xff] %v3085_v62  ;;  %v3090_v0 = vcombine.high %v104_v59, %v108_v60  ;;  %v112_v6 = vld [vmem:[#allocation3 + $0x208] sm:$0xff]  ;;  %v3097_v12 = vcombine.low %v104_v59, %v108_v60 }
  0x26   :  { %1021 = vmatpush1.bf16.msra.mxu1 %v3049_v38  ;;  %4849 = vst [vmem:[#allocation30_spill] sm:$0xff] %v3075_v55  ;;  %4851 = vst [vmem:[#allocation32_spill] sm:$0xff] %v3081_v61  ;;  %v3087_v63 = vcombine.high %v103_v57, %v107_v58  ;;  %v111_v3 = vld [vmem:[#allocation3 + $0x200] sm:$0xff]  ;;  %v116_v7 = vld [vmem:[#allocation3 + $0x228] sm:$0xff]  ;;  %v3093_v9 = vcombine.low %v103_v57, %v107_v58 }
  0x27   :  { %980 = vmatpush1.bf16.msra.mxu0 %v3045_v37  ;;  %1022 = vmatprep.subr.bf16.mxu1 %v3054_v40  ;;  %4854 = vst [vmem:[#allocation35_spill] sm:$0xff] %v3090_v0  ;;  %v115_v4 = vld [vmem:[#allocation3 + $0x220] sm:$0xff]  ;;  %4856 = vst [vmem:[#allocation37_spill] sm:$0xff] %v3097_v12  ;;  %v3102_v14 = vcombine.high %v112_v6, %v116_v7  ;;  %v120_v19 = vld [vmem:[#allocation3 + $0x248] sm:$0xff]  ;;  %v3109_v26 = vcombine.low %v112_v6, %v116_v7 }
  0x28   :  { %981 = vmatprep.subr.bf16.mxu0 %v3051_v39  ;;  %4853 = vst [vmem:[#allocation34_spill] sm:$0xff] %v3087_v63  ;;  %4855 = vst [vmem:[#allocation36_spill] sm:$0xff] %v3093_v9  ;;  %v3099_v13 = vcombine.high %v111_v3, %v115_v4  ;;  %v119_v17 = vld [vmem:[#allocation3 + $0x240] sm:$0xff]  ;;  %v124_v21 = vld [vmem:[#allocation3 + $0x268] sm:$0xff]  ;;  %v3105_v25 = vcombine.low %v111_v3, %v115_v4 }
  0x29   :  { %4858 = vst [vmem:[#allocation39_spill] sm:$0xff] %v3102_v14  ;;  %v123_v18 = vld [vmem:[#allocation3 + $0x260] sm:$0xff]  ;;  %4860 = vst [vmem:[#allocation41_spill] sm:$0xff] %v3109_v26  ;;  %v3114_v28 = vcombine.high %v120_v19, %v124_v21  ;;  %v128_v35 = vld [vmem:[#allocation3 + $0x288] sm:$0xff]  ;;  %v3121_v42 = vcombine.low %v120_v19, %v124_v21 }
  0x2a   :  { %1023 = vmatpush1.bf16.msra.mxu1 %v3061_v46  ;;  %4857 = vst [vmem:[#allocation38_spill] sm:$0xff] %v3099_v13  ;;  %4859 = vst [vmem:[#allocation40_spill] sm:$0xff] %v3105_v25  ;;  %v3111_v27 = vcombine.high %v119_v17, %v123_v18  ;;  %v127_v33 = vld [vmem:[#allocation3 + $0x280] sm:$0xff]  ;;  %v132_v36 = vld [vmem:[#allocation3 + $0x2a8] sm:$0xff]  ;;  %v3117_v41 = vcombine.low %v119_v17, %v123_v18 }
  0x2b   :  { %982 = vmatpush1.bf16.msra.mxu0 %v3057_v45  ;;  %1024 = vmatprep.subr.bf16.mxu1 %v3066_v48  ;;  %4862 = vst [vmem:[#allocation43_spill] sm:$0xff] %v3114_v28  ;;  %v131_v34 = vld [vmem:[#allocation3 + $0x2a0] sm:$0xff]  ;;  %4864 = vst [vmem:[#allocation45_spill] sm:$0xff] %v3121_v42  ;;  %v3125_v50 = vld [vmem:[#allocation3 + $0x10] sm:$0xff]  ;;  %v3128_v51 = vcombine.high %v128_v35, %v132_v36  ;;  %v3139_v4 = vcombine.low %v128_v35, %v132_v36 }
  0x2c   :  { %983 = vmatprep.subr.bf16.mxu0 %v3063_v47  ;;  %4861 = vst [vmem:[#allocation42_spill] sm:$0xff] %v3111_v27  ;;  %4863 = vst [vmem:[#allocation44_spill] sm:$0xff] %v3117_v41  ;;  %v3123_v43 = vcombine.high %v127_v33, %v131_v34  ;;  %v135_v44 = vld [vmem:[#allocation3 + $0x2c0] sm:$0xff]  ;;  %v3130_v52 = vld [vmem:[#allocation3 + $0x30] sm:$0xff]  ;;  %v3137_v3 = vcombine.low %v127_v33, %v131_v34 }
  0x2d   :  { %v139_v49 = vld [vmem:[#allocation3 + $0x2e0] sm:$0xff]  ;;  %4866 = vst [vmem:[#allocation47_spill] sm:$0xff] %v3128_v51  ;;  %v3132_v57 = vld [vmem:[#allocation3 + $0x18] sm:$0xff]  ;;  %v136_v59 = vld [vmem:[#allocation3 + $0x2c8] sm:$0xff]  ;;  %v3147_v7 = vcombine.low %v3125_v50, %v3130_v52 }
  0x2e   :  { %1025 = vmatpush1.bf16.msra.mxu1 %v3073_v54  ;;  %4865 = vst [vmem:[#allocation46_spill] sm:$0xff] %v3123_v43  ;;  %v3134_v58 = vld [vmem:[#allocation3 + $0x38] sm:$0xff]  ;;  %v140_v60 = vld [vmem:[#allocation3 + $0x2e8] sm:$0xff]  ;;  %4867 = vst [vmem:[#allocation48_spill] sm:$0xff] %v3137_v3  ;;  %v3143_v6 = vcombine.high %v135_v44, %v139_v49  ;;  %v3157_v35 = vcombine.low %v135_v44, %v139_v49 }
  0x2f   :  { %984 = vmatpush1.bf16.msra.mxu0 %v3069_v53  ;;  %1026 = vmatprep.subr.bf16.mxu1 %v3078_v56  ;;  %4868 = vst [vmem:[#allocation49_spill] sm:$0xff] %v3139_v4  ;;  %v3151_v17 = vcombine.low %v3132_v57, %v3134_v58  ;;  %v3154_v18 = vcombine.high %v136_v59, %v140_v60  ;;  %v143_v19 = vld [vmem:[#allocation3 + $0x300] sm:$0xff]  ;;  %v144_v33 = vld [vmem:[#allocation3 + $0x308] sm:$0xff] }
  0x30   :  { %985 = vmatprep.subr.bf16.mxu0 %v3075_v55  ;;  %4869 = vst [vmem:[#allocation50_spill] sm:$0xff] %v3143_v6  ;;  %v147_v21 = vld [vmem:[#allocation3 + $0x320] sm:$0xff]  ;;  %v148_v34 = vld [vmem:[#allocation3 + $0x328] sm:$0xff]  ;;  %4872 = vst [vmem:[#allocation53_spill] sm:$0xff] %v3157_v35  ;;  %v3161_v36 = vcombine.low %v136_v59, %v140_v60 }
  0x31   :  { %4870 = vst [vmem:[#allocation51_spill] sm:$0xff] %v3151_v17  ;;  %4871 = vst [vmem:[#allocation52_spill] sm:$0xff] %v3154_v18  ;;  %v3163_v1 = vcombine.high %v143_v19, %v147_v21  ;;  %v3169_v44 = vcombine.low %v143_v19, %v147_v21  ;;  %v3173_v49 = vcombine.low %v144_v33, %v148_v34 }
  0x32   :  { %1027 = vmatpush1.bf16.msra.mxu1 %v3085_v62  ;;  %4873 = vst [vmem:[#allocation54_spill] sm:$0xff] %v3161_v36 }
  0x33   :  { %986 = vmatpush1.bf16.msra.mxu0 %v3081_v61  ;;  %1028 = vmatprep.subr.bf16.mxu1 %v3090_v0  ;;  %4874 = vst [vmem:[#allocation55_spill] sm:$0xff] %v3163_v1  ;;  %4876 = vst [vmem:[#allocation57_spill] sm:$0xff] %v3169_v44 }
  0x34   :  { %987 = vmatprep.subr.bf16.mxu0 %v3087_v63  ;;  %4877 = vst [vmem:[#allocation58_spill] sm:$0xff] %v3173_v49 }
  0x36   :  { %1029 = vmatpush1.bf16.msra.mxu1 %v3097_v12 }
  0x37   :  { %988 = vmatpush1.bf16.msra.mxu0 %v3093_v9  ;;  %1030 = vmatprep.subr.bf16.mxu1 %v3102_v14 }
  0x38   :  { %989 = vmatprep.subr.bf16.mxu0 %v3099_v13 }
  0x3a   :  { %1031 = vmatpush1.bf16.msra.mxu1 %v3109_v26 }
  0x3b   :  { %990 = vmatpush1.bf16.msra.mxu0 %v3105_v25  ;;  %1032 = vmatprep.subr.bf16.mxu1 %v3114_v28  ;;  %v156_v28 = vld [vmem:[#allocation3 + $0x368] sm:$0xff] }
  0x3c   :  { %991 = vmatprep.subr.bf16.mxu0 %v3111_v27 }
  0x3e   :  { %1033 = vmatpush1.bf16.msra.mxu1 %v3121_v42  ;;  %v155_v42 = vld [vmem:[#allocation3 + $0x360] sm:$0xff] }
  0x3f   :  { %992 = vmatpush1.bf16.msra.mxu0 %v3117_v41  ;;  %1034 = vmatprep.subr.bf16.mxu1 %v3128_v51  ;;  %v3166_v51 = vcombine.high %v144_v33, %v148_v34  ;;  %v152_v41 = vld [vmem:[#allocation3 + $0x348] sm:$0xff] }
  0x40   :  { %993 = vmatprep.subr.bf16.mxu0 %v3123_v43  ;;  %v151_v43 = vld [vmem:[#allocation3 + $0x340] sm:$0xff]  ;;  %v3178_v60 = vcombine.high %v152_v41, %v156_v28  ;;  %v3185_v21 = vcombine.low %v152_v41, %v156_v28 }
  0x41   :  { %4875 = vst [vmem:[#allocation56_spill] sm:$0xff] %v3166_v51  ;;  %v3175_v59 = vcombine.high %v151_v43, %v155_v42  ;;  %v3181_v19 = vcombine.low %v151_v43, %v155_v42 }
  0x42   :  { %1035 = vmatpush1.bf16.msra.mxu1 %v3139_v4  ;;  %4879 = vst [vmem:[#allocation60_spill] sm:$0xff] %v3178_v60  ;;  %v160_v4 = vld [vmem:[#allocation3 + $0x388] sm:$0xff]  ;;  %4881 = vst [vmem:[#allocation62_spill] sm:$0xff] %v3185_v21 }
  0x43   :  { %994 = vmatpush1.bf16.msra.mxu0 %v3137_v3  ;;  %1036 = vmatprep.subr.bf16.mxu1 %v3154_v18  ;;  %4878 = vst [vmem:[#allocation59_spill] sm:$0xff] %v3175_v59  ;;  %v159_v18 = vld [vmem:[#allocation3 + $0x380] sm:$0xff]  ;;  %v164_v3 = vld [vmem:[#allocation3 + $0x3a8] sm:$0xff]  ;;  %4880 = vst [vmem:[#allocation61_spill] sm:$0xff] %v3181_v19 }
  0x44   :  { %995 = vmatprep.subr.bf16.mxu0 %v3143_v6  ;;  %v163_v6 = vld [vmem:[#allocation3 + $0x3a0] sm:$0xff]  ;;  %v3190_v34 = vcombine.high %v160_v4, %v164_v3  ;;  %v3197_v28 = vcombine.low %v160_v4, %v164_v3  ;;  %v3213_v3 = vcombine.high %v3125_v50, %v3130_v52  ;;  %v3218_v4 = vcombine.high %v3132_v57, %v3134_v58 }
  0x45   :  { %v3187_v33 = vcombine.high %v159_v18, %v163_v6  ;;  %v3193_v42 = vcombine.low %v159_v18, %v163_v6  ;;  %v181_v50 = vlaneseq  ;;  %v44_v57 = vld [vmem:[%s4507_s1] sm:$0xf] }
  0x46   :  { %1037 = vmatpush1.bf16.msra.mxu1 %v3161_v36  ;;  %4883 = vst [vmem:[#allocation64_spill] sm:$0xff] %v3190_v34  ;;  %v168_v36 = vld [vmem:[#allocation3 + $0x3c8] sm:$0xff]  ;;  %4885 = vst [vmem:[#allocation66_spill] sm:$0xff] %v3197_v28 }
  0x47   :  { %996 = vmatpush1.bf16.msra.mxu0 %v3157_v35  ;;  %1038 = vmatprep.subr.bf16.mxu1 %v3166_v51  ;;  %4882 = vst [vmem:[#allocation63_spill] sm:$0xff] %v3187_v33  ;;  %v167_v51 = vld [vmem:[#allocation3 + $0x3c0] sm:$0xff]  ;;  %v172_v35 = vld [vmem:[#allocation3 + $0x3e8] sm:$0xff]  ;;  %4884 = vst [vmem:[#allocation65_spill] sm:$0xff] %v3193_v42 }
  0x48   :  { %997 = vmatprep.subr.bf16.mxu0 %v3163_v1  ;;  %v171_v1 = vld [vmem:[#allocation3 + $0x3e0] sm:$0xff]  ;;  %v3202_v43 = vcombine.high %v168_v36, %v172_v35  ;;  %v3209_v6 = vcombine.low %v168_v36, %v172_v35  ;;  %4890 = vst [vmem:[#allocation71_spill] sm:$0xff] %v3213_v3  ;;  %4891 = vst [vmem:[#allocation72_spill] sm:$0xff] %v3218_v4 }
  0x49   :  { %v3199_v41 = vcombine.high %v167_v51, %v171_v1  ;;  %v45_v35 = vld [vmem:[%s4508_s2] sm:$0xf] }
  0x4a   :  { %1039 = vmatpush1.bf16.msra.mxu1 %v3173_v49  ;;  %4887 = vst [vmem:[#allocation68_spill] sm:$0xff] %v3202_v43  ;;  %4889 = vst [vmem:[#allocation70_spill] sm:$0xff] %v3209_v6 }
  0x4b   :  { %998 = vmatpush1.bf16.msra.mxu0 %v3169_v44  ;;  %1040 = vmatprep.subr.bf16.mxu1 %v3178_v60  ;;  %4886 = vst [vmem:[#allocation67_spill] sm:$0xff] %v3199_v41  ;;  %v3205_v60 = vcombine.low %v167_v51, %v171_v1  ;;  %v2935_v1 = vmov 1   ;;  %v182_v51 = vshrl.u32 %v181_v50, 7 }
  0x4c   :  { %999 = vmatprep.subr.bf16.mxu0 %v3175_v59  ;;  %2737 = vset.pattern.permute.xlu0 %v2935_v1 }
  0x4d   :  { %4888 = vst [vmem:[#allocation69_spill] sm:$0xff] %v3205_v60  ;;  %231 = vperm.xlu0 %2737, %v3003_v2   ;;  %v3225_v52 = vsub.s32 0, %v182_v51  ;;  %v3227_v18 = vsub.s32 1, %v182_v51  ;;  %v3232_v58 = vsub.s32 2, %v182_v51  ;;  %v3243_v1 = vsub.s32 3, %v182_v51 }
  0x4e   :  { %1041 = vmatpush1.bf16.msra.mxu1 %v3185_v21 }
  0x4f   :  { %1000 = vmatpush1.bf16.msra.mxu0 %v3181_v19  ;;  %1042 = vmatprep.subr.bf16.mxu1 %v3190_v34  ;;  %4892 = vst [vmem:[#allocation73_spill] sm:$0xff] %v3225_v52  ;;  %4893 = vst [vmem:[#allocation74_spill] sm:$0xff] %v3227_v18  ;;  %v3238_v36 = vrot.slane %v44_v57, %v3225_v52  ;;  %v3241_v2 = vrot.slane %v44_v57, %v3227_v18 }
  0x50   :  { %1001 = vmatprep.subr.bf16.mxu0 %v3187_v33  ;;  %4894 = vst [vmem:[#allocation75_spill] sm:$0xff] %v3232_v58  ;;  %4897 = vst [vmem:[#allocation78_spill] sm:$0xff] %v3243_v1  ;;  %v3246_v50 = vrot.slane %v44_v57, %v3232_v58  ;;  %v3260_v51 = vrot.slane %v45_v35, %v3232_v58  ;;  %v3266_v33 = vrot.slane %v45_v35, %v3243_v1 }
  0x51   :  { %4895 = vst [vmem:[#allocation76_spill] sm:$0xff] %v3238_v36  ;;  %4896 = vst [vmem:[#allocation77_spill] sm:$0xff] %v3241_v2 }
  0x52   :  { %1043 = vmatpush1.bf16.msra.mxu1 %v3197_v28  ;;  %4898 = vst [vmem:[#allocation79_spill] sm:$0xff] %v3246_v50  ;;  %4902 = vst [vmem:[#allocation83_spill] sm:$0xff] %v3260_v51 }
  0x53   :  { %1002 = vmatpush1.bf16.msra.mxu0 %v3193_v42  ;;  %1044 = vmatprep.subr.bf16.mxu1 %v3202_v43  ;;  %4903 = vst [vmem:[#allocation84_spill] sm:$0xff] %v3266_v33 }
  0x54   :  { %1003 = vmatprep.subr.bf16.mxu0 %v3199_v41  ;;  %v3257_v41 = vrot.slane %v44_v57, %v3243_v1 }
  0x56   :  { %1045 = vmatpush1.bf16.msra.mxu1 %v3209_v6  ;;  %4901 = vst [vmem:[#allocation82_spill] sm:$0xff] %v3257_v41 }
  0x57   :  { %1004 = vmatpush1.bf16.msra.mxu0 %v3205_v60  ;;  %1096 = vmatprep.subr.bf16.mxu1 %v3218_v4  ;;  %v3249_v4 = vrot.slane %v45_v35, %v3225_v52 }
  0x58   :  { %1055 = vmatprep.subr.bf16.mxu0 %v3213_v3  ;;  %v3252_v3 = vrot.slane %v45_v35, %v3227_v18 }
  0x59   :  { %4899 = vst [vmem:[#allocation80_spill] sm:$0xff] %v3249_v4 }
  0x5a   :  { %4900 = vst [vmem:[#allocation81_spill] sm:$0xff] %v3252_v3 }
  0x96   :  { %v178_v6 = vpop.permute.xlu0 %177 }
  0x97   :  { %v201_v60 = vmul.f32 %v3238_v36, %v178_v6  ;;  %v202_v43 = vmul.f32 %v3241_v2, %v178_v6  ;;  %v203_v28 = vmul.f32 %v3246_v50, %v178_v6  ;;  %v204_v36 = vmul.f32 %v3257_v41, %v178_v6  ;;  %v78_v41 = vld [vmem:[#allocation3 + $0xf8] sm:$0xff] }
  0x99   :  { %v226_v42 = vadd.f32 %v3249_v4, %v201_v60  ;;  %v227_v52 = vadd.f32 %v3252_v3, %v202_v43  ;;  %v228_v2 = vadd.f32 %v3260_v51, %v203_v28  ;;  %v229_v57 = vadd.f32 %v3266_v33, %v204_v36  ;;  %v62_v33 = vld [vmem:[#allocation3 + $0x78] sm:$0xff] }
  0x9b   :  { %v314_v34 = vmul.f32 0.5, %v226_v42  ;;  %v318_v18 = vmul.f32 0.5, %v227_v52  ;;  %v323_v58 = vmul.f32 0.5, %v229_v57  ;;  %v58_v57 = vld [vmem:[#allocation3 + $0x58] sm:$0xff] }
  0x9d   :  { %2745 = vtanh.f32 %v314_v34 }
  0x9e   :  { %2747 = vtanh.f32 %v318_v18  ;;  %v57_v18 = vld [vmem:[#allocation3 + $0x50] sm:$0xff] }
  0x9f   :  { %2749 = vtanh.f32 %v228_v2  ;;  %v61_v2 = vld [vmem:[#allocation3 + $0x70] sm:$0xff] }
  0xa0   :  { %2751 = vtanh.f32 %v323_v58  ;;  %v3276_v58 = vcombine.high %v57_v18, %v61_v2 }
  0xa2   :  { %4905 = vst [vmem:[#allocation86_spill] sm:$0xff] %v3276_v58 }
  0xa7   :  { %v2746_v50 = vpop.eup %2745 }
  0xa8   :  { %v2748_v21 = vpop.eup %2747  ;;  %v316_v60 = vmul.f32 0.5, %v2746_v50 }
  0xa9   :  { %v320_v4 = vmul.f32 0.5, %v2748_v21  ;;  %v2750_v43 = vpop.eup %2749 }
  0xaa   :  { %v317_v42 = vadd.f32 0.5, %v316_v60  ;;  %v2752_v34 = vpop.eup %2751  ;;  %v65_v60 = vld [vmem:[#allocation3 + $0x90] sm:$0xff] }
  0xab   :  { %v321_v52 = vadd.f32 0.5, %v320_v4  ;;  %v325_v28 = vmul.f32 0.5, %v2752_v34  ;;  %v3278_v4 = vcombine.high %v58_v57, %v62_v33 }
  0xac   :  { %v328_v35 = vmul.f32 %v2750_v43, %v317_v42  ;;  %v66_v42 = vld [vmem:[#allocation3 + $0x98] sm:$0xff] }
  0xad   :  { %v327_v1 = vmul.f32 0.0, %v321_v52  ;;  %v326_v6 = vadd.f32 0.5, %v325_v28  ;;  %4906 = vst [vmem:[#allocation87_spill] sm:$0xff] %v3278_v4  ;;  %v70_v43 = vld [vmem:[#allocation3 + $0xb8] sm:$0xff]  ;;  %v3284_v52 = vcombine.low %v57_v18, %v61_v2 }
  0xae   :  { %v3292_v28 = vcombine.high %v66_v42, %v70_v43  ;;  %v3300_v18 = vcombine.low %v66_v42, %v70_v43 }
  0xaf   :  { %v3271_v3 = vadd.f32 %v328_v35, %v327_v1  ;;  %v69_v1 = vld [vmem:[#allocation3 + $0xb0] sm:$0xff]  ;;  %4907 = vst [vmem:[#allocation88_spill] sm:$0xff] %v3284_v52  ;;  %v3286_v35 = vcombine.low %v58_v57, %v62_v33 }
  0xb0   :  { %v3290_v34 = vcombine.high %v65_v60, %v69_v1  ;;  %4910 = vst [vmem:[#allocation91_spill] sm:$0xff] %v3292_v28  ;;  %v3298_v33 = vcombine.low %v65_v60, %v69_v1  ;;  %4913 = vst [vmem:[#allocation93_spill] sm:$0xff] %v3300_v18 }
  0xb1   :  { %4904 = vst [vmem:[#allocation85_spill] sm:$0xff] %v3271_v3  ;;  %2753 = vtanh.f32 %v3271_v3  ;;  %4908 = vst [vmem:[#allocation89_spill] sm:$0xff] %v3286_v35  ;;  %v4911_v3 = vmov 0  }
  0xb2   :  { %4909 = vst [vmem:[#allocation90_spill] sm:$0xff] %v3290_v34  ;;  %4912 = vst [vmem:[#allocation92_spill] sm:$0xff] %v3298_v33 }
  0xbb   :  { %v2754_v36 = vpop.eup %2753 }
  0xbc   :  { %v331_v50 = vmul.f32 %v2754_v36, %v326_v6  ;;  %v73_v6 = vld [vmem:[#allocation3 + $0xd0] sm:$0xff] }
  0xbd   :  { %v77_v36 = vld [vmem:[#allocation3 + $0xf0] sm:$0xff] }
  0xbe   :  { %v3274_v21 = vpack.c.bf16 %v331_v50, %v331_v50  ;;  %v74_v50 = vld [vmem:[#allocation3 + $0xd8] sm:$0xff]  ;;  %v3304_v2 = vcombine.high %v73_v6, %v77_v36  ;;  %v3310_v60 = vcombine.low %v73_v6, %v77_v36 }
  0xbf   :  { %v3306_v57 = vcombine.high %v74_v50, %v78_v41  ;;  %v3312_v1 = vcombine.low %v74_v50, %v78_v41 }
  0xc0   :  { %1006 = vmatmul.mubr.bf16.vlgmr.msra.gmra.mrb[0].mxu0 %v3274_v21  ;;  %1047 = vmatmul.mubr.bf16.vlgmr.msra.gmra.mrb[0].mxu1 %v3274_v21  ;;  %4914 = vst [vmem:[#allocation94_spill] sm:$0xff] %v3304_v2  ;;  %4916 = vst [vmem:[#allocation96_spill] sm:$0xff] %v3310_v60 }
  0xc1   :  { %1056 = vmatpush1.bf16.msra.mxu0 %v3147_v7  ;;  %1097 = vmatpush1.bf16.msra.mxu1 %v3151_v17  ;;  %4915 = vst [vmem:[#allocation95_spill] sm:$0xff] %v3306_v57  ;;  %v82_v17 = vld [vmem:[#allocation3 + $0x118] sm:$0xff]  ;;  %4917 = vst [vmem:[#allocation97_spill] sm:$0xff] %v3312_v1 }
  0xc2   :  { %1057 = vmatprep.subr.bf16.mxu0 %v3276_v58  ;;  %1098 = vmatprep.subr.bf16.mxu1 %v3278_v4  ;;  %v81_v4 = vld [vmem:[#allocation3 + $0x110] sm:$0xff] }
  0xc3   :  { %1087 = vmatprep.mubr.bf16.mxu0 %v4911_v3  ;;  %1128 = vmatprep.mubr.bf16.mxu1 %v4911_v3  ;;  %v85_v58 = vld [vmem:[#allocation3 + $0x130] sm:$0xff]  ;;  %v86_v3 = vld [vmem:[#allocation3 + $0x138] sm:$0xff] }
  0xc4   :  { %v3316_v42 = vcombine.high %v81_v4, %v85_v58  ;;  %v3318_v43 = vcombine.high %v82_v17, %v86_v3  ;;  %v3322_v6 = vcombine.low %v81_v4, %v85_v58  ;;  %v3324_v41 = vcombine.low %v82_v17, %v86_v3 }
  0xc5   :  { %1058 = vmatpush1.bf16.msra.mxu0 %v3284_v52  ;;  %1099 = vmatpush1.bf16.msra.mxu1 %v3286_v35  ;;  %v90_v35 = vld [vmem:[#allocation3 + $0x158] sm:$0xff] }
  0xc6   :  { %1059 = vmatprep.subr.bf16.mxu0 %v3290_v34  ;;  %1100 = vmatprep.subr.bf16.mxu1 %v3292_v28  ;;  %4918 = vst [vmem:[#allocation98_spill] sm:$0xff] %v3316_v42  ;;  %4919 = vst [vmem:[#allocation99_spill] sm:$0xff] %v3318_v43  ;;  %v89_v28 = vld [vmem:[#allocation3 + $0x150] sm:$0xff]  ;;  %v94_v52 = vld [vmem:[#allocation3 + $0x178] sm:$0xff] }
  0xc7   :  { %v93_v34 = vld [vmem:[#allocation3 + $0x170] sm:$0xff]  ;;  %4920 = vst [vmem:[#allocation100_spill] sm:$0xff] %v3322_v6  ;;  %4921 = vst [vmem:[#allocation101_spill] sm:$0xff] %v3324_v41  ;;  %v3330_v50 = vcombine.high %v90_v35, %v94_v52  ;;  %v3336_v17 = vcombine.low %v90_v35, %v94_v52 }
  0xc8   :  { %v3328_v36 = vcombine.high %v89_v28, %v93_v34  ;;  %v3334_v58 = vcombine.low %v89_v28, %v93_v34 }
  0xc9   :  { %1060 = vmatpush1.bf16.msra.mxu0 %v3298_v33  ;;  %1101 = vmatpush1.bf16.msra.mxu1 %v3300_v18  ;;  %4923 = vst [vmem:[#allocation103_spill] sm:$0xff] %v3330_v50  ;;  %v98_v18 = vld [vmem:[#allocation3 + $0x198] sm:$0xff]  ;;  %4925 = vst [vmem:[#allocation105_spill] sm:$0xff] %v3336_v17 }
  0xca   :  { %1061 = vmatprep.subr.bf16.mxu0 %v3304_v2  ;;  %1102 = vmatprep.subr.bf16.mxu1 %v3306_v57  ;;  %4922 = vst [vmem:[#allocation102_spill] sm:$0xff] %v3328_v36  ;;  %v97_v57 = vld [vmem:[#allocation3 + $0x190] sm:$0xff]  ;;  %v102_v33 = vld [vmem:[#allocation3 + $0x1b8] sm:$0xff]  ;;  %4924 = vst [vmem:[#allocation104_spill] sm:$0xff] %v3334_v58 }
  0xcb   :  { %v101_v2 = vld [vmem:[#allocation3 + $0x1b0] sm:$0xff]  ;;  %v3342_v3 = vcombine.high %v98_v18, %v102_v33  ;;  %v3348_v52 = vcombine.low %v98_v18, %v102_v33 }
  0xcc   :  { %v3340_v4 = vcombine.high %v97_v57, %v101_v2  ;;  %v3346_v34 = vcombine.low %v97_v57, %v101_v2 }
  0xcd   :  { %1062 = vmatpush1.bf16.msra.mxu0 %v3310_v60  ;;  %1103 = vmatpush1.bf16.msra.mxu1 %v3312_v1  ;;  %4927 = vst [vmem:[#allocation107_spill] sm:$0xff] %v3342_v3  ;;  %v106_v1 = vld [vmem:[#allocation3 + $0x1d8] sm:$0xff]  ;;  %4929 = vst [vmem:[#allocation109_spill] sm:$0xff] %v3348_v52 }
  0xce   :  { %1063 = vmatprep.subr.bf16.mxu0 %v3316_v42  ;;  %1104 = vmatprep.subr.bf16.mxu1 %v3318_v43  ;;  %4926 = vst [vmem:[#allocation106_spill] sm:$0xff] %v3340_v4  ;;  %v105_v43 = vld [vmem:[#allocation3 + $0x1d0] sm:$0xff]  ;;  %v110_v60 = vld [vmem:[#allocation3 + $0x1f8] sm:$0xff]  ;;  %4928 = vst [vmem:[#allocation108_spill] sm:$0xff] %v3346_v34 }
  0xcf   :  { %v109_v42 = vld [vmem:[#allocation3 + $0x1f0] sm:$0xff]  ;;  %v3354_v28 = vcombine.high %v106_v1, %v110_v60  ;;  %v3360_v33 = vcombine.low %v106_v1, %v110_v60 }
  0xd0   :  { %v3352_v35 = vcombine.high %v105_v43, %v109_v42  ;;  %v3358_v2 = vcombine.low %v105_v43, %v109_v42 }
  0xd1   :  { %1064 = vmatpush1.bf16.msra.mxu0 %v3322_v6  ;;  %1105 = vmatpush1.bf16.msra.mxu1 %v3324_v41  ;;  %4931 = vst [vmem:[#allocation111_spill] sm:$0xff] %v3354_v28  ;;  %v114_v41 = vld [vmem:[#allocation3 + $0x218] sm:$0xff]  ;;  %4933 = vst [vmem:[#allocation113_spill] sm:$0xff] %v3360_v33 }
  0xd2   :  { %1065 = vmatprep.subr.bf16.mxu0 %v3328_v36  ;;  %1106 = vmatprep.subr.bf16.mxu1 %v3330_v50  ;;  %4930 = vst [vmem:[#allocation110_spill] sm:$0xff] %v3352_v35  ;;  %v113_v50 = vld [vmem:[#allocation3 + $0x210] sm:$0xff]  ;;  %v118_v6 = vld [vmem:[#allocation3 + $0x238] sm:$0xff]  ;;  %4932 = vst [vmem:[#allocation112_spill] sm:$0xff] %v3358_v2 }
  0xd3   :  { %v117_v36 = vld [vmem:[#allocation3 + $0x230] sm:$0xff]  ;;  %v3366_v57 = vcombine.high %v114_v41, %v118_v6  ;;  %v3372_v60 = vcombine.low %v114_v41, %v118_v6 }
  0xd4   :  { %v3364_v18 = vcombine.high %v113_v50, %v117_v36  ;;  %v3370_v42 = vcombine.low %v113_v50, %v117_v36 }
  0xd5   :  { %1066 = vmatpush1.bf16.msra.mxu0 %v3334_v58  ;;  %1107 = vmatpush1.bf16.msra.mxu1 %v3336_v17  ;;  %4935 = vst [vmem:[#allocation115_spill] sm:$0xff] %v3366_v57  ;;  %v122_v17 = vld [vmem:[#allocation3 + $0x258] sm:$0xff]  ;;  %4937 = vst [vmem:[#allocation117_spill] sm:$0xff] %v3372_v60 }
  0xd6   :  { %1067 = vmatprep.subr.bf16.mxu0 %v3340_v4  ;;  %1108 = vmatprep.subr.bf16.mxu1 %v3342_v3  ;;  %4934 = vst [vmem:[#allocation114_spill] sm:$0xff] %v3364_v18  ;;  %v121_v3 = vld [vmem:[#allocation3 + $0x250] sm:$0xff]  ;;  %v126_v58 = vld [vmem:[#allocation3 + $0x278] sm:$0xff]  ;;  %4936 = vst [vmem:[#allocation116_spill] sm:$0xff] %v3370_v42 }
  0xd7   :  { %v125_v4 = vld [vmem:[#allocation3 + $0x270] sm:$0xff]  ;;  %v3378_v43 = vcombine.high %v122_v17, %v126_v58  ;;  %v3384_v6 = vcombine.low %v122_v17, %v126_v58 }
  0xd8   :  { %v3376_v1 = vcombine.high %v121_v3, %v125_v4  ;;  %v3382_v36 = vcombine.low %v121_v3, %v125_v4 }
  0xd9   :  { %1068 = vmatpush1.bf16.msra.mxu0 %v3346_v34  ;;  %1109 = vmatpush1.bf16.msra.mxu1 %v3348_v52  ;;  %4939 = vst [vmem:[#allocation119_spill] sm:$0xff] %v3378_v43  ;;  %v130_v52 = vld [vmem:[#allocation3 + $0x298] sm:$0xff]  ;;  %4941 = vst [vmem:[#allocation121_spill] sm:$0xff] %v3384_v6 }
  0xda   :  { %1069 = vmatprep.subr.bf16.mxu0 %v3352_v35  ;;  %1110 = vmatprep.subr.bf16.mxu1 %v3354_v28  ;;  %4938 = vst [vmem:[#allocation118_spill] sm:$0xff] %v3376_v1  ;;  %v129_v28 = vld [vmem:[#allocation3 + $0x290] sm:$0xff]  ;;  %v134_v34 = vld [vmem:[#allocation3 + $0x2b8] sm:$0xff]  ;;  %4940 = vst [vmem:[#allocation120_spill] sm:$0xff] %v3382_v36 }
  0xdb   :  { %v133_v35 = vld [vmem:[#allocation3 + $0x2b0] sm:$0xff]  ;;  %v3390_v50 = vcombine.high %v130_v52, %v134_v34  ;;  %v3396_v58 = vcombine.low %v130_v52, %v134_v34 }
  0xdc   :  { %v3388_v41 = vcombine.high %v129_v28, %v133_v35  ;;  %v3394_v4 = vcombine.low %v129_v28, %v133_v35 }
  0xdd   :  { %1070 = vmatpush1.bf16.msra.mxu0 %v3358_v2  ;;  %1111 = vmatpush1.bf16.msra.mxu1 %v3360_v33  ;;  %4943 = vst [vmem:[#allocation123_spill] sm:$0xff] %v3390_v50  ;;  %v138_v33 = vld [vmem:[#allocation3 + $0x2d8] sm:$0xff]  ;;  %4945 = vst [vmem:[#allocation125_spill] sm:$0xff] %v3396_v58 }
  0xde   :  { %1071 = vmatprep.subr.bf16.mxu0 %v3364_v18  ;;  %1112 = vmatprep.subr.bf16.mxu1 %v3366_v57  ;;  %4942 = vst [vmem:[#allocation122_spill] sm:$0xff] %v3388_v41  ;;  %v137_v57 = vld [vmem:[#allocation3 + $0x2d0] sm:$0xff]  ;;  %v142_v2 = vld [vmem:[#allocation3 + $0x2f8] sm:$0xff]  ;;  %4944 = vst [vmem:[#allocation124_spill] sm:$0xff] %v3394_v4 }
  0xdf   :  { %v141_v18 = vld [vmem:[#allocation3 + $0x2f0] sm:$0xff]  ;;  %v3402_v3 = vcombine.high %v138_v33, %v142_v2  ;;  %v3408_v34 = vcombine.low %v138_v33, %v142_v2 }
  0xe0   :  { %v3400_v17 = vcombine.high %v137_v57, %v141_v18  ;;  %v3406_v35 = vcombine.low %v137_v57, %v141_v18 }
  0xe1   :  { %1072 = vmatpush1.bf16.msra.mxu0 %v3370_v42  ;;  %1113 = vmatpush1.bf16.msra.mxu1 %v3372_v60  ;;  %4947 = vst [vmem:[#allocation127_spill] sm:$0xff] %v3402_v3  ;;  %v146_v60 = vld [vmem:[#allocation3 + $0x318] sm:$0xff]  ;;  %4949 = vst [vmem:[#allocation129_spill] sm:$0xff] %v3408_v34 }
  0xe2   :  { %1073 = vmatprep.subr.bf16.mxu0 %v3376_v1  ;;  %1114 = vmatprep.subr.bf16.mxu1 %v3378_v43  ;;  %4946 = vst [vmem:[#allocation126_spill] sm:$0xff] %v3400_v17  ;;  %v145_v43 = vld [vmem:[#allocation3 + $0x310] sm:$0xff]  ;;  %v150_v42 = vld [vmem:[#allocation3 + $0x338] sm:$0xff]  ;;  %4948 = vst [vmem:[#allocation128_spill] sm:$0xff] %v3406_v35 }
  0xe3   :  { %v149_v1 = vld [vmem:[#allocation3 + $0x330] sm:$0xff]  ;;  %v3414_v28 = vcombine.high %v146_v60, %v150_v42  ;;  %v3420_v2 = vcombine.low %v146_v60, %v150_v42 }
  0xe4   :  { %v3412_v52 = vcombine.high %v145_v43, %v149_v1  ;;  %v3418_v18 = vcombine.low %v145_v43, %v149_v1 }
  0xe5   :  { %1074 = vmatpush1.bf16.msra.mxu0 %v3382_v36  ;;  %1115 = vmatpush1.bf16.msra.mxu1 %v3384_v6  ;;  %4951 = vst [vmem:[#allocation131_spill] sm:$0xff] %v3414_v28  ;;  %v154_v6 = vld [vmem:[#allocation3 + $0x358] sm:$0xff]  ;;  %4953 = vst [vmem:[#allocation133_spill] sm:$0xff] %v3420_v2 }
  0xe6   :  { %1075 = vmatprep.subr.bf16.mxu0 %v3388_v41  ;;  %1116 = vmatprep.subr.bf16.mxu1 %v3390_v50  ;;  %4950 = vst [vmem:[#allocation130_spill] sm:$0xff] %v3412_v52  ;;  %v153_v50 = vld [vmem:[#allocation3 + $0x350] sm:$0xff]  ;;  %v158_v36 = vld [vmem:[#allocation3 + $0x378] sm:$0xff]  ;;  %4952 = vst [vmem:[#allocation132_spill] sm:$0xff] %v3418_v18 }
  0xe7   :  { %v157_v41 = vld [vmem:[#allocation3 + $0x370] sm:$0xff]  ;;  %v3426_v57 = vcombine.high %v154_v6, %v158_v36  ;;  %v3432_v42 = vcombine.low %v154_v6, %v158_v36 }
  0xe8   :  { %v3424_v33 = vcombine.high %v153_v50, %v157_v41  ;;  %v3430_v1 = vcombine.low %v153_v50, %v157_v41 }
  0xe9   :  { %1076 = vmatpush1.bf16.msra.mxu0 %v3394_v4  ;;  %1117 = vmatpush1.bf16.msra.mxu1 %v3396_v58  ;;  %4955 = vst [vmem:[#allocation135_spill] sm:$0xff] %v3426_v57  ;;  %v162_v58 = vld [vmem:[#allocation3 + $0x398] sm:$0xff]  ;;  %4957 = vst [vmem:[#allocation137_spill] sm:$0xff] %v3432_v42 }
  0xea   :  { %1077 = vmatprep.subr.bf16.mxu0 %v3400_v17  ;;  %1118 = vmatprep.subr.bf16.mxu1 %v3402_v3  ;;  %4954 = vst [vmem:[#allocation134_spill] sm:$0xff] %v3424_v33  ;;  %v161_v3 = vld [vmem:[#allocation3 + $0x390] sm:$0xff]  ;;  %v166_v4 = vld [vmem:[#allocation3 + $0x3b8] sm:$0xff]  ;;  %4956 = vst [vmem:[#allocation136_spill] sm:$0xff] %v3430_v1 }
  0xeb   :  { %v165_v17 = vld [vmem:[#allocation3 + $0x3b0] sm:$0xff]  ;;  %v3438_v43 = vcombine.high %v162_v58, %v166_v4  ;;  %v3444_v36 = vcombine.low %v162_v58, %v166_v4  ;;  %v4968_v58 = vld [vmem:[#allocation45_spill] sm:$0xff] }
  0xec   :  { %v3436_v60 = vcombine.high %v161_v3, %v165_v17  ;;  %v3442_v41 = vcombine.low %v161_v3, %v165_v17  ;;  %v4967_v4 = vld [vmem:[#allocation44_spill] sm:$0xff]  ;;  %v4969_v17 = vld [vmem:[#allocation46_spill] sm:$0xff]  ;;  %v4970_v3 = vld [vmem:[#allocation47_spill] sm:$0xff] }
  0xed   :  { %1078 = vmatpush1.bf16.msra.mxu0 %v3406_v35  ;;  %1119 = vmatpush1.bf16.msra.mxu1 %v3408_v34  ;;  %4959 = vst [vmem:[#allocation139_spill] sm:$0xff] %v3438_v43  ;;  %v170_v34 = vld [vmem:[#allocation3 + $0x3d8] sm:$0xff]  ;;  %4961 = vst [vmem:[#allocation141_spill] sm:$0xff] %v3444_v36 }
  0xee   :  { %1079 = vmatprep.subr.bf16.mxu0 %v3412_v52  ;;  %1120 = vmatprep.subr.bf16.mxu1 %v3414_v28  ;;  %4958 = vst [vmem:[#allocation138_spill] sm:$0xff] %v3436_v60  ;;  %v169_v28 = vld [vmem:[#allocation3 + $0x3d0] sm:$0xff]  ;;  %v174_v35 = vld [vmem:[#allocation3 + $0x3f8] sm:$0xff]  ;;  %4960 = vst [vmem:[#allocation140_spill] sm:$0xff] %v3442_v41 }
  0xef   :  { %v173_v52 = vld [vmem:[#allocation3 + $0x3f0] sm:$0xff]  ;;  %v3450_v50 = vcombine.high %v170_v34, %v174_v35 }
  0xf0   :  { %v3448_v6 = vcombine.high %v169_v28, %v173_v52 }
  0xf1   :  { %1080 = vmatpush1.bf16.msra.mxu0 %v3418_v18  ;;  %1121 = vmatpush1.bf16.msra.mxu1 %v3420_v2  ;;  %4963 = vst [vmem:[#allocation143_spill] sm:$0xff] %v3450_v50 }
  0xf2   :  { %1081 = vmatprep.subr.bf16.mxu0 %v3424_v33  ;;  %1122 = vmatprep.subr.bf16.mxu1 %v3426_v57  ;;  %4962 = vst [vmem:[#allocation142_spill] sm:$0xff] %v3448_v6  ;;  %v3454_v57 = vcombine.low %v169_v28, %v173_v52  ;;  %v4973_v52 = vld [vmem:[#allocation50_spill] sm:$0xff]  ;;  %v4974_v28 = vld [vmem:[#allocation52_spill] sm:$0xff] }
  0xf4   :  { %4964 = vst [vmem:[#allocation144_spill] sm:$0xff] %v3454_v57 }
  0xf5   :  { %1082 = vmatpush1.bf16.msra.mxu0 %v3430_v1  ;;  %1123 = vmatpush1.bf16.msra.mxu1 %v3432_v42  ;;  %v3456_v1 = vcombine.low %v170_v34, %v174_v35  ;;  %v4971_v35 = vld [vmem:[#allocation48_spill] sm:$0xff]  ;;  %v4972_v34 = vld [vmem:[#allocation49_spill] sm:$0xff] }
  0xf6   :  { %1083 = vmatprep.subr.bf16.mxu0 %v3436_v60  ;;  %1124 = vmatprep.subr.bf16.mxu1 %v3438_v43 }
  0xf7   :  { %4965 = vst [vmem:[#allocation145_spill] sm:$0xff] %v3456_v1 }
  0xf9   :  { %1084 = vmatpush1.bf16.msra.mxu0 %v3442_v41  ;;  %1125 = vmatpush1.bf16.msra.mxu1 %v3444_v36 }
  0xfa   :  { %1085 = vmatprep.subr.bf16.mxu0 %v3448_v6  ;;  %1126 = vmatprep.subr.bf16.mxu1 %v3450_v50 }
  0xfd   :  { %1086 = vmatpush1.bf16.msra.mxu0 %v3454_v57  ;;  %1127 = vmatpush1.bf16.msra.mxu1 %v3456_v1 }
  0xfe   :  { %1204 = vmatprep.subr.bf16.mxu0 %v3006_v5  ;;  %1245 = vmatprep.subr.bf16.mxu1 %v3010_v10 }
 0x100   :  { %1088 = vmatmul.mubr.bf16.vlgmr.msra.gmra.mrb[4].mxu0 %v3274_v21  ;;  %1129 = vmatmul.mubr.bf16.vlgmr.msra.gmra.mrb[4].mxu1 %v3274_v21  ;;  %v4966_v21 = vld [vmem:[#allocation43_spill] sm:$0xff] }
 0x101   :  { %1205 = vmatpush1.bf16.msra.mxu0 %v3008_v8  ;;  %1246 = vmatpush1.bf16.msra.mxu1 %v3012_v11 }
 0x102   :  { %1206 = vmatprep.subr.bf16.mxu0 %v3015_v15  ;;  %1247 = vmatprep.subr.bf16.mxu1 %v3017_v16 }
 0x105   :  { %1207 = vmatpush1.bf16.msra.mxu0 %v3021_v20  ;;  %1248 = vmatpush1.bf16.msra.mxu1 %v3025_v22 }
 0x106   :  { %1208 = vmatprep.subr.bf16.mxu0 %v3027_v23  ;;  %1249 = vmatprep.subr.bf16.mxu1 %v3030_v24 }
 0x109   :  { %1209 = vmatpush1.bf16.msra.mxu0 %v3033_v29  ;;  %1250 = vmatpush1.bf16.msra.mxu1 %v3037_v30 }
 0x10a   :  { %1210 = vmatprep.subr.bf16.mxu0 %v3039_v31  ;;  %1251 = vmatprep.subr.bf16.mxu1 %v3042_v32 }
 0x10d   :  { %1211 = vmatpush1.bf16.msra.mxu0 %v3045_v37  ;;  %1252 = vmatpush1.bf16.msra.mxu1 %v3049_v38 }
 0x10e   :  { %1212 = vmatprep.subr.bf16.mxu0 %v3051_v39  ;;  %1253 = vmatprep.subr.bf16.mxu1 %v3054_v40 }
 0x111   :  { %1213 = vmatpush1.bf16.msra.mxu0 %v3057_v45  ;;  %1254 = vmatpush1.bf16.msra.mxu1 %v3061_v46 }
 0x112   :  { %1214 = vmatprep.subr.bf16.mxu0 %v3063_v47  ;;  %1255 = vmatprep.subr.bf16.mxu1 %v3066_v48 }
 0x115   :  { %1215 = vmatpush1.bf16.msra.mxu0 %v3069_v53  ;;  %1256 = vmatpush1.bf16.msra.mxu1 %v3073_v54 }
 0x116   :  { %1216 = vmatprep.subr.bf16.mxu0 %v3075_v55  ;;  %1257 = vmatprep.subr.bf16.mxu1 %v3078_v56 }
 0x119   :  { %1217 = vmatpush1.bf16.msra.mxu0 %v3081_v61  ;;  %1258 = vmatpush1.bf16.msra.mxu1 %v3085_v62  ;;  %v4996_v62 = vld [vmem:[#allocation85_spill] sm:$0xff] }
 0x11a   :  { %1218 = vmatprep.subr.bf16.mxu0 %v3087_v63  ;;  %1259 = vmatprep.subr.bf16.mxu1 %v3090_v0 }
 0x11d   :  { %1219 = vmatpush1.bf16.msra.mxu0 %v3093_v9  ;;  %1260 = vmatpush1.bf16.msra.mxu1 %v3097_v12 }
 0x11e   :  { %1220 = vmatprep.subr.bf16.mxu0 %v3099_v13  ;;  %1261 = vmatprep.subr.bf16.mxu1 %v3102_v14 }
 0x121   :  { %1221 = vmatpush1.bf16.msra.mxu0 %v3105_v25  ;;  %1262 = vmatpush1.bf16.msra.mxu1 %v3109_v26  ;;  %v4975_v26 = vld [vmem:[#allocation53_spill] sm:$0xff] }
 0x122   :  { %1222 = vmatprep.subr.bf16.mxu0 %v3111_v27  ;;  %1263 = vmatprep.subr.bf16.mxu1 %v4966_v21  ;;  %v4976_v27 = vld [vmem:[#allocation54_spill] sm:$0xff]  ;;  %v4977_v21 = vld [vmem:[#allocation55_spill] sm:$0xff] }
 0x125   :  { %1223 = vmatpush1.bf16.msra.mxu0 %v4967_v4  ;;  %1264 = vmatpush1.bf16.msra.mxu1 %v4968_v58  ;;  %v4978_v4 = vld [vmem:[#allocation56_spill] sm:$0xff] }
 0x126   :  { %1224 = vmatprep.subr.bf16.mxu0 %v4969_v17  ;;  %1265 = vmatprep.subr.bf16.mxu1 %v4970_v3 }
 0x129   :  { %1225 = vmatpush1.bf16.msra.mxu0 %v4971_v35  ;;  %1266 = vmatpush1.bf16.msra.mxu1 %v4972_v34  ;;  %v4979_v35 = vld [vmem:[#allocation60_spill] sm:$0xff] }
 0x12a   :  { %1226 = vmatprep.subr.bf16.mxu0 %v4973_v52  ;;  %1267 = vmatprep.subr.bf16.mxu1 %v4974_v28  ;;  %v4980_v52 = vld [vmem:[#allocation62_spill] sm:$0xff]  ;;  %v4981_v28 = vld [vmem:[#allocation63_spill] sm:$0xff] }
 0x12d   :  { %1227 = vmatpush1.bf16.msra.mxu0 %v4975_v26  ;;  %1268 = vmatpush1.bf16.msra.mxu1 %v4976_v27  ;;  %v4982_v26 = vld [vmem:[#allocation64_spill] sm:$0xff]  ;;  %v4983_v27 = vld [vmem:[#allocation65_spill] sm:$0xff] }
 0x12e   :  { %1228 = vmatprep.subr.bf16.mxu0 %v4977_v21  ;;  %1269 = vmatprep.subr.bf16.mxu1 %v4978_v4  ;;  %v4984_v21 = vld [vmem:[#allocation66_spill] sm:$0xff]  ;;  %v4985_v4 = vld [vmem:[#allocation67_spill] sm:$0xff] }
 0x131   :  { %1229 = vmatpush1.bf16.msra.mxu0 %v3169_v44  ;;  %1270 = vmatpush1.bf16.msra.mxu1 %v3173_v49  ;;  %v4986_v44 = vld [vmem:[#allocation68_spill] sm:$0xff]  ;;  %v4987_v49 = vld [vmem:[#allocation69_spill] sm:$0xff] }
 0x132   :  { %1230 = vmatprep.subr.bf16.mxu0 %v3175_v59  ;;  %1271 = vmatprep.subr.bf16.mxu1 %v4979_v35  ;;  %v4988_v59 = vld [vmem:[#allocation70_spill] sm:$0xff]  ;;  %v4989_v35 = vld [vmem:[#allocation71_spill] sm:$0xff] }
 0x135   :  { %1231 = vmatpush1.bf16.msra.mxu0 %v3181_v19  ;;  %1272 = vmatpush1.bf16.msra.mxu1 %v4980_v52  ;;  %v4990_v19 = vld [vmem:[#allocation72_spill] sm:$0xff]  ;;  %v232_v52 = vpop.permute.xlu0 %231 }
 0x136   :  { %1232 = vmatprep.subr.bf16.mxu0 %v4981_v28  ;;  %1273 = vmatprep.subr.bf16.mxu1 %v4982_v26  ;;  %v4991_v28 = vld [vmem:[#allocation76_spill] sm:$0xff]  ;;  %v4992_v26 = vld [vmem:[#allocation77_spill] sm:$0xff] }
 0x137   :  { %v234_v34 = vmul.f32 %v232_v52, %v4991_v28  ;;  %v235_v3 = vmul.f32 %v232_v52, %v4992_v26 }
 0x139   :  { %1233 = vmatpush1.bf16.msra.mxu0 %v4983_v27  ;;  %1274 = vmatpush1.bf16.msra.mxu1 %v4984_v21  ;;  %v4993_v27 = vld [vmem:[#allocation80_spill] sm:$0xff]  ;;  %v4994_v21 = vld [vmem:[#allocation79_spill] sm:$0xff] }
 0x13a   :  { %1234 = vmatprep.subr.bf16.mxu0 %v4985_v4  ;;  %1275 = vmatprep.subr.bf16.mxu1 %v4986_v44  ;;  %v238_v17 = vadd.f32 %v234_v34, %v4993_v27  ;;  %v236_v58 = vmul.f32 %v232_v52, %v4994_v21  ;;  %v4995_v4 = vld [vmem:[#allocation81_spill] sm:$0xff] }
 0x13b   :  { %v239_v25 = vadd.f32 %v235_v3, %v4995_v4 }
 0x13d   :  { %1235 = vmatpush1.bf16.msra.mxu0 %v4987_v49  ;;  %1276 = vmatpush1.bf16.msra.mxu1 %v4988_v59  ;;  %v240_v59 = vadd.f32 %v236_v58, %v3260_v51 }
 0x13e   :  { %1286 = vmatprep.subr.bf16.mxu0 %v4989_v35  ;;  %1327 = vmatprep.subr.bf16.mxu1 %v4990_v19 }
 0x193   :  { %v1007_v44 = vpop.f32.mrb[0].mxu0  ;;  %v1048_v14 = vpop.f32.mrb[0].mxu1 }
 0x194   :  { %v1137_v49 = vadd.f32 %v1007_v44, %v238_v17  ;;  %v1009_v13 = vpop.f32.mrb[1].mxu0  ;;  %v1050_v35 = vpop.f32.mrb[1].mxu1  ;;  %v1139_v34 = vadd.f32 %v1048_v14, %v240_v59 }
 0x195   :  { %v1138_v12 = vadd.f32 %v1009_v13, %v239_v25  ;;  %v1011_v19 = vpop.f32.mrb[2].mxu0  ;;  %v1052_v9 = vpop.f32.mrb[2].mxu1 }
 0x196   :  { %v1141_v0 = vmul.f32 0.5, %v1137_v49  ;;  %v1012_v28 = vpop.f32.mrb[3].mxu0  ;;  %v1053_v63 = vpop.f32.mrb[3].mxu1  ;;  %v2936_v9 = vmov 2  }
 0x197   :  { %v1145_v26 = vmul.f32 0.5, %v1138_v12  ;;  %2738 = vset.pattern.permute.xlu1 %v2936_v9  ;;  %v3542_v63 = vld [vmem:[%s4506_s0] sm:$0x3] }
 0x198   :  { %2755 = vtanh.f32 %v1141_v0  ;;  %4997 = vst [vmem:[#allocation85_spill] sm:$0xff] %v3542_v63  ;;  %243 = vperm.xlu1 %2738, %v3542_v63   ;;  %v46_v0 = vld [vmem:[%s4510_s4] sm:$0xf] }
 0x199   :  { %2757 = vtanh.f32 %v1145_v26  ;;  %v4998_v12 = vld [vmem:[#allocation73_spill] sm:$0xff]  ;;  %v5000_v26 = vld [vmem:[#allocation74_spill] sm:$0xff] }
 0x19a   :  { %2759 = vtanh.f32 %v1139_v34  ;;  %v3549_v14 = vrot.slane %v46_v0, %v4998_v12  ;;  %v5005_v12 = vld [vmem:[#allocation84_spill] sm:$0xff] }
 0x19c   :  { %4999 = vst [vmem:[#allocation73_spill] sm:$0xff] %v3549_v14 }
 0x1a2   :  { %v2756_v21 = vpop.eup %2755 }
 0x1a3   :  { %v2758_v3 = vpop.eup %2757  ;;  %v1143_v4 = vmul.f32 0.5, %v2756_v21  ;;  %v5003_v21 = vld [vmem:[#allocation75_spill] sm:$0xff] }
 0x1a4   :  { %v1147_v27 = vmul.f32 0.5, %v2758_v3  ;;  %v2760_v17 = vpop.eup %2759 }
 0x1a5   :  { %v1144_v44 = vadd.f32 0.5, %v1143_v4  ;;  %v3557_v4 = vrot.slane %v46_v0, %v5003_v21 }
 0x1a6   :  { %v1148_v58 = vadd.f32 0.5, %v1147_v27  ;;  %v5002_v27 = vld [vmem:[#allocation82_spill] sm:$0xff] }
 0x1a7   :  { %v1155_v51 = vmul.f32 %v2760_v17, %v1144_v44  ;;  %v237_v49 = vmul.f32 %v232_v52, %v5002_v27  ;;  %5004 = vst [vmem:[#allocation75_spill] sm:$0xff] %v3557_v4  ;;  %v5006_v27 = vld [vmem:[#allocation78_spill] sm:$0xff] }
 0x1a8   :  { %v1154_v13 = vmul.f32 %v1148_v58, %v4996_v62  ;;  %v3552_v62 = vrot.slane %v46_v0, %v5000_v26 }
 0x1a9   :  { %v241_v26 = vadd.f32 %v237_v49, %v5005_v12 }
 0x1aa   :  { %v3537_v25 = vadd.f32 %v1155_v51, %v1154_v13  ;;  %5001 = vst [vmem:[#allocation74_spill] sm:$0xff] %v3552_v62 }
 0x1ab   :  { %v1140_v21 = vadd.f32 %v1050_v35, %v241_v26 }
 0x1d3   :  { %v1089_v59 = vpop.f32.mrb[4].mxu0  ;;  %v1130_v19 = vpop.f32.mrb[4].mxu1 }
 0x1d4   :  { %v1180_v51 = vadd.f32 %v3549_v14, %v1089_v59  ;;  %v1091_v28 = vpop.f32.mrb[5].mxu0  ;;  %v1132_v34 = vpop.f32.mrb[5].mxu1  ;;  %v1182_v52 = vadd.f32 %v3557_v4, %v1130_v19  ;;  %v3563_v59 = vrot.slane %v46_v0, %v5006_v27 }
 0x1d5   :  { %v1181_v3 = vadd.f32 %v3552_v62, %v1091_v28  ;;  %v1093_v44 = vpop.f32.mrb[6].mxu0  ;;  %v1134_v17 = vpop.f32.mrb[6].mxu1  ;;  %v1150_v28 = vmul.f32 0.5, %v1140_v21 }
 0x1d6   :  { %v1184_v58 = vmul.f32 0.5, %v1180_v51  ;;  %v1094_v13 = vpop.f32.mrb[7].mxu0  ;;  %v1135_v9 = vpop.f32.mrb[7].mxu1  ;;  %5007 = vst [vmem:[#allocation78_spill] sm:$0xff] %v3563_v59  ;;  %v1183_v14 = vadd.f32 %v3563_v59, %v1132_v34 }
 0x1d7   :  { %v1188_v63 = vmul.f32 0.5, %v1181_v3 }
 0x1d8   :  { %2761 = vtanh.f32 %v1184_v58  ;;  %v1193_v44 = vmul.f32 0.5, %v1183_v14 }
 0x1d9   :  { %2763 = vtanh.f32 %v1188_v63 }
 0x1da   :  { %2765 = vtanh.f32 %v1182_v52 }
 0x1db   :  { %2767 = vtanh.f32 %v1150_v28 }
 0x1dc   :  { %2769 = vtanh.f32 %v1193_v44 }
 0x1dd   :  { %2771 = vtanh.f32 %v3537_v25 }
 0x1e2   :  { %v2762_v17 = vpop.eup %2761 }
 0x1e3   :  { %v2764_v51 = vpop.eup %2763  ;;  %v1186_v13 = vmul.f32 0.5, %v2762_v17 }
 0x1e4   :  { %v1190_v9 = vmul.f32 0.5, %v2764_v51  ;;  %v2766_v3 = vpop.eup %2765 }
 0x1e5   :  { %v1187_v49 = vadd.f32 0.5, %v1186_v13  ;;  %v2768_v35 = vpop.eup %2767  ;;  %v5009_v13 = vld [vmem:[#allocation86_spill] sm:$0xff] }
 0x1e6   :  { %v1191_v58 = vadd.f32 0.5, %v1190_v9  ;;  %v2770_v0 = vpop.eup %2769  ;;  %v1152_v14 = vmul.f32 0.5, %v2768_v35  ;;  %v5010_v9 = vld [vmem:[#allocation87_spill] sm:$0xff]  ;;  %v5015_v35 = vld [vmem:[#allocation92_spill] sm:$0xff] }
 0x1e7   :  { %v1198_v19 = vmul.f32 %v2766_v3, %v1187_v49  ;;  %v1195_v27 = vmul.f32 0.5, %v2770_v0  ;;  %v2772_v34 = vpop.eup %2771  ;;  %v5011_v49 = vld [vmem:[#allocation88_spill] sm:$0xff]  ;;  %v5012_v3 = vld [vmem:[#allocation89_spill] sm:$0xff] }
 0x1e8   :  { %v1197_v4 = vmul.f32 0.0, %v1191_v58  ;;  %v1153_v26 = vadd.f32 0.5, %v1152_v14  ;;  %v5013_v58 = vld [vmem:[#allocation90_spill] sm:$0xff]  ;;  %v5016_v0 = vld [vmem:[#allocation93_spill] sm:$0xff] }
 0x1e9   :  { %v1196_v52 = vadd.f32 0.5, %v1195_v27  ;;  %v5017_v14 = vld [vmem:[#allocation94_spill] sm:$0xff]  ;;  %v5018_v27 = vld [vmem:[#allocation95_spill] sm:$0xff] }
 0x1ea   :  { %v3567_v63 = vadd.f32 %v1198_v19, %v1197_v4  ;;  %v1158_v28 = vmul.f32 %v2772_v34, %v1153_v26  ;;  %v5008_v4 = vld [vmem:[#allocation51_spill] sm:$0xff]  ;;  %v5019_v34 = vld [vmem:[#allocation96_spill] sm:$0xff]  ;;  %v5020_v26 = vld [vmem:[#allocation97_spill] sm:$0xff] }
 0x1eb   :  { %v5014_v19 = vld [vmem:[#allocation91_spill] sm:$0xff] }
 0x1ec   :  { %2773 = vtanh.f32 %v3567_v63  ;;  %v3570_v51 = vpack.c.bf16 %v1158_v28, %v1158_v28  ;;  %v5023_v28 = vld [vmem:[#allocation100_spill] sm:$0xff] }
 0x1f6   :  { %v2774_v21 = vpop.eup %2773 }
 0x1f7   :  { %v1201_v44 = vmul.f32 %v2774_v21, %v1196_v52  ;;  %v5021_v52 = vld [vmem:[#allocation98_spill] sm:$0xff]  ;;  %v5022_v21 = vld [vmem:[#allocation99_spill] sm:$0xff] }
 0x1f9   :  { %v1203_v17 = vpack.c.bf16 %v1201_v44, %v1201_v44  ;;  %v5024_v44 = vld [vmem:[#allocation101_spill] sm:$0xff] }
 0x1fb   :  { %1236 = vmatprep.mubr.bf16.mxu0 %v1203_v17  ;;  %1277 = vmatprep.mubr.bf16.mxu1 %v1203_v17 }
 0x1fc   :  { %1237 = vmatmul.mubr.bf16.vlgmr.msra.gmra.mrb[8].mxu0 %v3570_v51  ;;  %1278 = vmatmul.mubr.bf16.vlgmr.msra.gmra.mrb[8].mxu1 %v3570_v51 }
 0x1fd   :  { %1287 = vmatpush1.bf16.msra.mxu0 %v3147_v7  ;;  %1328 = vmatpush1.bf16.msra.mxu1 %v5008_v4 }
 0x1fe   :  { %1318 = vmatprep.mubr.bf16.mxu0 %v1203_v17  ;;  %1359 = vmatprep.mubr.bf16.mxu1 %v1203_v17  ;;  %v5025_v17 = vld [vmem:[#allocation102_spill] sm:$0xff] }
 0x1ff   :  { %1288 = vmatprep.subr.bf16.mxu0 %v5009_v13  ;;  %1329 = vmatprep.subr.bf16.mxu1 %v5010_v9 }
 0x201   :  { %1289 = vmatpush1.bf16.msra.mxu0 %v5011_v49  ;;  %1330 = vmatpush1.bf16.msra.mxu1 %v5012_v3 }
 0x202   :  { %1290 = vmatprep.subr.bf16.mxu0 %v5013_v58  ;;  %1331 = vmatprep.subr.bf16.mxu1 %v5014_v19 }
 0x205   :  { %1291 = vmatpush1.bf16.msra.mxu0 %v5015_v35  ;;  %1332 = vmatpush1.bf16.msra.mxu1 %v5016_v0  ;;  %v5026_v35 = vld [vmem:[#allocation103_spill] sm:$0xff]  ;;  %v5027_v0 = vld [vmem:[#allocation104_spill] sm:$0xff] }
 0x206   :  { %1292 = vmatprep.subr.bf16.mxu0 %v5017_v14  ;;  %1333 = vmatprep.subr.bf16.mxu1 %v5018_v27  ;;  %v5028_v14 = vld [vmem:[#allocation105_spill] sm:$0xff]  ;;  %v5029_v27 = vld [vmem:[#allocation106_spill] sm:$0xff] }
 0x209   :  { %1293 = vmatpush1.bf16.msra.mxu0 %v5019_v34  ;;  %1334 = vmatpush1.bf16.msra.mxu1 %v5020_v26  ;;  %v5030_v34 = vld [vmem:[#allocation107_spill] sm:$0xff]  ;;  %v5031_v26 = vld [vmem:[#allocation108_spill] sm:$0xff] }
 0x20a   :  { %1294 = vmatprep.subr.bf16.mxu0 %v5021_v52  ;;  %1335 = vmatprep.subr.bf16.mxu1 %v5022_v21  ;;  %v5032_v52 = vld [vmem:[#allocation109_spill] sm:$0xff]  ;;  %v5033_v21 = vld [vmem:[#allocation110_spill] sm:$0xff] }
 0x20d   :  { %1295 = vmatpush1.bf16.msra.mxu0 %v5023_v28  ;;  %1336 = vmatpush1.bf16.msra.mxu1 %v5024_v44  ;;  %v5034_v28 = vld [vmem:[#allocation111_spill] sm:$0xff]  ;;  %v5035_v44 = vld [vmem:[#allocation112_spill] sm:$0xff] }
 0x20e   :  { %1296 = vmatprep.subr.bf16.mxu0 %v5025_v17  ;;  %1337 = vmatprep.subr.bf16.mxu1 %v5026_v35  ;;  %v5036_v17 = vld [vmem:[#allocation113_spill] sm:$0xff]  ;;  %v5037_v35 = vld [vmem:[#allocation114_spill] sm:$0xff] }
 0x211   :  { %1297 = vmatpush1.bf16.msra.mxu0 %v5027_v0  ;;  %1338 = vmatpush1.bf16.msra.mxu1 %v5028_v14  ;;  %v5038_v0 = vld [vmem:[#allocation115_spill] sm:$0xff]  ;;  %v5039_v14 = vld [vmem:[#allocation116_spill] sm:$0xff] }
 0x212   :  { %1298 = vmatprep.subr.bf16.mxu0 %v5029_v27  ;;  %1339 = vmatprep.subr.bf16.mxu1 %v5030_v34  ;;  %v5040_v27 = vld [vmem:[#allocation117_spill] sm:$0xff]  ;;  %v5041_v34 = vld [vmem:[#allocation118_spill] sm:$0xff] }
 0x215   :  { %1299 = vmatpush1.bf16.msra.mxu0 %v5031_v26  ;;  %1340 = vmatpush1.bf16.msra.mxu1 %v5032_v52  ;;  %v5042_v26 = vld [vmem:[#allocation119_spill] sm:$0xff]  ;;  %v5043_v52 = vld [vmem:[#allocation120_spill] sm:$0xff] }
 0x216   :  { %1300 = vmatprep.subr.bf16.mxu0 %v5033_v21  ;;  %1341 = vmatprep.subr.bf16.mxu1 %v5034_v28  ;;  %v5044_v21 = vld [vmem:[#allocation121_spill] sm:$0xff]  ;;  %v5045_v28 = vld [vmem:[#allocation122_spill] sm:$0xff] }
 0x219   :  { %1301 = vmatpush1.bf16.msra.mxu0 %v5035_v44  ;;  %1342 = vmatpush1.bf16.msra.mxu1 %v5036_v17  ;;  %v5046_v44 = vld [vmem:[#allocation123_spill] sm:$0xff]  ;;  %v5047_v17 = vld [vmem:[#allocation124_spill] sm:$0xff] }
 0x21a   :  { %1302 = vmatprep.subr.bf16.mxu0 %v5037_v35  ;;  %1343 = vmatprep.subr.bf16.mxu1 %v5038_v0  ;;  %v5048_v35 = vld [vmem:[#allocation125_spill] sm:$0xff]  ;;  %v5049_v0 = vld [vmem:[#allocation126_spill] sm:$0xff] }
 0x21d   :  { %1303 = vmatpush1.bf16.msra.mxu0 %v5039_v14  ;;  %1344 = vmatpush1.bf16.msra.mxu1 %v5040_v27  ;;  %v5050_v14 = vld [vmem:[#allocation127_spill] sm:$0xff]  ;;  %v5051_v27 = vld [vmem:[#allocation128_spill] sm:$0xff] }
 0x21e   :  { %1304 = vmatprep.subr.bf16.mxu0 %v5041_v34  ;;  %1345 = vmatprep.subr.bf16.mxu1 %v5042_v26  ;;  %v5052_v34 = vld [vmem:[#allocation129_spill] sm:$0xff]  ;;  %v5053_v26 = vld [vmem:[#allocation130_spill] sm:$0xff] }
 0x221   :  { %1305 = vmatpush1.bf16.msra.mxu0 %v5043_v52  ;;  %1346 = vmatpush1.bf16.msra.mxu1 %v5044_v21  ;;  %v5054_v52 = vld [vmem:[#allocation131_spill] sm:$0xff] }
 0x222   :  { %1306 = vmatprep.subr.bf16.mxu0 %v5045_v28  ;;  %1347 = vmatprep.subr.bf16.mxu1 %v5046_v44 }
 0x225   :  { %1307 = vmatpush1.bf16.msra.mxu0 %v5047_v17  ;;  %1348 = vmatpush1.bf16.msra.mxu1 %v5048_v35  ;;  %v5055_v17 = vld [vmem:[#allocation135_spill] sm:$0xff]  ;;  %v5056_v35 = vld [vmem:[#allocation136_spill] sm:$0xff] }
 0x226   :  { %1308 = vmatprep.subr.bf16.mxu0 %v5049_v0  ;;  %1349 = vmatprep.subr.bf16.mxu1 %v5050_v14 }
 0x229   :  { %1309 = vmatpush1.bf16.msra.mxu0 %v5051_v27  ;;  %1350 = vmatpush1.bf16.msra.mxu1 %v5052_v34 }
 0x22a   :  { %1310 = vmatprep.subr.bf16.mxu0 %v5053_v26  ;;  %1351 = vmatprep.subr.bf16.mxu1 %v5054_v52 }
 0x22d   :  { %1311 = vmatpush1.bf16.msra.mxu0 %v3418_v18  ;;  %1352 = vmatpush1.bf16.msra.mxu1 %v3420_v2 }
 0x22e   :  { %1312 = vmatprep.subr.bf16.mxu0 %v3424_v33  ;;  %1353 = vmatprep.subr.bf16.mxu1 %v5055_v17 }
 0x231   :  { %1313 = vmatpush1.bf16.msra.mxu0 %v5056_v35  ;;  %1354 = vmatpush1.bf16.msra.mxu1 %v3432_v42 }
 0x232   :  { %1314 = vmatprep.subr.bf16.mxu0 %v3436_v60  ;;  %1355 = vmatprep.subr.bf16.mxu1 %v3438_v43 }
 0x235   :  { %1315 = vmatpush1.bf16.msra.mxu0 %v3442_v41  ;;  %1356 = vmatpush1.bf16.msra.mxu1 %v3444_v36 }
 0x236   :  { %1316 = vmatprep.subr.bf16.mxu0 %v3448_v6  ;;  %1357 = vmatprep.subr.bf16.mxu1 %v3450_v50 }
 0x239   :  { %1317 = vmatpush1.bf16.msra.mxu0 %v3454_v57  ;;  %1358 = vmatpush1.bf16.msra.mxu1 %v3456_v1 }
 0x23a   :  { %1414 = vmatprep.subr.bf16.mxu0 %v3006_v5  ;;  %1455 = vmatprep.subr.bf16.mxu1 %v3010_v10 }
 0x23c   :  { %1319 = vmatmul.mubr.bf16.vlgmr.msra.gmra.mrb[12].mxu0 %v3570_v51  ;;  %1360 = vmatmul.mubr.bf16.vlgmr.msra.gmra.mrb[12].mxu1 %v3570_v51  ;;  %v5057_v51 = vld [vmem:[#allocation33_spill] sm:$0xff] }
 0x23d   :  { %1415 = vmatpush1.bf16.msra.mxu0 %v3008_v8  ;;  %1456 = vmatpush1.bf16.msra.mxu1 %v3012_v11 }
 0x23e   :  { %1416 = vmatprep.subr.bf16.mxu0 %v3015_v15  ;;  %1457 = vmatprep.subr.bf16.mxu1 %v3017_v16 }
 0x241   :  { %1417 = vmatpush1.bf16.msra.mxu0 %v3021_v20  ;;  %1458 = vmatpush1.bf16.msra.mxu1 %v3025_v22 }
 0x242   :  { %1418 = vmatprep.subr.bf16.mxu0 %v3027_v23  ;;  %1459 = vmatprep.subr.bf16.mxu1 %v3030_v24 }
 0x245   :  { %1419 = vmatpush1.bf16.msra.mxu0 %v3033_v29  ;;  %1460 = vmatpush1.bf16.msra.mxu1 %v3037_v30  ;;  %v5101_v29 = vld [vmem:[#allocation83_spill] sm:$0xff] }
 0x246   :  { %1420 = vmatprep.subr.bf16.mxu0 %v3039_v31  ;;  %1461 = vmatprep.subr.bf16.mxu1 %v3042_v32 }
 0x249   :  { %1421 = vmatpush1.bf16.msra.mxu0 %v3045_v37  ;;  %1462 = vmatpush1.bf16.msra.mxu1 %v3049_v38 }
 0x24a   :  { %1422 = vmatprep.subr.bf16.mxu0 %v3051_v39  ;;  %1463 = vmatprep.subr.bf16.mxu1 %v3054_v40  ;;  %v5058_v40 = vld [vmem:[#allocation34_spill] sm:$0xff] }
 0x24d   :  { %1423 = vmatpush1.bf16.msra.mxu0 %v3057_v45  ;;  %1464 = vmatpush1.bf16.msra.mxu1 %v3061_v46  ;;  %v5059_v45 = vld [vmem:[#allocation35_spill] sm:$0xff]  ;;  %v5060_v46 = vld [vmem:[#allocation36_spill] sm:$0xff] }
 0x24e   :  { %1424 = vmatprep.subr.bf16.mxu0 %v3063_v47  ;;  %1465 = vmatprep.subr.bf16.mxu1 %v3066_v48  ;;  %v5061_v47 = vld [vmem:[#allocation37_spill] sm:$0xff]  ;;  %v5062_v48 = vld [vmem:[#allocation38_spill] sm:$0xff] }
 0x251   :  { %1425 = vmatpush1.bf16.msra.mxu0 %v3069_v53  ;;  %1466 = vmatpush1.bf16.msra.mxu1 %v3073_v54  ;;  %v5063_v53 = vld [vmem:[#allocation39_spill] sm:$0xff]  ;;  %v5064_v54 = vld [vmem:[#allocation40_spill] sm:$0xff] }
 0x252   :  { %1426 = vmatprep.subr.bf16.mxu0 %v3075_v55  ;;  %1467 = vmatprep.subr.bf16.mxu1 %v3078_v56  ;;  %v5065_v55 = vld [vmem:[#allocation41_spill] sm:$0xff]  ;;  %v5066_v56 = vld [vmem:[#allocation42_spill] sm:$0xff] }
 0x255   :  { %1427 = vmatpush1.bf16.msra.mxu0 %v3081_v61  ;;  %1468 = vmatpush1.bf16.msra.mxu1 %v5057_v51  ;;  %v5067_v61 = vld [vmem:[#allocation43_spill] sm:$0xff]  ;;  %v5068_v51 = vld [vmem:[#allocation44_spill] sm:$0xff] }
 0x256   :  { %1428 = vmatprep.subr.bf16.mxu0 %v5058_v40  ;;  %1469 = vmatprep.subr.bf16.mxu1 %v5059_v45  ;;  %v5069_v40 = vld [vmem:[#allocation45_spill] sm:$0xff]  ;;  %v5070_v45 = vld [vmem:[#allocation46_spill] sm:$0xff] }
 0x259   :  { %1429 = vmatpush1.bf16.msra.mxu0 %v5060_v46  ;;  %1470 = vmatpush1.bf16.msra.mxu1 %v5061_v47  ;;  %v5071_v46 = vld [vmem:[#allocation47_spill] sm:$0xff]  ;;  %v5072_v47 = vld [vmem:[#allocation48_spill] sm:$0xff] }
 0x25a   :  { %1430 = vmatprep.subr.bf16.mxu0 %v5062_v48  ;;  %1471 = vmatprep.subr.bf16.mxu1 %v5063_v53  ;;  %v5073_v48 = vld [vmem:[#allocation49_spill] sm:$0xff]  ;;  %v5074_v53 = vld [vmem:[#allocation50_spill] sm:$0xff] }
 0x25d   :  { %1431 = vmatpush1.bf16.msra.mxu0 %v5064_v54  ;;  %1472 = vmatpush1.bf16.msra.mxu1 %v5065_v55  ;;  %v5075_v54 = vld [vmem:[#allocation52_spill] sm:$0xff]  ;;  %v5076_v55 = vld [vmem:[#allocation53_spill] sm:$0xff] }
 0x25e   :  { %1432 = vmatprep.subr.bf16.mxu0 %v5066_v56  ;;  %1473 = vmatprep.subr.bf16.mxu1 %v5067_v61  ;;  %v5077_v56 = vld [vmem:[#allocation54_spill] sm:$0xff]  ;;  %v5078_v61 = vld [vmem:[#allocation55_spill] sm:$0xff] }
 0x261   :  { %1433 = vmatpush1.bf16.msra.mxu0 %v5068_v51  ;;  %1474 = vmatpush1.bf16.msra.mxu1 %v5069_v40  ;;  %v5079_v51 = vld [vmem:[#allocation56_spill] sm:$0xff]  ;;  %v5080_v40 = vld [vmem:[#allocation57_spill] sm:$0xff] }
 0x262   :  { %1434 = vmatprep.subr.bf16.mxu0 %v5070_v45  ;;  %1475 = vmatprep.subr.bf16.mxu1 %v5071_v46  ;;  %v5081_v45 = vld [vmem:[#allocation58_spill] sm:$0xff]  ;;  %v5082_v46 = vld [vmem:[#allocation59_spill] sm:$0xff] }
 0x265   :  { %1435 = vmatpush1.bf16.msra.mxu0 %v5072_v47  ;;  %1476 = vmatpush1.bf16.msra.mxu1 %v5073_v48  ;;  %v5083_v47 = vld [vmem:[#allocation60_spill] sm:$0xff]  ;;  %v5084_v48 = vld [vmem:[#allocation61_spill] sm:$0xff] }
 0x266   :  { %1436 = vmatprep.subr.bf16.mxu0 %v5074_v53  ;;  %1477 = vmatprep.subr.bf16.mxu1 %v5075_v54  ;;  %v5085_v53 = vld [vmem:[#allocation62_spill] sm:$0xff]  ;;  %v5086_v54 = vld [vmem:[#allocation63_spill] sm:$0xff] }
 0x269   :  { %1437 = vmatpush1.bf16.msra.mxu0 %v5076_v55  ;;  %1478 = vmatpush1.bf16.msra.mxu1 %v5077_v56  ;;  %v5087_v55 = vld [vmem:[#allocation64_spill] sm:$0xff]  ;;  %v5088_v56 = vld [vmem:[#allocation65_spill] sm:$0xff] }
 0x26a   :  { %1438 = vmatprep.subr.bf16.mxu0 %v5078_v61  ;;  %1479 = vmatprep.subr.bf16.mxu1 %v5079_v51  ;;  %v5089_v61 = vld [vmem:[#allocation66_spill] sm:$0xff]  ;;  %v5090_v51 = vld [vmem:[#allocation67_spill] sm:$0xff] }
 0x26d   :  { %1439 = vmatpush1.bf16.msra.mxu0 %v5080_v40  ;;  %1480 = vmatpush1.bf16.msra.mxu1 %v5081_v45  ;;  %v5091_v40 = vld [vmem:[#allocation68_spill] sm:$0xff]  ;;  %v5092_v45 = vld [vmem:[#allocation69_spill] sm:$0xff] }
 0x26e   :  { %1440 = vmatprep.subr.bf16.mxu0 %v5082_v46  ;;  %1481 = vmatprep.subr.bf16.mxu1 %v5083_v47  ;;  %v5093_v46 = vld [vmem:[#allocation70_spill] sm:$0xff]  ;;  %v5094_v47 = vld [vmem:[#allocation71_spill] sm:$0xff] }
 0x271   :  { %1441 = vmatpush1.bf16.msra.mxu0 %v5084_v48  ;;  %1482 = vmatpush1.bf16.msra.mxu1 %v5085_v53  ;;  %v5095_v48 = vld [vmem:[#allocation72_spill] sm:$0xff]  ;;  %v244_v53 = vpop.permute.xlu1 %243 }
 0x272   :  { %1442 = vmatprep.subr.bf16.mxu0 %v5086_v54  ;;  %1483 = vmatprep.subr.bf16.mxu1 %v5087_v55  ;;  %v5096_v54 = vld [vmem:[#allocation76_spill] sm:$0xff]  ;;  %v5097_v55 = vld [vmem:[#allocation77_spill] sm:$0xff] }
 0x273   :  { %v246_v39 = vmul.f32 %v244_v53, %v5096_v54  ;;  %v247_v38 = vmul.f32 %v244_v53, %v5097_v55 }
 0x275   :  { %1443 = vmatpush1.bf16.msra.mxu0 %v5088_v56  ;;  %1484 = vmatpush1.bf16.msra.mxu1 %v5089_v61  ;;  %v5098_v56 = vld [vmem:[#allocation80_spill] sm:$0xff]  ;;  %v5099_v61 = vld [vmem:[#allocation79_spill] sm:$0xff] }
 0x276   :  { %1444 = vmatprep.subr.bf16.mxu0 %v5090_v51  ;;  %1485 = vmatprep.subr.bf16.mxu1 %v5091_v40  ;;  %v250_v37 = vadd.f32 %v246_v39, %v5098_v56  ;;  %v248_v32 = vmul.f32 %v244_v53, %v5099_v61  ;;  %v5100_v51 = vld [vmem:[#allocation81_spill] sm:$0xff] }
 0x277   :  { %v251_v31 = vadd.f32 %v247_v38, %v5100_v51 }
 0x279   :  { %1445 = vmatpush1.bf16.msra.mxu0 %v5092_v45  ;;  %1486 = vmatpush1.bf16.msra.mxu1 %v5093_v46  ;;  %v252_v46 = vadd.f32 %v248_v32, %v5101_v29 }
 0x27a   :  { %1496 = vmatprep.subr.bf16.mxu0 %v5094_v47  ;;  %1537 = vmatprep.subr.bf16.mxu1 %v5095_v48 }
 0x2cf   :  { %v1238_v40 = vpop.f32.mrb[8].mxu0  ;;  %v1279_v30 = vpop.f32.mrb[8].mxu1 }
 0x2d0   :  { %v1368_v45 = vadd.f32 %v1238_v40, %v250_v37  ;;  %v1240_v24 = vpop.f32.mrb[9].mxu0  ;;  %v1281_v47 = vpop.f32.mrb[9].mxu1  ;;  %v1370_v39 = vadd.f32 %v1279_v30, %v252_v46  ;;  %v5104_v46 = vld [vmem:[#allocation73_spill] sm:$0xff] }
 0x2d1   :  { %v1369_v23 = vadd.f32 %v1240_v24, %v251_v31  ;;  %v1242_v48 = vpop.f32.mrb[10].mxu0  ;;  %v1283_v22 = vpop.f32.mrb[10].mxu1 }
 0x2d2   :  { %v1372_v20 = vmul.f32 0.5, %v1368_v45  ;;  %v1243_v54 = vpop.f32.mrb[11].mxu0  ;;  %v1284_v16 = vpop.f32.mrb[11].mxu1  ;;  %v2937_v22 = vmov 3  }
 0x2d3   :  { %v1376_v55 = vmul.f32 0.5, %v1369_v23  ;;  %2739 = vset.pattern.permute.xlu1 %v2937_v22  ;;  %v5102_v16 = vld [vmem:[#allocation85_spill] sm:$0xff] }
 0x2d4   :  { %2775 = vtanh.f32 %v1372_v20  ;;  %255 = vperm.xlu1 %2739, %v5102_v16   ;;  %v5103_v20 = vld [vmem:[#allocation82_spill] sm:$0xff] }
 0x2d5   :  { %2777 = vtanh.f32 %v1376_v55  ;;  %v249_v23 = vmul.f32 %v244_v53, %v5103_v20 }
 0x2d6   :  { %2779 = vtanh.f32 %v1370_v39 }
 0x2de   :  { %v2776_v61 = vpop.eup %2775 }
 0x2df   :  { %v2778_v38 = vpop.eup %2777  ;;  %v1374_v51 = vmul.f32 0.5, %v2776_v61 }
 0x2e0   :  { %v1378_v56 = vmul.f32 0.5, %v2778_v38  ;;  %v2780_v40 = vpop.eup %2779  ;;  %v253_v38 = vadd.f32 %v249_v23, %v5005_v12 }
 0x2e1   :  { %v1375_v37 = vadd.f32 0.5, %v1374_v51 }
 0x2e2   :  { %v1379_v32 = vadd.f32 0.5, %v1378_v56  ;;  %v1371_v53 = vadd.f32 %v1281_v47, %v253_v38 }
 0x2e3   :  { %v1386_v29 = vmul.f32 %v2780_v40, %v1375_v37  ;;  %v5105_v40 = vld [vmem:[#allocation75_spill] sm:$0xff] }
 0x2e4   :  { %v1385_v24 = vmul.f32 %v1379_v32, %v3537_v25  ;;  %v1381_v22 = vmul.f32 0.5, %v1371_v53 }
 0x2e6   :  { %v3711_v31 = vadd.f32 %v1386_v29, %v1385_v24 }
 0x30f   :  { %v1320_v30 = vpop.f32.mrb[12].mxu0  ;;  %v1361_v45 = vpop.f32.mrb[12].mxu1 }
 0x310   :  { %v1390_v48 = vadd.f32 %v1320_v30, %v5104_v46  ;;  %v1322_v54 = vpop.f32.mrb[13].mxu0  ;;  %v1363_v55 = vpop.f32.mrb[13].mxu1  ;;  %v1392_v32 = vadd.f32 %v1361_v45, %v5105_v40 }
 0x311   :  { %v1391_v61 = vadd.f32 %v1322_v54, %v3552_v62  ;;  %v1324_v56 = vpop.f32.mrb[14].mxu0  ;;  %v1365_v51 = vpop.f32.mrb[14].mxu1  ;;  %v1393_v24 = vadd.f32 %v1363_v55, %v3563_v59 }
 0x312   :  { %v1394_v39 = vmul.f32 0.5, %v1390_v48  ;;  %v1325_v25 = vpop.f32.mrb[15].mxu0  ;;  %v1366_v29 = vpop.f32.mrb[15].mxu1 }
 0x313   :  { %v1398_v37 = vmul.f32 0.5, %v1391_v61  ;;  %v1403_v30 = vmul.f32 0.5, %v1393_v24 }
 0x314   :  { %2781 = vtanh.f32 %v1394_v39 }
 0x315   :  { %2783 = vtanh.f32 %v1398_v37 }
 0x316   :  { %2785 = vtanh.f32 %v1392_v32 }
 0x317   :  { %2787 = vtanh.f32 %v1381_v22 }
 0x318   :  { %2789 = vtanh.f32 %v1403_v30 }
 0x319   :  { %2791 = vtanh.f32 %v3711_v31 }
 0x31e   :  { %v2782_v46 = vpop.eup %2781 }
 0x31f   :  { %v2784_v54 = vpop.eup %2783  ;;  %v1396_v56 = vmul.f32 0.5, %v2782_v46 }
 0x320   :  { %v1400_v48 = vmul.f32 0.5, %v2784_v54  ;;  %v2786_v25 = vpop.eup %2785 }
 0x321   :  { %v1397_v51 = vadd.f32 0.5, %v1396_v56  ;;  %v2788_v45 = vpop.eup %2787  ;;  %v5107_v56 = vld [vmem:[#allocation93_spill] sm:$0xff] }
 0x322   :  { %v1401_v23 = vadd.f32 0.5, %v1400_v48  ;;  %v2790_v55 = vpop.eup %2789  ;;  %v1383_v29 = vmul.f32 0.5, %v2788_v45  ;;  %v5108_v48 = vld [vmem:[#allocation94_spill] sm:$0xff]  ;;  %v5114_v45 = vld [vmem:[#allocation100_spill] sm:$0xff] }
 0x323   :  { %v1408_v61 = vmul.f32 %v2786_v25, %v1397_v51  ;;  %v1405_v38 = vmul.f32 0.5, %v2790_v55  ;;  %v2792_v37 = vpop.eup %2791  ;;  %v5109_v51 = vld [vmem:[#allocation95_spill] sm:$0xff]  ;;  %v5110_v25 = vld [vmem:[#allocation96_spill] sm:$0xff]  ;;  %v5115_v55 = vld [vmem:[#allocation101_spill] sm:$0xff] }
 0x324   :  { %v1407_v39 = vmul.f32 %v1401_v23, %v3567_v63  ;;  %v1384_v46 = vadd.f32 0.5, %v1383_v29  ;;  %v5106_v63 = vld [vmem:[#allocation92_spill] sm:$0xff]  ;;  %v5111_v23 = vld [vmem:[#allocation97_spill] sm:$0xff]  ;;  %v5116_v29 = vld [vmem:[#allocation102_spill] sm:$0xff] }
 0x325   :  { %v1406_v32 = vadd.f32 0.5, %v1405_v38  ;;  %v5117_v38 = vld [vmem:[#allocation103_spill] sm:$0xff] }
 0x326   :  { %v3722_v47 = vadd.f32 %v1408_v61, %v1407_v39  ;;  %v1389_v24 = vmul.f32 %v2792_v37, %v1384_v46  ;;  %v5112_v61 = vld [vmem:[#allocation98_spill] sm:$0xff]  ;;  %v5113_v39 = vld [vmem:[#allocation99_spill] sm:$0xff]  ;;  %v5118_v37 = vld [vmem:[#allocation104_spill] sm:$0xff] }
 0x327   :  { %v5119_v46 = vld [vmem:[#allocation105_spill] sm:$0xff] }
 0x328   :  { %2793 = vtanh.f32 %v3722_v47  ;;  %v3725_v54 = vpack.c.bf16 %v1389_v24, %v1389_v24  ;;  %v5122_v24 = vld [vmem:[#allocation108_spill] sm:$0xff] }
 0x332   :  { %v2794_v53 = vpop.eup %2793 }
 0x333   :  { %v1411_v22 = vmul.f32 %v2794_v53, %v1406_v32  ;;  %v5120_v32 = vld [vmem:[#allocation106_spill] sm:$0xff]  ;;  %v5121_v53 = vld [vmem:[#allocation107_spill] sm:$0xff] }
 0x335   :  { %v1413_v30 = vpack.c.bf16 %v1411_v22, %v1411_v22  ;;  %v5123_v22 = vld [vmem:[#allocation109_spill] sm:$0xff] }
 0x337   :  { %1446 = vmatprep.mubr.bf16.mxu0 %v1413_v30  ;;  %1487 = vmatprep.mubr.bf16.mxu1 %v1413_v30 }
 0x338   :  { %1447 = vmatmul.mubr.bf16.vlgmr.msra.gmra.mrb[16].mxu0 %v3725_v54  ;;  %1488 = vmatmul.mubr.bf16.vlgmr.msra.gmra.mrb[16].mxu1 %v3725_v54 }
 0x339   :  { %1497 = vmatpush1.bf16.msra.mxu0 %v3147_v7  ;;  %1538 = vmatpush1.bf16.msra.mxu1 %v5008_v4 }
 0x33a   :  { %1528 = vmatprep.mubr.bf16.mxu0 %v1413_v30  ;;  %1569 = vmatprep.mubr.bf16.mxu1 %v1413_v30  ;;  %v5124_v30 = vld [vmem:[#allocation110_spill] sm:$0xff] }
 0x33b   :  { %1498 = vmatprep.subr.bf16.mxu0 %v5009_v13  ;;  %1539 = vmatprep.subr.bf16.mxu1 %v5010_v9 }
 0x33d   :  { %1499 = vmatpush1.bf16.msra.mxu0 %v5011_v49  ;;  %1540 = vmatpush1.bf16.msra.mxu1 %v5012_v3 }
 0x33e   :  { %1500 = vmatprep.subr.bf16.mxu0 %v5013_v58  ;;  %1541 = vmatprep.subr.bf16.mxu1 %v5014_v19 }
 0x341   :  { %1501 = vmatpush1.bf16.msra.mxu0 %v5106_v63  ;;  %1542 = vmatpush1.bf16.msra.mxu1 %v5107_v56 }
 0x342   :  { %1502 = vmatprep.subr.bf16.mxu0 %v5108_v48  ;;  %1543 = vmatprep.subr.bf16.mxu1 %v5109_v51 }
 0x345   :  { %1503 = vmatpush1.bf16.msra.mxu0 %v5110_v25  ;;  %1544 = vmatpush1.bf16.msra.mxu1 %v5111_v23 }
 0x346   :  { %1504 = vmatprep.subr.bf16.mxu0 %v5112_v61  ;;  %1545 = vmatprep.subr.bf16.mxu1 %v5113_v39 }
 0x349   :  { %1505 = vmatpush1.bf16.msra.mxu0 %v5114_v45  ;;  %1546 = vmatpush1.bf16.msra.mxu1 %v5115_v55  ;;  %v5125_v45 = vld [vmem:[#allocation111_spill] sm:$0xff]  ;;  %v5126_v55 = vld [vmem:[#allocation112_spill] sm:$0xff] }
 0x34a   :  { %1506 = vmatprep.subr.bf16.mxu0 %v5116_v29  ;;  %1547 = vmatprep.subr.bf16.mxu1 %v5117_v38  ;;  %v5127_v29 = vld [vmem:[#allocation113_spill] sm:$0xff]  ;;  %v5128_v38 = vld [vmem:[#allocation114_spill] sm:$0xff] }
 0x34d   :  { %1507 = vmatpush1.bf16.msra.mxu0 %v5118_v37  ;;  %1548 = vmatpush1.bf16.msra.mxu1 %v5119_v46  ;;  %v5129_v37 = vld [vmem:[#allocation115_spill] sm:$0xff]  ;;  %v5130_v46 = vld [vmem:[#allocation116_spill] sm:$0xff] }
 0x34e   :  { %1508 = vmatprep.subr.bf16.mxu0 %v5120_v32  ;;  %1549 = vmatprep.subr.bf16.mxu1 %v5121_v53  ;;  %v5131_v32 = vld [vmem:[#allocation117_spill] sm:$0xff]  ;;  %v5132_v53 = vld [vmem:[#allocation118_spill] sm:$0xff] }
 0x351   :  { %1509 = vmatpush1.bf16.msra.mxu0 %v5122_v24  ;;  %1550 = vmatpush1.bf16.msra.mxu1 %v5123_v22  ;;  %v5133_v24 = vld [vmem:[#allocation119_spill] sm:$0xff]  ;;  %v5134_v22 = vld [vmem:[#allocation120_spill] sm:$0xff] }
 0x352   :  { %1510 = vmatprep.subr.bf16.mxu0 %v5124_v30  ;;  %1551 = vmatprep.subr.bf16.mxu1 %v5125_v45 }
 0x355   :  { %1511 = vmatpush1.bf16.msra.mxu0 %v5126_v55  ;;  %1552 = vmatpush1.bf16.msra.mxu1 %v5127_v29  ;;  %v5135_v29 = vld [vmem:[#allocation124_spill] sm:$0xff] }
 0x356   :  { %1512 = vmatprep.subr.bf16.mxu0 %v5128_v38  ;;  %1553 = vmatprep.subr.bf16.mxu1 %v5129_v37  ;;  %v5136_v38 = vld [vmem:[#allocation125_spill] sm:$0xff] }
 0x359   :  { %1513 = vmatpush1.bf16.msra.mxu0 %v5130_v46  ;;  %1554 = vmatpush1.bf16.msra.mxu1 %v5131_v32 }
 0x35a   :  { %1514 = vmatprep.subr.bf16.mxu0 %v5132_v53  ;;  %1555 = vmatprep.subr.bf16.mxu1 %v5133_v24 }
 0x35d   :  { %1515 = vmatpush1.bf16.msra.mxu0 %v5134_v22  ;;  %1556 = vmatpush1.bf16.msra.mxu1 %v5044_v21 }
 0x35e   :  { %1516 = vmatprep.subr.bf16.mxu0 %v5045_v28  ;;  %1557 = vmatprep.subr.bf16.mxu1 %v5046_v44 }
 0x361   :  { %1517 = vmatpush1.bf16.msra.mxu0 %v5135_v29  ;;  %1558 = vmatpush1.bf16.msra.mxu1 %v5136_v38 }
 0x362   :  { %1518 = vmatprep.subr.bf16.mxu0 %v5049_v0  ;;  %1559 = vmatprep.subr.bf16.mxu1 %v5050_v14 }
 0x365   :  { %1519 = vmatpush1.bf16.msra.mxu0 %v5051_v27  ;;  %1560 = vmatpush1.bf16.msra.mxu1 %v5052_v34 }
 0x366   :  { %1520 = vmatprep.subr.bf16.mxu0 %v5053_v26  ;;  %1561 = vmatprep.subr.bf16.mxu1 %v5054_v52 }
 0x369   :  { %1521 = vmatpush1.bf16.msra.mxu0 %v3418_v18  ;;  %1562 = vmatpush1.bf16.msra.mxu1 %v3420_v2 }
 0x36a   :  { %1522 = vmatprep.subr.bf16.mxu0 %v3424_v33  ;;  %1563 = vmatprep.subr.bf16.mxu1 %v5055_v17  ;;  %v5203_v33 = vld [vmem:[#allocation83_spill] sm:$0xff] }
 0x36d   :  { %1523 = vmatpush1.bf16.msra.mxu0 %v5056_v35  ;;  %1564 = vmatpush1.bf16.msra.mxu1 %v3432_v42 }
 0x36e   :  { %1524 = vmatprep.subr.bf16.mxu0 %v3436_v60  ;;  %1565 = vmatprep.subr.bf16.mxu1 %v3438_v43 }
 0x371   :  { %1525 = vmatpush1.bf16.msra.mxu0 %v3442_v41  ;;  %1566 = vmatpush1.bf16.msra.mxu1 %v3444_v36  ;;  %v5143_v36 = vld [vmem:[#allocation17_spill] sm:$0xff] }
 0x372   :  { %1526 = vmatprep.subr.bf16.mxu0 %v3448_v6  ;;  %1567 = vmatprep.subr.bf16.mxu1 %v3450_v50  ;;  %v5137_v6 = vld [vmem:[#allocation11_spill] sm:$0xff]  ;;  %v5138_v50 = vld [vmem:[#allocation12_spill] sm:$0xff] }
 0x375   :  { %1527 = vmatpush1.bf16.msra.mxu0 %v3454_v57  ;;  %1568 = vmatpush1.bf16.msra.mxu1 %v3456_v1  ;;  %v5139_v57 = vld [vmem:[#allocation13_spill] sm:$0xff]  ;;  %v5140_v1 = vld [vmem:[#allocation14_spill] sm:$0xff] }
 0x376   :  { %1624 = vmatprep.subr.bf16.mxu0 %v3006_v5  ;;  %1665 = vmatprep.subr.bf16.mxu1 %v3010_v10  ;;  %v5141_v5 = vld [vmem:[#allocation15_spill] sm:$0xff]  ;;  %v5142_v10 = vld [vmem:[#allocation16_spill] sm:$0xff] }
 0x378   :  { %1529 = vmatmul.mubr.bf16.vlgmr.msra.gmra.mrb[20].mxu0 %v3725_v54  ;;  %1570 = vmatmul.mubr.bf16.vlgmr.msra.gmra.mrb[20].mxu1 %v3725_v54  ;;  %v5144_v54 = vld [vmem:[#allocation18_spill] sm:$0xff] }
 0x379   :  { %1625 = vmatpush1.bf16.msra.mxu0 %v3008_v8  ;;  %1666 = vmatpush1.bf16.msra.mxu1 %v3012_v11  ;;  %v5145_v8 = vld [vmem:[#allocation19_spill] sm:$0xff]  ;;  %v5146_v11 = vld [vmem:[#allocation20_spill] sm:$0xff] }
 0x37a   :  { %1626 = vmatprep.subr.bf16.mxu0 %v3015_v15  ;;  %1667 = vmatprep.subr.bf16.mxu1 %v5137_v6  ;;  %v5147_v15 = vld [vmem:[#allocation21_spill] sm:$0xff]  ;;  %v5148_v6 = vld [vmem:[#allocation22_spill] sm:$0xff] }
 0x37d   :  { %1627 = vmatpush1.bf16.msra.mxu0 %v5138_v50  ;;  %1668 = vmatpush1.bf16.msra.mxu1 %v5139_v57  ;;  %v5149_v50 = vld [vmem:[#allocation23_spill] sm:$0xff]  ;;  %v5150_v57 = vld [vmem:[#allocation24_spill] sm:$0xff] }
 0x37e   :  { %1628 = vmatprep.subr.bf16.mxu0 %v5140_v1  ;;  %1669 = vmatprep.subr.bf16.mxu1 %v5141_v5  ;;  %v5151_v1 = vld [vmem:[#allocation25_spill] sm:$0xff]  ;;  %v5152_v5 = vld [vmem:[#allocation26_spill] sm:$0xff] }
 0x381   :  { %1629 = vmatpush1.bf16.msra.mxu0 %v5142_v10  ;;  %1670 = vmatpush1.bf16.msra.mxu1 %v5143_v36  ;;  %v5153_v10 = vld [vmem:[#allocation27_spill] sm:$0xff]  ;;  %v5154_v36 = vld [vmem:[#allocation28_spill] sm:$0xff] }
 0x382   :  { %1630 = vmatprep.subr.bf16.mxu0 %v5144_v54  ;;  %1671 = vmatprep.subr.bf16.mxu1 %v5145_v8  ;;  %v5155_v54 = vld [vmem:[#allocation29_spill] sm:$0xff]  ;;  %v5156_v8 = vld [vmem:[#allocation30_spill] sm:$0xff] }
 0x385   :  { %1631 = vmatpush1.bf16.msra.mxu0 %v5146_v11  ;;  %1672 = vmatpush1.bf16.msra.mxu1 %v5147_v15  ;;  %v5157_v11 = vld [vmem:[#allocation31_spill] sm:$0xff]  ;;  %v5158_v15 = vld [vmem:[#allocation32_spill] sm:$0xff] }
 0x386   :  { %1632 = vmatprep.subr.bf16.mxu0 %v5148_v6  ;;  %1673 = vmatprep.subr.bf16.mxu1 %v5149_v50  ;;  %v5159_v6 = vld [vmem:[#allocation33_spill] sm:$0xff]  ;;  %v5160_v50 = vld [vmem:[#allocation34_spill] sm:$0xff] }
 0x389   :  { %1633 = vmatpush1.bf16.msra.mxu0 %v5150_v57  ;;  %1674 = vmatpush1.bf16.msra.mxu1 %v5151_v1  ;;  %v5161_v57 = vld [vmem:[#allocation35_spill] sm:$0xff]  ;;  %v5162_v1 = vld [vmem:[#allocation36_spill] sm:$0xff] }
 0x38a   :  { %1634 = vmatprep.subr.bf16.mxu0 %v5152_v5  ;;  %1675 = vmatprep.subr.bf16.mxu1 %v5153_v10  ;;  %v5163_v5 = vld [vmem:[#allocation37_spill] sm:$0xff]  ;;  %v5164_v10 = vld [vmem:[#allocation38_spill] sm:$0xff] }
 0x38d   :  { %1635 = vmatpush1.bf16.msra.mxu0 %v5154_v36  ;;  %1676 = vmatpush1.bf16.msra.mxu1 %v5155_v54  ;;  %v5165_v36 = vld [vmem:[#allocation39_spill] sm:$0xff]  ;;  %v5166_v54 = vld [vmem:[#allocation40_spill] sm:$0xff] }
 0x38e   :  { %1636 = vmatprep.subr.bf16.mxu0 %v5156_v8  ;;  %1677 = vmatprep.subr.bf16.mxu1 %v5157_v11  ;;  %v5167_v8 = vld [vmem:[#allocation41_spill] sm:$0xff]  ;;  %v5168_v11 = vld [vmem:[#allocation42_spill] sm:$0xff] }
 0x391   :  { %1637 = vmatpush1.bf16.msra.mxu0 %v5158_v15  ;;  %1678 = vmatpush1.bf16.msra.mxu1 %v5159_v6  ;;  %v5169_v15 = vld [vmem:[#allocation43_spill] sm:$0xff]  ;;  %v5170_v6 = vld [vmem:[#allocation44_spill] sm:$0xff] }
 0x392   :  { %1638 = vmatprep.subr.bf16.mxu0 %v5160_v50  ;;  %1679 = vmatprep.subr.bf16.mxu1 %v5161_v57  ;;  %v5171_v50 = vld [vmem:[#allocation45_spill] sm:$0xff]  ;;  %v5172_v57 = vld [vmem:[#allocation46_spill] sm:$0xff] }
 0x395   :  { %1639 = vmatpush1.bf16.msra.mxu0 %v5162_v1  ;;  %1680 = vmatpush1.bf16.msra.mxu1 %v5163_v5  ;;  %v5173_v1 = vld [vmem:[#allocation47_spill] sm:$0xff]  ;;  %v5174_v5 = vld [vmem:[#allocation48_spill] sm:$0xff] }
 0x396   :  { %1640 = vmatprep.subr.bf16.mxu0 %v5164_v10  ;;  %1681 = vmatprep.subr.bf16.mxu1 %v5165_v36  ;;  %v5175_v10 = vld [vmem:[#allocation49_spill] sm:$0xff]  ;;  %v5176_v36 = vld [vmem:[#allocation50_spill] sm:$0xff] }
 0x399   :  { %1641 = vmatpush1.bf16.msra.mxu0 %v5166_v54  ;;  %1682 = vmatpush1.bf16.msra.mxu1 %v5167_v8  ;;  %v5177_v54 = vld [vmem:[#allocation52_spill] sm:$0xff]  ;;  %v5178_v8 = vld [vmem:[#allocation53_spill] sm:$0xff] }
 0x39a   :  { %1642 = vmatprep.subr.bf16.mxu0 %v5168_v11  ;;  %1683 = vmatprep.subr.bf16.mxu1 %v5169_v15  ;;  %v5179_v11 = vld [vmem:[#allocation54_spill] sm:$0xff]  ;;  %v5180_v15 = vld [vmem:[#allocation55_spill] sm:$0xff] }
 0x39d   :  { %1643 = vmatpush1.bf16.msra.mxu0 %v5170_v6  ;;  %1684 = vmatpush1.bf16.msra.mxu1 %v5171_v50  ;;  %v5181_v6 = vld [vmem:[#allocation56_spill] sm:$0xff]  ;;  %v5182_v50 = vld [vmem:[#allocation57_spill] sm:$0xff] }
 0x39e   :  { %1644 = vmatprep.subr.bf16.mxu0 %v5172_v57  ;;  %1685 = vmatprep.subr.bf16.mxu1 %v5173_v1  ;;  %v5183_v57 = vld [vmem:[#allocation58_spill] sm:$0xff]  ;;  %v5184_v1 = vld [vmem:[#allocation59_spill] sm:$0xff] }
 0x3a1   :  { %1645 = vmatpush1.bf16.msra.mxu0 %v5174_v5  ;;  %1686 = vmatpush1.bf16.msra.mxu1 %v5175_v10  ;;  %v5185_v5 = vld [vmem:[#allocation60_spill] sm:$0xff]  ;;  %v5186_v10 = vld [vmem:[#allocation61_spill] sm:$0xff] }
 0x3a2   :  { %1646 = vmatprep.subr.bf16.mxu0 %v5176_v36  ;;  %1687 = vmatprep.subr.bf16.mxu1 %v5177_v54  ;;  %v5187_v36 = vld [vmem:[#allocation62_spill] sm:$0xff]  ;;  %v5188_v54 = vld [vmem:[#allocation63_spill] sm:$0xff] }
 0x3a5   :  { %1647 = vmatpush1.bf16.msra.mxu0 %v5178_v8  ;;  %1688 = vmatpush1.bf16.msra.mxu1 %v5179_v11  ;;  %v5189_v8 = vld [vmem:[#allocation64_spill] sm:$0xff]  ;;  %v5190_v11 = vld [vmem:[#allocation65_spill] sm:$0xff] }
 0x3a6   :  { %1648 = vmatprep.subr.bf16.mxu0 %v5180_v15  ;;  %1689 = vmatprep.subr.bf16.mxu1 %v5181_v6  ;;  %v5191_v15 = vld [vmem:[#allocation66_spill] sm:$0xff]  ;;  %v5192_v6 = vld [vmem:[#allocation67_spill] sm:$0xff] }
 0x3a9   :  { %1649 = vmatpush1.bf16.msra.mxu0 %v5182_v50  ;;  %1690 = vmatpush1.bf16.msra.mxu1 %v5183_v57  ;;  %v5193_v50 = vld [vmem:[#allocation68_spill] sm:$0xff]  ;;  %v5194_v57 = vld [vmem:[#allocation69_spill] sm:$0xff] }
 0x3aa   :  { %1650 = vmatprep.subr.bf16.mxu0 %v5184_v1  ;;  %1691 = vmatprep.subr.bf16.mxu1 %v5185_v5  ;;  %v5195_v1 = vld [vmem:[#allocation70_spill] sm:$0xff]  ;;  %v5196_v5 = vld [vmem:[#allocation71_spill] sm:$0xff] }
 0x3ad   :  { %1651 = vmatpush1.bf16.msra.mxu0 %v5186_v10  ;;  %1692 = vmatpush1.bf16.msra.mxu1 %v5187_v36  ;;  %v5197_v10 = vld [vmem:[#allocation72_spill] sm:$0xff]  ;;  %v256_v36 = vpop.permute.xlu1 %255 }
 0x3ae   :  { %1652 = vmatprep.subr.bf16.mxu0 %v5188_v54  ;;  %1693 = vmatprep.subr.bf16.mxu1 %v5189_v8  ;;  %v5198_v54 = vld [vmem:[#allocation76_spill] sm:$0xff]  ;;  %v5199_v8 = vld [vmem:[#allocation77_spill] sm:$0xff] }
 0x3af   :  { %v258_v41 = vmul.f32 %v256_v36, %v5198_v54  ;;  %v259_v43 = vmul.f32 %v256_v36, %v5199_v8 }
 0x3b1   :  { %1653 = vmatpush1.bf16.msra.mxu0 %v5190_v11  ;;  %1694 = vmatpush1.bf16.msra.mxu1 %v5191_v15  ;;  %v5200_v11 = vld [vmem:[#allocation80_spill] sm:$0xff]  ;;  %v5201_v15 = vld [vmem:[#allocation79_spill] sm:$0xff] }
 0x3b2   :  { %1654 = vmatprep.subr.bf16.mxu0 %v5192_v6  ;;  %1695 = vmatprep.subr.bf16.mxu1 %v5193_v50  ;;  %v262_v60 = vadd.f32 %v258_v41, %v5200_v11  ;;  %v260_v42 = vmul.f32 %v256_v36, %v5201_v15  ;;  %v5202_v6 = vld [vmem:[#allocation81_spill] sm:$0xff] }
 0x3b3   :  { %v263_v35 = vadd.f32 %v259_v43, %v5202_v6 }
 0x3b5   :  { %1655 = vmatpush1.bf16.msra.mxu0 %v5194_v57  ;;  %1696 = vmatpush1.bf16.msra.mxu1 %v5195_v1  ;;  %v264_v1 = vadd.f32 %v260_v42, %v5203_v33 }
 0x3b6   :  { %1706 = vmatprep.subr.bf16.mxu0 %v5196_v5  ;;  %1747 = vmatprep.subr.bf16.mxu1 %v5197_v10 }
 0x40b   :  { %v1448_v50 = vpop.f32.mrb[16].mxu0  ;;  %v1489_v17 = vpop.f32.mrb[16].mxu1 }
 0x40c   :  { %v1578_v57 = vadd.f32 %v1448_v50, %v262_v60  ;;  %v1450_v2 = vpop.f32.mrb[17].mxu0  ;;  %v1491_v5 = vpop.f32.mrb[17].mxu1  ;;  %v1580_v41 = vadd.f32 %v1489_v17, %v264_v1 }
 0x40d   :  { %v1579_v18 = vadd.f32 %v1450_v2, %v263_v35  ;;  %v1452_v10 = vpop.f32.mrb[18].mxu0  ;;  %v1493_v52 = vpop.f32.mrb[18].mxu1  ;;  %v5204_v35 = vld [vmem:[#allocation73_spill] sm:$0xff] }
 0x40e   :  { %v1582_v26 = vmul.f32 0.5, %v1578_v57  ;;  %v1453_v54 = vpop.f32.mrb[19].mxu0  ;;  %v1494_v34 = vpop.f32.mrb[19].mxu1  ;;  %v2938_v57 = vmov 4  }
 0x40f   :  { %v1586_v8 = vmul.f32 0.5, %v1579_v18  ;;  %2740 = vset.pattern.permute.xlu1 %v2938_v57  ;;  %v261_v18 = vmul.f32 %v256_v36, %v5103_v20 }
 0x410   :  { %2795 = vtanh.f32 %v1582_v26  ;;  %267 = vperm.xlu1 %2740, %v5102_v16  }
 0x411   :  { %2797 = vtanh.f32 %v1586_v8  ;;  %v265_v54 = vadd.f32 %v261_v18, %v5005_v12 }
 0x412   :  { %2799 = vtanh.f32 %v1580_v41 }
 0x413   :  { %v1581_v36 = vadd.f32 %v1491_v5, %v265_v54 }
 0x41a   :  { %v2796_v15 = vpop.eup %2795 }
 0x41b   :  { %v2798_v43 = vpop.eup %2797  ;;  %v1584_v6 = vmul.f32 0.5, %v2796_v15 }
 0x41c   :  { %v1588_v11 = vmul.f32 0.5, %v2798_v43  ;;  %v2800_v50 = vpop.eup %2799 }
 0x41d   :  { %v1585_v60 = vadd.f32 0.5, %v1584_v6 }
 0x41e   :  { %v1589_v42 = vadd.f32 0.5, %v1588_v11 }
 0x41f   :  { %v1596_v33 = vmul.f32 %v2800_v50, %v1585_v60  ;;  %v1591_v60 = vmul.f32 0.5, %v1581_v36 }
 0x420   :  { %v1595_v2 = vmul.f32 %v1589_v42, %v3711_v31 }
 0x422   :  { %v3866_v10 = vadd.f32 %v1596_v33, %v1595_v2 }
 0x44b   :  { %v1530_v8 = vpop.f32.mrb[20].mxu0  ;;  %v1571_v1 = vpop.f32.mrb[20].mxu1 }
 0x44c   :  { %v1600_v34 = vadd.f32 %v1530_v8, %v5204_v35  ;;  %v1532_v15 = vpop.f32.mrb[21].mxu0  ;;  %v1573_v26 = vpop.f32.mrb[21].mxu1  ;;  %v1602_v16 = vadd.f32 %v1571_v1, %v5105_v40 }
 0x44d   :  { %v1601_v6 = vadd.f32 %v1532_v15, %v3552_v62  ;;  %v1534_v11 = vpop.f32.mrb[22].mxu0  ;;  %v1575_v52 = vpop.f32.mrb[22].mxu1  ;;  %v1603_v43 = vadd.f32 %v1573_v26, %v3563_v59 }
 0x44e   :  { %v1604_v17 = vmul.f32 0.5, %v1600_v34  ;;  %v1535_v31 = vpop.f32.mrb[23].mxu0  ;;  %v1576_v33 = vpop.f32.mrb[23].mxu1 }
 0x44f   :  { %v1608_v41 = vmul.f32 0.5, %v1601_v6  ;;  %v1613_v50 = vmul.f32 0.5, %v1603_v43 }
 0x450   :  { %2801 = vtanh.f32 %v1604_v17 }
 0x451   :  { %2803 = vtanh.f32 %v1608_v41 }
 0x452   :  { %2805 = vtanh.f32 %v1602_v16 }
 0x453   :  { %2807 = vtanh.f32 %v1591_v60 }
 0x454   :  { %2809 = vtanh.f32 %v1613_v50  ;;  %v5206_v50 = vld [vmem:[#allocation101_spill] sm:$0xff] }
 0x455   :  { %2811 = vtanh.f32 %v3866_v10 }
 0x45a   :  { %v2802_v42 = vpop.eup %2801 }
 0x45b   :  { %v2804_v2 = vpop.eup %2803  ;;  %v1606_v57 = vmul.f32 0.5, %v2802_v42  ;;  %v5207_v42 = vld [vmem:[#allocation102_spill] sm:$0xff] }
 0x45c   :  { %v1610_v8 = vmul.f32 0.5, %v2804_v2  ;;  %v2806_v15 = vpop.eup %2805  ;;  %v5208_v2 = vld [vmem:[#allocation103_spill] sm:$0xff] }
 0x45d   :  { %v1607_v34 = vadd.f32 0.5, %v1606_v57  ;;  %v2808_v1 = vpop.eup %2807  ;;  %v5209_v57 = vld [vmem:[#allocation104_spill] sm:$0xff] }
 0x45e   :  { %v1611_v18 = vadd.f32 0.5, %v1610_v8  ;;  %v2810_v26 = vpop.eup %2809  ;;  %v1593_v52 = vmul.f32 0.5, %v2808_v1  ;;  %v5210_v8 = vld [vmem:[#allocation105_spill] sm:$0xff]  ;;  %v5216_v1 = vld [vmem:[#allocation114_spill] sm:$0xff] }
 0x45f   :  { %v1618_v6 = vmul.f32 %v2806_v15, %v1607_v34  ;;  %v1615_v17 = vmul.f32 0.5, %v2810_v26  ;;  %v2812_v31 = vpop.eup %2811  ;;  %v5211_v34 = vld [vmem:[#allocation106_spill] sm:$0xff]  ;;  %v5212_v15 = vld [vmem:[#allocation107_spill] sm:$0xff]  ;;  %v5217_v26 = vld [vmem:[#allocation129_spill] sm:$0xff] }
 0x460   :  { %v1617_v11 = vmul.f32 %v1611_v18, %v3722_v47  ;;  %v1594_v33 = vadd.f32 0.5, %v1593_v52  ;;  %v5205_v47 = vld [vmem:[#allocation100_spill] sm:$0xff]  ;;  %v5218_v52 = vld [vmem:[#allocation130_spill] sm:$0xff] }
 0x461   :  { %v1616_v54 = vadd.f32 0.5, %v1615_v17  ;;  %v5213_v18 = vld [vmem:[#allocation108_spill] sm:$0xff]  ;;  %v5219_v17 = vld [vmem:[#allocation131_spill] sm:$0xff] }
 0x462   :  { %v3877_v5 = vadd.f32 %v1618_v6, %v1617_v11  ;;  %v1599_v16 = vmul.f32 %v2812_v31, %v1594_v33  ;;  %v5214_v6 = vld [vmem:[#allocation109_spill] sm:$0xff]  ;;  %v5220_v31 = vld [vmem:[#allocation132_spill] sm:$0xff] }
 0x463   :  { %v5215_v11 = vld [vmem:[#allocation113_spill] sm:$0xff] }
 0x464   :  { %2813 = vtanh.f32 %v3877_v5  ;;  %v3880_v60 = vpack.c.bf16 %v1599_v16, %v1599_v16  ;;  %v5221_v33 = vld [vmem:[#allocation133_spill] sm:$0xff]  ;;  %v5224_v16 = vld [vmem:[#allocation136_spill] sm:$0xff] }
 0x46e   :  { %v2814_v41 = vpop.eup %2813 }
 0x46f   :  { %v1621_v36 = vmul.f32 %v2814_v41, %v1616_v54  ;;  %v5222_v54 = vld [vmem:[#allocation134_spill] sm:$0xff]  ;;  %v5223_v41 = vld [vmem:[#allocation135_spill] sm:$0xff] }
 0x471   :  { %v1623_v43 = vpack.c.bf16 %v1621_v36, %v1621_v36  ;;  %v5225_v36 = vld [vmem:[#allocation137_spill] sm:$0xff] }
 0x473   :  { %1656 = vmatprep.mubr.bf16.mxu0 %v1623_v43  ;;  %1697 = vmatprep.mubr.bf16.mxu1 %v1623_v43 }
 0x474   :  { %1657 = vmatmul.mubr.bf16.vlgmr.msra.gmra.mrb[24].mxu0 %v3880_v60  ;;  %1698 = vmatmul.mubr.bf16.vlgmr.msra.gmra.mrb[24].mxu1 %v3880_v60 }
 0x475   :  { %1707 = vmatpush1.bf16.msra.mxu0 %v3147_v7  ;;  %1748 = vmatpush1.bf16.msra.mxu1 %v5008_v4 }
 0x476   :  { %1738 = vmatprep.mubr.bf16.mxu0 %v1623_v43  ;;  %1779 = vmatprep.mubr.bf16.mxu1 %v1623_v43  ;;  %v5226_v43 = vld [vmem:[#allocation138_spill] sm:$0xff] }
 0x477   :  { %1708 = vmatprep.subr.bf16.mxu0 %v5009_v13  ;;  %1749 = vmatprep.subr.bf16.mxu1 %v5010_v9 }
 0x479   :  { %1709 = vmatpush1.bf16.msra.mxu0 %v5011_v49  ;;  %1750 = vmatpush1.bf16.msra.mxu1 %v5012_v3 }
 0x47a   :  { %1710 = vmatprep.subr.bf16.mxu0 %v5013_v58  ;;  %1751 = vmatprep.subr.bf16.mxu1 %v5014_v19 }
 0x47d   :  { %1711 = vmatpush1.bf16.msra.mxu0 %v5106_v63  ;;  %1752 = vmatpush1.bf16.msra.mxu1 %v5107_v56 }
 0x47e   :  { %1712 = vmatprep.subr.bf16.mxu0 %v5108_v48  ;;  %1753 = vmatprep.subr.bf16.mxu1 %v5109_v51 }
 0x481   :  { %1713 = vmatpush1.bf16.msra.mxu0 %v5110_v25  ;;  %1754 = vmatpush1.bf16.msra.mxu1 %v5111_v23 }
 0x482   :  { %1714 = vmatprep.subr.bf16.mxu0 %v5112_v61  ;;  %1755 = vmatprep.subr.bf16.mxu1 %v5113_v39 }
 0x485   :  { %1715 = vmatpush1.bf16.msra.mxu0 %v5205_v47  ;;  %1756 = vmatpush1.bf16.msra.mxu1 %v5206_v50 }
 0x486   :  { %1716 = vmatprep.subr.bf16.mxu0 %v5207_v42  ;;  %1757 = vmatprep.subr.bf16.mxu1 %v5208_v2 }
 0x489   :  { %1717 = vmatpush1.bf16.msra.mxu0 %v5209_v57  ;;  %1758 = vmatpush1.bf16.msra.mxu1 %v5210_v8 }
 0x48a   :  { %1718 = vmatprep.subr.bf16.mxu0 %v5211_v34  ;;  %1759 = vmatprep.subr.bf16.mxu1 %v5212_v15 }
 0x48d   :  { %1719 = vmatpush1.bf16.msra.mxu0 %v5213_v18  ;;  %1760 = vmatpush1.bf16.msra.mxu1 %v5214_v6 }
 0x48e   :  { %1720 = vmatprep.subr.bf16.mxu0 %v5124_v30  ;;  %1761 = vmatprep.subr.bf16.mxu1 %v5125_v45 }
 0x491   :  { %1721 = vmatpush1.bf16.msra.mxu0 %v5126_v55  ;;  %1762 = vmatpush1.bf16.msra.mxu1 %v5215_v11 }
 0x492   :  { %1722 = vmatprep.subr.bf16.mxu0 %v5216_v1  ;;  %1763 = vmatprep.subr.bf16.mxu1 %v5129_v37 }
 0x495   :  { %1723 = vmatpush1.bf16.msra.mxu0 %v5130_v46  ;;  %1764 = vmatpush1.bf16.msra.mxu1 %v5131_v32 }
 0x496   :  { %1724 = vmatprep.subr.bf16.mxu0 %v5132_v53  ;;  %1765 = vmatprep.subr.bf16.mxu1 %v5133_v24 }
 0x499   :  { %1725 = vmatpush1.bf16.msra.mxu0 %v5134_v22  ;;  %1766 = vmatpush1.bf16.msra.mxu1 %v5044_v21 }
 0x49a   :  { %1726 = vmatprep.subr.bf16.mxu0 %v5045_v28  ;;  %1767 = vmatprep.subr.bf16.mxu1 %v5046_v44  ;;  %v5305_v28 = vld [vmem:[#allocation83_spill] sm:$0xff] }
 0x49d   :  { %1727 = vmatpush1.bf16.msra.mxu0 %v5135_v29  ;;  %1768 = vmatpush1.bf16.msra.mxu1 %v5136_v38 }
 0x49e   :  { %1728 = vmatprep.subr.bf16.mxu0 %v5049_v0  ;;  %1769 = vmatprep.subr.bf16.mxu1 %v5050_v14 }
 0x4a1   :  { %1729 = vmatpush1.bf16.msra.mxu0 %v5051_v27  ;;  %1770 = vmatpush1.bf16.msra.mxu1 %v5217_v26  ;;  %v5227_v27 = vld [vmem:[#allocation139_spill] sm:$0xff]  ;;  %v5228_v26 = vld [vmem:[#allocation140_spill] sm:$0xff] }
 0x4a2   :  { %1730 = vmatprep.subr.bf16.mxu0 %v5218_v52  ;;  %1771 = vmatprep.subr.bf16.mxu1 %v5219_v17  ;;  %v5229_v52 = vld [vmem:[#allocation141_spill] sm:$0xff]  ;;  %v5230_v17 = vld [vmem:[#allocation142_spill] sm:$0xff] }
 0x4a5   :  { %1731 = vmatpush1.bf16.msra.mxu0 %v5220_v31  ;;  %1772 = vmatpush1.bf16.msra.mxu1 %v5221_v33  ;;  %v5231_v31 = vld [vmem:[#allocation143_spill] sm:$0xff]  ;;  %v5232_v33 = vld [vmem:[#allocation144_spill] sm:$0xff] }
 0x4a6   :  { %1732 = vmatprep.subr.bf16.mxu0 %v5222_v54  ;;  %1773 = vmatprep.subr.bf16.mxu1 %v5223_v41  ;;  %v5233_v54 = vld [vmem:[#allocation145_spill] sm:$0xff]  ;;  %v5234_v41 = vld [vmem:[#allocation6_spill] sm:$0xff] }
 0x4a9   :  { %1733 = vmatpush1.bf16.msra.mxu0 %v5224_v16  ;;  %1774 = vmatpush1.bf16.msra.mxu1 %v5225_v36  ;;  %v5235_v16 = vld [vmem:[#allocation8_spill] sm:$0xff] }
 0x4aa   :  { %1734 = vmatprep.subr.bf16.mxu0 %v5226_v43  ;;  %1775 = vmatprep.subr.bf16.mxu1 %v5227_v27  ;;  %v5236_v27 = vld [vmem:[#allocation7_spill] sm:$0xff]  ;;  %v5245_v43 = vld [vmem:[#allocation17_spill] sm:$0xff] }
 0x4ad   :  { %1735 = vmatpush1.bf16.msra.mxu0 %v5228_v26  ;;  %1776 = vmatpush1.bf16.msra.mxu1 %v5229_v52  ;;  %v5237_v26 = vld [vmem:[#allocation9_spill] sm:$0xff]  ;;  %v5238_v52 = vld [vmem:[#allocation10_spill] sm:$0xff] }
 0x4ae   :  { %1736 = vmatprep.subr.bf16.mxu0 %v5230_v17  ;;  %1777 = vmatprep.subr.bf16.mxu1 %v5231_v31  ;;  %v5239_v17 = vld [vmem:[#allocation11_spill] sm:$0xff]  ;;  %v5240_v31 = vld [vmem:[#allocation12_spill] sm:$0xff] }
 0x4b1   :  { %1737 = vmatpush1.bf16.msra.mxu0 %v5232_v33  ;;  %1778 = vmatpush1.bf16.msra.mxu1 %v5233_v54  ;;  %v5241_v33 = vld [vmem:[#allocation13_spill] sm:$0xff]  ;;  %v5242_v54 = vld [vmem:[#allocation14_spill] sm:$0xff] }
 0x4b2   :  { %1834 = vmatprep.subr.bf16.mxu0 %v5234_v41  ;;  %1875 = vmatprep.subr.bf16.mxu1 %v5235_v16  ;;  %v5243_v41 = vld [vmem:[#allocation15_spill] sm:$0xff]  ;;  %v5244_v16 = vld [vmem:[#allocation16_spill] sm:$0xff] }
 0x4b4   :  { %1739 = vmatmul.mubr.bf16.vlgmr.msra.gmra.mrb[28].mxu0 %v3880_v60  ;;  %1780 = vmatmul.mubr.bf16.vlgmr.msra.gmra.mrb[28].mxu1 %v3880_v60  ;;  %v5246_v60 = vld [vmem:[#allocation18_spill] sm:$0xff] }
 0x4b5   :  { %1835 = vmatpush1.bf16.msra.mxu0 %v5236_v27  ;;  %1876 = vmatpush1.bf16.msra.mxu1 %v5237_v26  ;;  %v5247_v27 = vld [vmem:[#allocation19_spill] sm:$0xff]  ;;  %v5248_v26 = vld [vmem:[#allocation20_spill] sm:$0xff] }
 0x4b6   :  { %1836 = vmatprep.subr.bf16.mxu0 %v5238_v52  ;;  %1877 = vmatprep.subr.bf16.mxu1 %v5239_v17  ;;  %v5249_v52 = vld [vmem:[#allocation21_spill] sm:$0xff]  ;;  %v5250_v17 = vld [vmem:[#allocation22_spill] sm:$0xff] }
 0x4b9   :  { %1837 = vmatpush1.bf16.msra.mxu0 %v5240_v31  ;;  %1878 = vmatpush1.bf16.msra.mxu1 %v5241_v33  ;;  %v5251_v31 = vld [vmem:[#allocation23_spill] sm:$0xff]  ;;  %v5252_v33 = vld [vmem:[#allocation24_spill] sm:$0xff] }
 0x4ba   :  { %1838 = vmatprep.subr.bf16.mxu0 %v5242_v54  ;;  %1879 = vmatprep.subr.bf16.mxu1 %v5243_v41  ;;  %v5253_v54 = vld [vmem:[#allocation25_spill] sm:$0xff]  ;;  %v5254_v41 = vld [vmem:[#allocation26_spill] sm:$0xff] }
 0x4bd   :  { %1839 = vmatpush1.bf16.msra.mxu0 %v5244_v16  ;;  %1880 = vmatpush1.bf16.msra.mxu1 %v5245_v43  ;;  %v5255_v16 = vld [vmem:[#allocation27_spill] sm:$0xff]  ;;  %v5256_v43 = vld [vmem:[#allocation28_spill] sm:$0xff] }
 0x4be   :  { %1840 = vmatprep.subr.bf16.mxu0 %v5246_v60  ;;  %1881 = vmatprep.subr.bf16.mxu1 %v5247_v27  ;;  %v5257_v60 = vld [vmem:[#allocation29_spill] sm:$0xff]  ;;  %v5258_v27 = vld [vmem:[#allocation30_spill] sm:$0xff] }
 0x4c1   :  { %1841 = vmatpush1.bf16.msra.mxu0 %v5248_v26  ;;  %1882 = vmatpush1.bf16.msra.mxu1 %v5249_v52  ;;  %v5259_v26 = vld [vmem:[#allocation31_spill] sm:$0xff]  ;;  %v5260_v52 = vld [vmem:[#allocation32_spill] sm:$0xff] }
 0x4c2   :  { %1842 = vmatprep.subr.bf16.mxu0 %v5250_v17  ;;  %1883 = vmatprep.subr.bf16.mxu1 %v5251_v31  ;;  %v5261_v17 = vld [vmem:[#allocation33_spill] sm:$0xff]  ;;  %v5262_v31 = vld [vmem:[#allocation34_spill] sm:$0xff] }
 0x4c5   :  { %1843 = vmatpush1.bf16.msra.mxu0 %v5252_v33  ;;  %1884 = vmatpush1.bf16.msra.mxu1 %v5253_v54  ;;  %v5263_v33 = vld [vmem:[#allocation35_spill] sm:$0xff]  ;;  %v5264_v54 = vld [vmem:[#allocation36_spill] sm:$0xff] }
 0x4c6   :  { %1844 = vmatprep.subr.bf16.mxu0 %v5254_v41  ;;  %1885 = vmatprep.subr.bf16.mxu1 %v5255_v16  ;;  %v5265_v41 = vld [vmem:[#allocation37_spill] sm:$0xff]  ;;  %v5266_v16 = vld [vmem:[#allocation38_spill] sm:$0xff] }
 0x4c9   :  { %1845 = vmatpush1.bf16.msra.mxu0 %v5256_v43  ;;  %1886 = vmatpush1.bf16.msra.mxu1 %v5257_v60  ;;  %v5267_v43 = vld [vmem:[#allocation39_spill] sm:$0xff]  ;;  %v5268_v60 = vld [vmem:[#allocation40_spill] sm:$0xff] }
 0x4ca   :  { %1846 = vmatprep.subr.bf16.mxu0 %v5258_v27  ;;  %1887 = vmatprep.subr.bf16.mxu1 %v5259_v26  ;;  %v5269_v27 = vld [vmem:[#allocation41_spill] sm:$0xff]  ;;  %v5270_v26 = vld [vmem:[#allocation42_spill] sm:$0xff] }
 0x4cd   :  { %1847 = vmatpush1.bf16.msra.mxu0 %v5260_v52  ;;  %1888 = vmatpush1.bf16.msra.mxu1 %v5261_v17  ;;  %v5271_v52 = vld [vmem:[#allocation43_spill] sm:$0xff]  ;;  %v5272_v17 = vld [vmem:[#allocation44_spill] sm:$0xff] }
 0x4ce   :  { %1848 = vmatprep.subr.bf16.mxu0 %v5262_v31  ;;  %1889 = vmatprep.subr.bf16.mxu1 %v5263_v33  ;;  %v5273_v31 = vld [vmem:[#allocation45_spill] sm:$0xff]  ;;  %v5274_v33 = vld [vmem:[#allocation46_spill] sm:$0xff] }
 0x4d1   :  { %1849 = vmatpush1.bf16.msra.mxu0 %v5264_v54  ;;  %1890 = vmatpush1.bf16.msra.mxu1 %v5265_v41  ;;  %v5275_v54 = vld [vmem:[#allocation47_spill] sm:$0xff]  ;;  %v5276_v41 = vld [vmem:[#allocation48_spill] sm:$0xff] }
 0x4d2   :  { %1850 = vmatprep.subr.bf16.mxu0 %v5266_v16  ;;  %1891 = vmatprep.subr.bf16.mxu1 %v5267_v43  ;;  %v5277_v16 = vld [vmem:[#allocation49_spill] sm:$0xff]  ;;  %v5278_v43 = vld [vmem:[#allocation50_spill] sm:$0xff] }
 0x4d5   :  { %1851 = vmatpush1.bf16.msra.mxu0 %v5268_v60  ;;  %1892 = vmatpush1.bf16.msra.mxu1 %v5269_v27  ;;  %v5279_v60 = vld [vmem:[#allocation52_spill] sm:$0xff]  ;;  %v5280_v27 = vld [vmem:[#allocation53_spill] sm:$0xff] }
 0x4d6   :  { %1852 = vmatprep.subr.bf16.mxu0 %v5270_v26  ;;  %1893 = vmatprep.subr.bf16.mxu1 %v5271_v52  ;;  %v5281_v26 = vld [vmem:[#allocation54_spill] sm:$0xff]  ;;  %v5282_v52 = vld [vmem:[#allocation55_spill] sm:$0xff] }
 0x4d9   :  { %1853 = vmatpush1.bf16.msra.mxu0 %v5272_v17  ;;  %1894 = vmatpush1.bf16.msra.mxu1 %v5273_v31  ;;  %v5283_v17 = vld [vmem:[#allocation56_spill] sm:$0xff]  ;;  %v5284_v31 = vld [vmem:[#allocation57_spill] sm:$0xff] }
 0x4da   :  { %1854 = vmatprep.subr.bf16.mxu0 %v5274_v33  ;;  %1895 = vmatprep.subr.bf16.mxu1 %v5275_v54  ;;  %v5285_v33 = vld [vmem:[#allocation58_spill] sm:$0xff]  ;;  %v5286_v54 = vld [vmem:[#allocation59_spill] sm:$0xff] }
 0x4dd   :  { %1855 = vmatpush1.bf16.msra.mxu0 %v5276_v41  ;;  %1896 = vmatpush1.bf16.msra.mxu1 %v5277_v16  ;;  %v5287_v41 = vld [vmem:[#allocation60_spill] sm:$0xff]  ;;  %v5288_v16 = vld [vmem:[#allocation61_spill] sm:$0xff] }
 0x4de   :  { %1856 = vmatprep.subr.bf16.mxu0 %v5278_v43  ;;  %1897 = vmatprep.subr.bf16.mxu1 %v5279_v60  ;;  %v5289_v43 = vld [vmem:[#allocation62_spill] sm:$0xff]  ;;  %v5290_v60 = vld [vmem:[#allocation63_spill] sm:$0xff] }
 0x4e1   :  { %1857 = vmatpush1.bf16.msra.mxu0 %v5280_v27  ;;  %1898 = vmatpush1.bf16.msra.mxu1 %v5281_v26  ;;  %v5291_v27 = vld [vmem:[#allocation64_spill] sm:$0xff]  ;;  %v5292_v26 = vld [vmem:[#allocation65_spill] sm:$0xff] }
 0x4e2   :  { %1858 = vmatprep.subr.bf16.mxu0 %v5282_v52  ;;  %1899 = vmatprep.subr.bf16.mxu1 %v5283_v17  ;;  %v5293_v52 = vld [vmem:[#allocation66_spill] sm:$0xff]  ;;  %v5294_v17 = vld [vmem:[#allocation67_spill] sm:$0xff] }
 0x4e5   :  { %1859 = vmatpush1.bf16.msra.mxu0 %v5284_v31  ;;  %1900 = vmatpush1.bf16.msra.mxu1 %v5285_v33  ;;  %v5295_v31 = vld [vmem:[#allocation68_spill] sm:$0xff]  ;;  %v5296_v33 = vld [vmem:[#allocation69_spill] sm:$0xff] }
 0x4e6   :  { %1860 = vmatprep.subr.bf16.mxu0 %v5286_v54  ;;  %1901 = vmatprep.subr.bf16.mxu1 %v5287_v41  ;;  %v5297_v54 = vld [vmem:[#allocation70_spill] sm:$0xff]  ;;  %v5298_v41 = vld [vmem:[#allocation71_spill] sm:$0xff] }
 0x4e9   :  { %1861 = vmatpush1.bf16.msra.mxu0 %v5288_v16  ;;  %1902 = vmatpush1.bf16.msra.mxu1 %v5289_v43  ;;  %v5299_v16 = vld [vmem:[#allocation72_spill] sm:$0xff]  ;;  %v268_v43 = vpop.permute.xlu1 %267 }
 0x4ea   :  { %1862 = vmatprep.subr.bf16.mxu0 %v5290_v60  ;;  %1903 = vmatprep.subr.bf16.mxu1 %v5291_v27  ;;  %v5300_v60 = vld [vmem:[#allocation76_spill] sm:$0xff]  ;;  %v5301_v27 = vld [vmem:[#allocation77_spill] sm:$0xff] }
 0x4eb   :  { %v270_v36 = vmul.f32 %v268_v43, %v5300_v60  ;;  %v271_v14 = vmul.f32 %v268_v43, %v5301_v27 }
 0x4ed   :  { %1863 = vmatpush1.bf16.msra.mxu0 %v5292_v26  ;;  %1904 = vmatpush1.bf16.msra.mxu1 %v5293_v52  ;;  %v5302_v26 = vld [vmem:[#allocation80_spill] sm:$0xff]  ;;  %v5303_v52 = vld [vmem:[#allocation79_spill] sm:$0xff] }
 0x4ee   :  { %1864 = vmatprep.subr.bf16.mxu0 %v5294_v17  ;;  %1905 = vmatprep.subr.bf16.mxu1 %v5295_v31  ;;  %v274_v0 = vadd.f32 %v270_v36, %v5302_v26  ;;  %v272_v38 = vmul.f32 %v268_v43, %v5303_v52  ;;  %v5304_v17 = vld [vmem:[#allocation81_spill] sm:$0xff] }
 0x4ef   :  { %v275_v29 = vadd.f32 %v271_v14, %v5304_v17 }
 0x4f1   :  { %1865 = vmatpush1.bf16.msra.mxu0 %v5296_v33  ;;  %1906 = vmatpush1.bf16.msra.mxu1 %v5297_v54  ;;  %v276_v54 = vadd.f32 %v272_v38, %v5305_v28 }
 0x4f2   :  { %1916 = vmatprep.subr.bf16.mxu0 %v5298_v41  ;;  %1957 = vmatprep.subr.bf16.mxu1 %v5299_v16 }
 0x547   :  { %v1658_v31 = vpop.f32.mrb[24].mxu0  ;;  %v1699_v44 = vpop.f32.mrb[24].mxu1 }
 0x548   :  { %v1788_v33 = vadd.f32 %v1658_v31, %v274_v0  ;;  %v1660_v21 = vpop.f32.mrb[25].mxu0  ;;  %v1701_v41 = vpop.f32.mrb[25].mxu1  ;;  %v1790_v36 = vadd.f32 %v1699_v44, %v276_v54  ;;  %v4026_v44 = vld [vmem:[%s4506_s0] sm:$0x3] }
 0x549   :  { %v1789_v22 = vadd.f32 %v1660_v21, %v275_v29  ;;  %v1662_v16 = vpop.f32.mrb[26].mxu0  ;;  %v1703_v24 = vpop.f32.mrb[26].mxu1 }
 0x54a   :  { %v1792_v53 = vmul.f32 0.5, %v1788_v33  ;;  %v1663_v60 = vpop.f32.mrb[27].mxu0  ;;  %v1704_v32 = vpop.f32.mrb[27].mxu1  ;;  %v2939_v24 = vmov 5  }
 0x54b   :  { %v1796_v27 = vmul.f32 0.5, %v1789_v22  ;;  %2741 = vset.pattern.permute.xlu0 %v2939_v24 }
 0x54c   :  { %2815 = vtanh.f32 %v1792_v53  ;;  %279 = vperm.xlu0 %2741, %v4026_v44  }
 0x54d   :  { %2817 = vtanh.f32 %v1796_v27  ;;  %v273_v27 = vmul.f32 %v268_v43, %v5103_v20 }
 0x54e   :  { %2819 = vtanh.f32 %v1790_v36 }
 0x54f   :  { %v277_v60 = vadd.f32 %v273_v27, %v5005_v12 }
 0x551   :  { %v1791_v43 = vadd.f32 %v1701_v41, %v277_v60 }
 0x556   :  { %v2816_v52 = vpop.eup %2815 }
 0x557   :  { %v2818_v14 = vpop.eup %2817  ;;  %v1794_v17 = vmul.f32 0.5, %v2816_v52 }
 0x558   :  { %v1798_v26 = vmul.f32 0.5, %v2818_v14  ;;  %v2820_v31 = vpop.eup %2819 }
 0x559   :  { %v1795_v0 = vadd.f32 0.5, %v1794_v17 }
 0x55a   :  { %v1799_v38 = vadd.f32 0.5, %v1798_v26 }
 0x55b   :  { %v1806_v28 = vmul.f32 %v2820_v31, %v1795_v0  ;;  %v1801_v31 = vmul.f32 0.5, %v1791_v43 }
 0x55c   :  { %v1805_v21 = vmul.f32 %v1799_v38, %v3866_v10 }
 0x55e   :  { %v4021_v29 = vadd.f32 %v1806_v28, %v1805_v21 }
 0x587   :  { %v1740_v32 = vpop.f32.mrb[28].mxu0  ;;  %v1781_v53 = vpop.f32.mrb[28].mxu1 }
 0x588   :  { %v1810_v22 = vadd.f32 %v1740_v32, %v5204_v35  ;;  %v1742_v26 = vpop.f32.mrb[29].mxu0  ;;  %v1783_v52 = vpop.f32.mrb[29].mxu1  ;;  %v1812_v14 = vadd.f32 %v1781_v53, %v5105_v40 }
 0x589   :  { %v1811_v28 = vadd.f32 %v1742_v26, %v3552_v62  ;;  %v1744_v10 = vpop.f32.mrb[30].mxu0  ;;  %v1785_v17 = vpop.f32.mrb[30].mxu1  ;;  %v1813_v0 = vadd.f32 %v1783_v52, %v3563_v59 }
 0x58a   :  { %v1814_v33 = vmul.f32 0.5, %v1810_v22  ;;  %v1745_v54 = vpop.f32.mrb[31].mxu0  ;;  %v1786_v16 = vpop.f32.mrb[31].mxu1 }
 0x58b   :  { %v1818_v36 = vmul.f32 0.5, %v1811_v28  ;;  %v1823_v38 = vmul.f32 0.5, %v1813_v0 }
 0x58c   :  { %2821 = vtanh.f32 %v1814_v33 }
 0x58d   :  { %2823 = vtanh.f32 %v1818_v36 }
 0x58e   :  { %2825 = vtanh.f32 %v1812_v14 }
 0x58f   :  { %2827 = vtanh.f32 %v1801_v31 }
 0x590   :  { %2829 = vtanh.f32 %v1823_v38 }
 0x591   :  { %2831 = vtanh.f32 %v4021_v29 }
 0x596   :  { %v2822_v21 = vpop.eup %2821 }
 0x597   :  { %v2824_v24 = vpop.eup %2823  ;;  %v1816_v32 = vmul.f32 0.5, %v2822_v21  ;;  %v5307_v21 = vld [vmem:[#allocation118_spill] sm:$0xff] }
 0x598   :  { %v1820_v22 = vmul.f32 0.5, %v2824_v24  ;;  %v2826_v10 = vpop.eup %2825  ;;  %v5308_v24 = vld [vmem:[#allocation119_spill] sm:$0xff] }
 0x599   :  { %v1817_v26 = vadd.f32 0.5, %v1816_v32  ;;  %v2828_v53 = vpop.eup %2827  ;;  %v5309_v32 = vld [vmem:[#allocation120_spill] sm:$0xff] }
 0x59a   :  { %v1821_v27 = vadd.f32 0.5, %v1820_v22  ;;  %v2830_v52 = vpop.eup %2829  ;;  %v1803_v33 = vmul.f32 0.5, %v2828_v53  ;;  %v5310_v22 = vld [vmem:[#allocation121_spill] sm:$0xff]  ;;  %v5316_v53 = vld [vmem:[#allocation127_spill] sm:$0xff] }
 0x59b   :  { %v1828_v28 = vmul.f32 %v2826_v10, %v1817_v26  ;;  %v1825_v54 = vmul.f32 0.5, %v2830_v52  ;;  %v2832_v16 = vpop.eup %2831  ;;  %v5311_v26 = vld [vmem:[#allocation122_spill] sm:$0xff]  ;;  %v5312_v10 = vld [vmem:[#allocation123_spill] sm:$0xff]  ;;  %v5317_v52 = vld [vmem:[#allocation128_spill] sm:$0xff] }
 0x59c   :  { %v1827_v17 = vmul.f32 %v1821_v27, %v3877_v5  ;;  %v1804_v60 = vadd.f32 0.5, %v1803_v33  ;;  %v5306_v5 = vld [vmem:[#allocation117_spill] sm:$0xff]  ;;  %v5313_v27 = vld [vmem:[#allocation124_spill] sm:$0xff] }
 0x59d   :  { %v1826_v36 = vadd.f32 0.5, %v1825_v54  ;;  %v5318_v33 = vld [vmem:[#allocation129_spill] sm:$0xff]  ;;  %v5319_v54 = vld [vmem:[#allocation130_spill] sm:$0xff] }
 0x59e   :  { %v4037_v41 = vadd.f32 %v1828_v28, %v1827_v17  ;;  %v1809_v43 = vmul.f32 %v2832_v16, %v1804_v60  ;;  %v5314_v28 = vld [vmem:[#allocation125_spill] sm:$0xff]  ;;  %v5315_v17 = vld [vmem:[#allocation126_spill] sm:$0xff]  ;;  %v5320_v16 = vld [vmem:[#allocation131_spill] sm:$0xff] }
 0x59f   :  { %v5321_v60 = vld [vmem:[#allocation132_spill] sm:$0xff] }
 0x5a0   :  { %2833 = vtanh.f32 %v4037_v41  ;;  %v4040_v38 = vpack.c.bf16 %v1809_v43, %v1809_v43  ;;  %v5324_v43 = vld [vmem:[#allocation135_spill] sm:$0xff] }
 0x5aa   :  { %v2834_v14 = vpop.eup %2833 }
 0x5ab   :  { %v1831_v0 = vmul.f32 %v2834_v14, %v1826_v36  ;;  %v5322_v36 = vld [vmem:[#allocation133_spill] sm:$0xff]  ;;  %v5323_v14 = vld [vmem:[#allocation134_spill] sm:$0xff] }
 0x5ad   :  { %v1833_v31 = vpack.c.bf16 %v1831_v0, %v1831_v0  ;;  %v5325_v0 = vld [vmem:[#allocation136_spill] sm:$0xff] }
 0x5af   :  { %1866 = vmatprep.mubr.bf16.mxu0 %v1833_v31  ;;  %1907 = vmatprep.mubr.bf16.mxu1 %v1833_v31 }
 0x5b0   :  { %1867 = vmatmul.mubr.bf16.vlgmr.msra.gmra.mrb[32].mxu0 %v4040_v38  ;;  %1908 = vmatmul.mubr.bf16.vlgmr.msra.gmra.mrb[32].mxu1 %v4040_v38 }
 0x5b1   :  { %1917 = vmatpush1.bf16.msra.mxu0 %v3147_v7  ;;  %1958 = vmatpush1.bf16.msra.mxu1 %v5008_v4 }
 0x5b2   :  { %1948 = vmatprep.mubr.bf16.mxu0 %v1833_v31  ;;  %1989 = vmatprep.mubr.bf16.mxu1 %v1833_v31  ;;  %v5326_v31 = vld [vmem:[#allocation137_spill] sm:$0xff] }
 0x5b3   :  { %1918 = vmatprep.subr.bf16.mxu0 %v5009_v13  ;;  %1959 = vmatprep.subr.bf16.mxu1 %v5010_v9 }
 0x5b5   :  { %1919 = vmatpush1.bf16.msra.mxu0 %v5011_v49  ;;  %1960 = vmatpush1.bf16.msra.mxu1 %v5012_v3 }
 0x5b6   :  { %1920 = vmatprep.subr.bf16.mxu0 %v5013_v58  ;;  %1961 = vmatprep.subr.bf16.mxu1 %v5014_v19 }
 0x5b9   :  { %1921 = vmatpush1.bf16.msra.mxu0 %v5106_v63  ;;  %1962 = vmatpush1.bf16.msra.mxu1 %v5107_v56 }
 0x5ba   :  { %1922 = vmatprep.subr.bf16.mxu0 %v5108_v48  ;;  %1963 = vmatprep.subr.bf16.mxu1 %v5109_v51 }
 0x5bd   :  { %1923 = vmatpush1.bf16.msra.mxu0 %v5110_v25  ;;  %1964 = vmatpush1.bf16.msra.mxu1 %v5111_v23 }
 0x5be   :  { %1924 = vmatprep.subr.bf16.mxu0 %v5112_v61  ;;  %1965 = vmatprep.subr.bf16.mxu1 %v5113_v39 }
 0x5c1   :  { %1925 = vmatpush1.bf16.msra.mxu0 %v5205_v47  ;;  %1966 = vmatpush1.bf16.msra.mxu1 %v5206_v50 }
 0x5c2   :  { %1926 = vmatprep.subr.bf16.mxu0 %v5207_v42  ;;  %1967 = vmatprep.subr.bf16.mxu1 %v5208_v2 }
 0x5c5   :  { %1927 = vmatpush1.bf16.msra.mxu0 %v5209_v57  ;;  %1968 = vmatpush1.bf16.msra.mxu1 %v5210_v8 }
 0x5c6   :  { %1928 = vmatprep.subr.bf16.mxu0 %v5211_v34  ;;  %1969 = vmatprep.subr.bf16.mxu1 %v5212_v15 }
 0x5c9   :  { %1929 = vmatpush1.bf16.msra.mxu0 %v5213_v18  ;;  %1970 = vmatpush1.bf16.msra.mxu1 %v5214_v6 }
 0x5ca   :  { %1930 = vmatprep.subr.bf16.mxu0 %v5124_v30  ;;  %1971 = vmatprep.subr.bf16.mxu1 %v5125_v45 }
 0x5cd   :  { %1931 = vmatpush1.bf16.msra.mxu0 %v5126_v55  ;;  %1972 = vmatpush1.bf16.msra.mxu1 %v5215_v11 }
 0x5ce   :  { %1932 = vmatprep.subr.bf16.mxu0 %v5216_v1  ;;  %1973 = vmatprep.subr.bf16.mxu1 %v5129_v37 }
 0x5d1   :  { %1933 = vmatpush1.bf16.msra.mxu0 %v5130_v46  ;;  %1974 = vmatpush1.bf16.msra.mxu1 %v5306_v5 }
 0x5d2   :  { %1934 = vmatprep.subr.bf16.mxu0 %v5307_v21  ;;  %1975 = vmatprep.subr.bf16.mxu1 %v5308_v24 }
 0x5d5   :  { %1935 = vmatpush1.bf16.msra.mxu0 %v5309_v32  ;;  %1976 = vmatpush1.bf16.msra.mxu1 %v5310_v22  ;;  %v5406_v22 = vld [vmem:[#allocation83_spill] sm:$0xff] }
 0x5d6   :  { %1936 = vmatprep.subr.bf16.mxu0 %v5311_v26  ;;  %1977 = vmatprep.subr.bf16.mxu1 %v5312_v10 }
 0x5d9   :  { %1937 = vmatpush1.bf16.msra.mxu0 %v5313_v27  ;;  %1978 = vmatpush1.bf16.msra.mxu1 %v5314_v28 }
 0x5da   :  { %1938 = vmatprep.subr.bf16.mxu0 %v5315_v17  ;;  %1979 = vmatprep.subr.bf16.mxu1 %v5316_v53  ;;  %v5327_v53 = vld [vmem:[#allocation138_spill] sm:$0xff] }
 0x5dd   :  { %1939 = vmatpush1.bf16.msra.mxu0 %v5317_v52  ;;  %1980 = vmatpush1.bf16.msra.mxu1 %v5318_v33  ;;  %v5328_v52 = vld [vmem:[#allocation139_spill] sm:$0xff]  ;;  %v5329_v33 = vld [vmem:[#allocation140_spill] sm:$0xff] }
 0x5de   :  { %1940 = vmatprep.subr.bf16.mxu0 %v5319_v54  ;;  %1981 = vmatprep.subr.bf16.mxu1 %v5320_v16  ;;  %v5330_v54 = vld [vmem:[#allocation141_spill] sm:$0xff]  ;;  %v5331_v16 = vld [vmem:[#allocation142_spill] sm:$0xff] }
 0x5e1   :  { %1941 = vmatpush1.bf16.msra.mxu0 %v5321_v60  ;;  %1982 = vmatpush1.bf16.msra.mxu1 %v5322_v36  ;;  %v5332_v60 = vld [vmem:[#allocation143_spill] sm:$0xff]  ;;  %v5333_v36 = vld [vmem:[#allocation144_spill] sm:$0xff] }
 0x5e2   :  { %1942 = vmatprep.subr.bf16.mxu0 %v5323_v14  ;;  %1983 = vmatprep.subr.bf16.mxu1 %v5324_v43  ;;  %v5334_v14 = vld [vmem:[#allocation145_spill] sm:$0xff]  ;;  %v5335_v43 = vld [vmem:[#allocation6_spill] sm:$0xff] }
 0x5e5   :  { %1943 = vmatpush1.bf16.msra.mxu0 %v5325_v0  ;;  %1984 = vmatpush1.bf16.msra.mxu1 %v5326_v31  ;;  %v5336_v0 = vld [vmem:[#allocation8_spill] sm:$0xff] }
 0x5e6   :  { %1944 = vmatprep.subr.bf16.mxu0 %v5327_v53  ;;  %1985 = vmatprep.subr.bf16.mxu1 %v5328_v52  ;;  %v5337_v52 = vld [vmem:[#allocation7_spill] sm:$0xff]  ;;  %v5346_v53 = vld [vmem:[#allocation17_spill] sm:$0xff] }
 0x5e9   :  { %1945 = vmatpush1.bf16.msra.mxu0 %v5329_v33  ;;  %1986 = vmatpush1.bf16.msra.mxu1 %v5330_v54  ;;  %v5338_v33 = vld [vmem:[#allocation9_spill] sm:$0xff]  ;;  %v5339_v54 = vld [vmem:[#allocation10_spill] sm:$0xff] }
 0x5ea   :  { %1946 = vmatprep.subr.bf16.mxu0 %v5331_v16  ;;  %1987 = vmatprep.subr.bf16.mxu1 %v5332_v60  ;;  %v5340_v16 = vld [vmem:[#allocation11_spill] sm:$0xff]  ;;  %v5341_v60 = vld [vmem:[#allocation12_spill] sm:$0xff] }
 0x5ed   :  { %1947 = vmatpush1.bf16.msra.mxu0 %v5333_v36  ;;  %1988 = vmatpush1.bf16.msra.mxu1 %v5334_v14  ;;  %v5342_v36 = vld [vmem:[#allocation13_spill] sm:$0xff]  ;;  %v5343_v14 = vld [vmem:[#allocation14_spill] sm:$0xff] }
 0x5ee   :  { %2044 = vmatprep.subr.bf16.mxu0 %v5335_v43  ;;  %2085 = vmatprep.subr.bf16.mxu1 %v5336_v0  ;;  %v5344_v43 = vld [vmem:[#allocation15_spill] sm:$0xff]  ;;  %v5345_v0 = vld [vmem:[#allocation16_spill] sm:$0xff] }
 0x5f0   :  { %1949 = vmatmul.mubr.bf16.vlgmr.msra.gmra.mrb[36].mxu0 %v4040_v38  ;;  %1990 = vmatmul.mubr.bf16.vlgmr.msra.gmra.mrb[36].mxu1 %v4040_v38  ;;  %v5347_v38 = vld [vmem:[#allocation18_spill] sm:$0xff] }
 0x5f1   :  { %2045 = vmatpush1.bf16.msra.mxu0 %v5337_v52  ;;  %2086 = vmatpush1.bf16.msra.mxu1 %v5338_v33  ;;  %v5348_v52 = vld [vmem:[#allocation19_spill] sm:$0xff]  ;;  %v5349_v33 = vld [vmem:[#allocation20_spill] sm:$0xff] }
 0x5f2   :  { %2046 = vmatprep.subr.bf16.mxu0 %v5339_v54  ;;  %2087 = vmatprep.subr.bf16.mxu1 %v5340_v16  ;;  %v5350_v54 = vld [vmem:[#allocation21_spill] sm:$0xff]  ;;  %v5351_v16 = vld [vmem:[#allocation22_spill] sm:$0xff] }
 0x5f5   :  { %2047 = vmatpush1.bf16.msra.mxu0 %v5341_v60  ;;  %2088 = vmatpush1.bf16.msra.mxu1 %v5342_v36  ;;  %v5352_v60 = vld [vmem:[#allocation23_spill] sm:$0xff]  ;;  %v5353_v36 = vld [vmem:[#allocation24_spill] sm:$0xff] }
 0x5f6   :  { %2048 = vmatprep.subr.bf16.mxu0 %v5343_v14  ;;  %2089 = vmatprep.subr.bf16.mxu1 %v5344_v43  ;;  %v5354_v14 = vld [vmem:[#allocation25_spill] sm:$0xff]  ;;  %v5355_v43 = vld [vmem:[#allocation26_spill] sm:$0xff] }
 0x5f9   :  { %2049 = vmatpush1.bf16.msra.mxu0 %v5345_v0  ;;  %2090 = vmatpush1.bf16.msra.mxu1 %v5346_v53  ;;  %v5356_v0 = vld [vmem:[#allocation27_spill] sm:$0xff]  ;;  %v5357_v53 = vld [vmem:[#allocation28_spill] sm:$0xff] }
 0x5fa   :  { %2050 = vmatprep.subr.bf16.mxu0 %v5347_v38  ;;  %2091 = vmatprep.subr.bf16.mxu1 %v5348_v52  ;;  %v5358_v38 = vld [vmem:[#allocation29_spill] sm:$0xff]  ;;  %v5359_v52 = vld [vmem:[#allocation30_spill] sm:$0xff] }
 0x5fd   :  { %2051 = vmatpush1.bf16.msra.mxu0 %v5349_v33  ;;  %2092 = vmatpush1.bf16.msra.mxu1 %v5350_v54  ;;  %v5360_v33 = vld [vmem:[#allocation31_spill] sm:$0xff]  ;;  %v5361_v54 = vld [vmem:[#allocation32_spill] sm:$0xff] }
 0x5fe   :  { %2052 = vmatprep.subr.bf16.mxu0 %v5351_v16  ;;  %2093 = vmatprep.subr.bf16.mxu1 %v5352_v60  ;;  %v5362_v16 = vld [vmem:[#allocation33_spill] sm:$0xff]  ;;  %v5363_v60 = vld [vmem:[#allocation34_spill] sm:$0xff] }
 0x601   :  { %2053 = vmatpush1.bf16.msra.mxu0 %v5353_v36  ;;  %2094 = vmatpush1.bf16.msra.mxu1 %v5354_v14  ;;  %v5364_v36 = vld [vmem:[#allocation35_spill] sm:$0xff]  ;;  %v5365_v14 = vld [vmem:[#allocation36_spill] sm:$0xff] }
 0x602   :  { %2054 = vmatprep.subr.bf16.mxu0 %v5355_v43  ;;  %2095 = vmatprep.subr.bf16.mxu1 %v5356_v0  ;;  %v5366_v43 = vld [vmem:[#allocation37_spill] sm:$0xff]  ;;  %v5367_v0 = vld [vmem:[#allocation38_spill] sm:$0xff] }
 0x605   :  { %2055 = vmatpush1.bf16.msra.mxu0 %v5357_v53  ;;  %2096 = vmatpush1.bf16.msra.mxu1 %v5358_v38  ;;  %v5368_v53 = vld [vmem:[#allocation39_spill] sm:$0xff]  ;;  %v5369_v38 = vld [vmem:[#allocation40_spill] sm:$0xff] }
 0x606   :  { %2056 = vmatprep.subr.bf16.mxu0 %v5359_v52  ;;  %2097 = vmatprep.subr.bf16.mxu1 %v5360_v33  ;;  %v5370_v52 = vld [vmem:[#allocation41_spill] sm:$0xff]  ;;  %v5371_v33 = vld [vmem:[#allocation42_spill] sm:$0xff] }
 0x609   :  { %2057 = vmatpush1.bf16.msra.mxu0 %v5361_v54  ;;  %2098 = vmatpush1.bf16.msra.mxu1 %v5362_v16  ;;  %v5372_v54 = vld [vmem:[#allocation43_spill] sm:$0xff]  ;;  %v5373_v16 = vld [vmem:[#allocation44_spill] sm:$0xff] }
 0x60a   :  { %2058 = vmatprep.subr.bf16.mxu0 %v5363_v60  ;;  %2099 = vmatprep.subr.bf16.mxu1 %v5364_v36  ;;  %v5374_v60 = vld [vmem:[#allocation45_spill] sm:$0xff]  ;;  %v5375_v36 = vld [vmem:[#allocation46_spill] sm:$0xff] }
 0x60d   :  { %2059 = vmatpush1.bf16.msra.mxu0 %v5365_v14  ;;  %2100 = vmatpush1.bf16.msra.mxu1 %v5366_v43  ;;  %v5376_v14 = vld [vmem:[#allocation47_spill] sm:$0xff]  ;;  %v5377_v43 = vld [vmem:[#allocation48_spill] sm:$0xff] }
 0x60e   :  { %2060 = vmatprep.subr.bf16.mxu0 %v5367_v0  ;;  %2101 = vmatprep.subr.bf16.mxu1 %v5368_v53  ;;  %v5378_v0 = vld [vmem:[#allocation49_spill] sm:$0xff]  ;;  %v5379_v53 = vld [vmem:[#allocation50_spill] sm:$0xff] }
 0x611   :  { %2061 = vmatpush1.bf16.msra.mxu0 %v5369_v38  ;;  %2102 = vmatpush1.bf16.msra.mxu1 %v5370_v52  ;;  %v5380_v38 = vld [vmem:[#allocation52_spill] sm:$0xff]  ;;  %v5381_v52 = vld [vmem:[#allocation53_spill] sm:$0xff] }
 0x612   :  { %2062 = vmatprep.subr.bf16.mxu0 %v5371_v33  ;;  %2103 = vmatprep.subr.bf16.mxu1 %v5372_v54  ;;  %v5382_v33 = vld [vmem:[#allocation54_spill] sm:$0xff]  ;;  %v5383_v54 = vld [vmem:[#allocation55_spill] sm:$0xff] }
 0x615   :  { %2063 = vmatpush1.bf16.msra.mxu0 %v5373_v16  ;;  %2104 = vmatpush1.bf16.msra.mxu1 %v5374_v60  ;;  %v5384_v16 = vld [vmem:[#allocation56_spill] sm:$0xff]  ;;  %v5385_v60 = vld [vmem:[#allocation57_spill] sm:$0xff] }
 0x616   :  { %2064 = vmatprep.subr.bf16.mxu0 %v5375_v36  ;;  %2105 = vmatprep.subr.bf16.mxu1 %v5376_v14  ;;  %v5386_v36 = vld [vmem:[#allocation58_spill] sm:$0xff]  ;;  %v5387_v14 = vld [vmem:[#allocation59_spill] sm:$0xff] }
 0x619   :  { %2065 = vmatpush1.bf16.msra.mxu0 %v5377_v43  ;;  %2106 = vmatpush1.bf16.msra.mxu1 %v5378_v0  ;;  %v5388_v43 = vld [vmem:[#allocation60_spill] sm:$0xff]  ;;  %v5389_v0 = vld [vmem:[#allocation61_spill] sm:$0xff] }
 0x61a   :  { %2066 = vmatprep.subr.bf16.mxu0 %v5379_v53  ;;  %2107 = vmatprep.subr.bf16.mxu1 %v5380_v38  ;;  %v5390_v53 = vld [vmem:[#allocation62_spill] sm:$0xff]  ;;  %v5391_v38 = vld [vmem:[#allocation63_spill] sm:$0xff] }
 0x61d   :  { %2067 = vmatpush1.bf16.msra.mxu0 %v5381_v52  ;;  %2108 = vmatpush1.bf16.msra.mxu1 %v5382_v33  ;;  %v5392_v52 = vld [vmem:[#allocation64_spill] sm:$0xff]  ;;  %v5393_v33 = vld [vmem:[#allocation65_spill] sm:$0xff] }
 0x61e   :  { %2068 = vmatprep.subr.bf16.mxu0 %v5383_v54  ;;  %2109 = vmatprep.subr.bf16.mxu1 %v5384_v16  ;;  %v5394_v54 = vld [vmem:[#allocation66_spill] sm:$0xff]  ;;  %v5395_v16 = vld [vmem:[#allocation67_spill] sm:$0xff] }
 0x621   :  { %2069 = vmatpush1.bf16.msra.mxu0 %v5385_v60  ;;  %2110 = vmatpush1.bf16.msra.mxu1 %v5386_v36  ;;  %v5396_v60 = vld [vmem:[#allocation68_spill] sm:$0xff]  ;;  %v5397_v36 = vld [vmem:[#allocation69_spill] sm:$0xff] }
 0x622   :  { %2070 = vmatprep.subr.bf16.mxu0 %v5387_v14  ;;  %2111 = vmatprep.subr.bf16.mxu1 %v5388_v43  ;;  %v5398_v14 = vld [vmem:[#allocation70_spill] sm:$0xff]  ;;  %v5399_v43 = vld [vmem:[#allocation71_spill] sm:$0xff] }
 0x625   :  { %2071 = vmatpush1.bf16.msra.mxu0 %v5389_v0  ;;  %2112 = vmatpush1.bf16.msra.mxu1 %v5390_v53  ;;  %v5400_v0 = vld [vmem:[#allocation72_spill] sm:$0xff]  ;;  %v280_v53 = vpop.permute.xlu0 %279 }
 0x626   :  { %2072 = vmatprep.subr.bf16.mxu0 %v5391_v38  ;;  %2113 = vmatprep.subr.bf16.mxu1 %v5392_v52  ;;  %v5401_v38 = vld [vmem:[#allocation76_spill] sm:$0xff]  ;;  %v5402_v52 = vld [vmem:[#allocation77_spill] sm:$0xff] }
 0x627   :  { %v282_v31 = vmul.f32 %v280_v53, %v5401_v38  ;;  %v283_v17 = vmul.f32 %v280_v53, %v5402_v52 }
 0x629   :  { %2073 = vmatpush1.bf16.msra.mxu0 %v5393_v33  ;;  %2114 = vmatpush1.bf16.msra.mxu1 %v5394_v54  ;;  %v5403_v33 = vld [vmem:[#allocation80_spill] sm:$0xff]  ;;  %v5404_v54 = vld [vmem:[#allocation79_spill] sm:$0xff] }
 0x62a   :  { %2074 = vmatprep.subr.bf16.mxu0 %v5395_v16  ;;  %2115 = vmatprep.subr.bf16.mxu1 %v5396_v60  ;;  %v286_v28 = vadd.f32 %v282_v31, %v5403_v33  ;;  %v284_v27 = vmul.f32 %v280_v53, %v5404_v54  ;;  %v5405_v16 = vld [vmem:[#allocation81_spill] sm:$0xff] }
 0x62b   :  { %v287_v10 = vadd.f32 %v283_v17, %v5405_v16 }
 0x62d   :  { %2075 = vmatpush1.bf16.msra.mxu0 %v5397_v36  ;;  %2116 = vmatpush1.bf16.msra.mxu1 %v5398_v14  ;;  %v288_v14 = vadd.f32 %v284_v27, %v5406_v22 }
 0x62e   :  { %2126 = vmatprep.subr.bf16.mxu0 %v5399_v43  ;;  %2167 = vmatprep.subr.bf16.mxu1 %v5400_v0 }
 0x683   :  { %v1868_v60 = vpop.f32.mrb[32].mxu0  ;;  %v1909_v26 = vpop.f32.mrb[32].mxu1 }
 0x684   :  { %v1998_v36 = vadd.f32 %v1868_v60, %v286_v28  ;;  %v1870_v32 = vpop.f32.mrb[33].mxu0  ;;  %v1911_v43 = vpop.f32.mrb[33].mxu1  ;;  %v2000_v31 = vadd.f32 %v1909_v26, %v288_v14 }
 0x685   :  { %v1999_v24 = vadd.f32 %v1870_v32, %v287_v10  ;;  %v1872_v0 = vpop.f32.mrb[34].mxu0  ;;  %v1913_v21 = vpop.f32.mrb[34].mxu1 }
 0x686   :  { %v2002_v5 = vmul.f32 0.5, %v1998_v36  ;;  %v1873_v38 = vpop.f32.mrb[35].mxu0  ;;  %v1914_v46 = vpop.f32.mrb[35].mxu1  ;;  %v2940_v21 = vmov 6  }
 0x687   :  { %v2006_v52 = vmul.f32 0.5, %v1999_v24  ;;  %2742 = vset.pattern.permute.xlu1 %v2940_v21  ;;  %v285_v46 = vmul.f32 %v280_v53, %v5103_v20 }
 0x688   :  { %2835 = vtanh.f32 %v2002_v5  ;;  %291 = vperm.xlu1 %2742, %v4026_v44  }
 0x689   :  { %2837 = vtanh.f32 %v2006_v52  ;;  %v289_v0 = vadd.f32 %v285_v46, %v5005_v12 }
 0x68a   :  { %2839 = vtanh.f32 %v2000_v31 }
 0x68b   :  { %v2001_v53 = vadd.f32 %v1911_v43, %v289_v0 }
 0x692   :  { %v2836_v54 = vpop.eup %2835 }
 0x693   :  { %v2838_v17 = vpop.eup %2837  ;;  %v2004_v16 = vmul.f32 0.5, %v2836_v54 }
 0x694   :  { %v2008_v33 = vmul.f32 0.5, %v2838_v17  ;;  %v2840_v60 = vpop.eup %2839 }
 0x695   :  { %v2005_v28 = vadd.f32 0.5, %v2004_v16 }
 0x696   :  { %v2009_v27 = vadd.f32 0.5, %v2008_v33 }
 0x697   :  { %v2016_v22 = vmul.f32 %v2840_v60, %v2005_v28  ;;  %v2011_v28 = vmul.f32 0.5, %v2001_v53 }
 0x698   :  { %v2015_v32 = vmul.f32 %v2009_v27, %v4021_v29 }
 0x69a   :  { %v4181_v10 = vadd.f32 %v2016_v22, %v2015_v32 }
 0x6c3   :  { %v1950_v5 = vpop.f32.mrb[36].mxu0  ;;  %v1991_v24 = vpop.f32.mrb[36].mxu1 }
 0x6c4   :  { %v2020_v26 = vadd.f32 %v1950_v5, %v5204_v35  ;;  %v1952_v52 = vpop.f32.mrb[37].mxu0  ;;  %v1993_v54 = vpop.f32.mrb[37].mxu1  ;;  %v2022_v31 = vadd.f32 %v1991_v24, %v5105_v40 }
 0x6c5   :  { %v2021_v16 = vadd.f32 %v1952_v52, %v3552_v62  ;;  %v1954_v33 = vpop.f32.mrb[38].mxu0  ;;  %v1995_v36 = vpop.f32.mrb[38].mxu1  ;;  %v2023_v17 = vadd.f32 %v1993_v54, %v3563_v59 }
 0x6c6   :  { %v2024_v14 = vmul.f32 0.5, %v2020_v26  ;;  %v1955_v29 = vpop.f32.mrb[39].mxu0  ;;  %v1996_v22 = vpop.f32.mrb[39].mxu1 }
 0x6c7   :  { %v2028_v38 = vmul.f32 0.5, %v2021_v16  ;;  %v2033_v60 = vmul.f32 0.5, %v2023_v17 }
 0x6c8   :  { %2841 = vtanh.f32 %v2024_v14 }
 0x6c9   :  { %2843 = vtanh.f32 %v2028_v38 }
 0x6ca   :  { %2845 = vtanh.f32 %v2022_v31 }
 0x6cb   :  { %2847 = vtanh.f32 %v2011_v28 }
 0x6cc   :  { %2849 = vtanh.f32 %v2033_v60  ;;  %v5408_v60 = vld [vmem:[#allocation117_spill] sm:$0xff] }
 0x6cd   :  { %2851 = vtanh.f32 %v4181_v10 }
 0x6d2   :  { %v2842_v27 = vpop.eup %2841 }
 0x6d3   :  { %v2844_v32 = vpop.eup %2843  ;;  %v2026_v21 = vmul.f32 0.5, %v2842_v27  ;;  %v5409_v27 = vld [vmem:[#allocation118_spill] sm:$0xff] }
 0x6d4   :  { %v2030_v5 = vmul.f32 0.5, %v2844_v32  ;;  %v2846_v52 = vpop.eup %2845  ;;  %v5410_v32 = vld [vmem:[#allocation119_spill] sm:$0xff] }
 0x6d5   :  { %v2027_v26 = vadd.f32 0.5, %v2026_v21  ;;  %v2848_v24 = vpop.eup %2847  ;;  %v5411_v21 = vld [vmem:[#allocation120_spill] sm:$0xff] }
 0x6d6   :  { %v2031_v46 = vadd.f32 0.5, %v2030_v5  ;;  %v2850_v54 = vpop.eup %2849  ;;  %v2013_v36 = vmul.f32 0.5, %v2848_v24  ;;  %v5412_v5 = vld [vmem:[#allocation121_spill] sm:$0xff]  ;;  %v5418_v24 = vld [vmem:[#allocation127_spill] sm:$0xff] }
 0x6d7   :  { %v2038_v16 = vmul.f32 %v2846_v52, %v2027_v26  ;;  %v2035_v14 = vmul.f32 0.5, %v2850_v54  ;;  %v2852_v29 = vpop.eup %2851  ;;  %v5413_v26 = vld [vmem:[#allocation122_spill] sm:$0xff]  ;;  %v5414_v52 = vld [vmem:[#allocation123_spill] sm:$0xff]  ;;  %v5419_v54 = vld [vmem:[#allocation128_spill] sm:$0xff] }
 0x6d8   :  { %v2037_v33 = vmul.f32 %v2031_v46, %v4037_v41  ;;  %v2014_v22 = vadd.f32 0.5, %v2013_v36  ;;  %v5407_v41 = vld [vmem:[#allocation116_spill] sm:$0xff]  ;;  %v5420_v36 = vld [vmem:[#allocation129_spill] sm:$0xff] }
 0x6d9   :  { %v2036_v0 = vadd.f32 0.5, %v2035_v14  ;;  %v5415_v46 = vld [vmem:[#allocation124_spill] sm:$0xff]  ;;  %v5421_v14 = vld [vmem:[#allocation130_spill] sm:$0xff] }
 0x6da   :  { %v4192_v43 = vadd.f32 %v2038_v16, %v2037_v33  ;;  %v2019_v31 = vmul.f32 %v2852_v29, %v2014_v22  ;;  %v5416_v16 = vld [vmem:[#allocation125_spill] sm:$0xff]  ;;  %v5417_v33 = vld [vmem:[#allocation126_spill] sm:$0xff]  ;;  %v5422_v29 = vld [vmem:[#allocation131_spill] sm:$0xff] }
 0x6db   :  { %v5423_v22 = vld [vmem:[#allocation132_spill] sm:$0xff] }
 0x6dc   :  { %2853 = vtanh.f32 %v4192_v43  ;;  %v4195_v28 = vpack.c.bf16 %v2019_v31, %v2019_v31  ;;  %v5426_v31 = vld [vmem:[#allocation135_spill] sm:$0xff] }
 0x6e6   :  { %v2854_v38 = vpop.eup %2853 }
 0x6e7   :  { %v2041_v53 = vmul.f32 %v2854_v38, %v2036_v0  ;;  %v5424_v0 = vld [vmem:[#allocation133_spill] sm:$0xff]  ;;  %v5425_v38 = vld [vmem:[#allocation134_spill] sm:$0xff] }
 0x6e9   :  { %v2043_v17 = vpack.c.bf16 %v2041_v53, %v2041_v53  ;;  %v5427_v53 = vld [vmem:[#allocation136_spill] sm:$0xff] }
 0x6eb   :  { %2076 = vmatprep.mubr.bf16.mxu0 %v2043_v17  ;;  %2117 = vmatprep.mubr.bf16.mxu1 %v2043_v17 }
 0x6ec   :  { %2077 = vmatmul.mubr.bf16.vlgmr.msra.gmra.mrb[40].mxu0 %v4195_v28  ;;  %2118 = vmatmul.mubr.bf16.vlgmr.msra.gmra.mrb[40].mxu1 %v4195_v28 }
 0x6ed   :  { %2127 = vmatpush1.bf16.msra.mxu0 %v3147_v7  ;;  %2168 = vmatpush1.bf16.msra.mxu1 %v5008_v4 }
 0x6ee   :  { %2158 = vmatprep.mubr.bf16.mxu0 %v2043_v17  ;;  %2199 = vmatprep.mubr.bf16.mxu1 %v2043_v17  ;;  %v5428_v17 = vld [vmem:[#allocation137_spill] sm:$0xff] }
 0x6ef   :  { %2128 = vmatprep.subr.bf16.mxu0 %v5009_v13  ;;  %2169 = vmatprep.subr.bf16.mxu1 %v5010_v9 }
 0x6f1   :  { %2129 = vmatpush1.bf16.msra.mxu0 %v5011_v49  ;;  %2170 = vmatpush1.bf16.msra.mxu1 %v5012_v3 }
 0x6f2   :  { %2130 = vmatprep.subr.bf16.mxu0 %v5013_v58  ;;  %2171 = vmatprep.subr.bf16.mxu1 %v5014_v19 }
 0x6f5   :  { %2131 = vmatpush1.bf16.msra.mxu0 %v5106_v63  ;;  %2172 = vmatpush1.bf16.msra.mxu1 %v5107_v56 }
 0x6f6   :  { %2132 = vmatprep.subr.bf16.mxu0 %v5108_v48  ;;  %2173 = vmatprep.subr.bf16.mxu1 %v5109_v51 }
 0x6f9   :  { %2133 = vmatpush1.bf16.msra.mxu0 %v5110_v25  ;;  %2174 = vmatpush1.bf16.msra.mxu1 %v5111_v23 }
 0x6fa   :  { %2134 = vmatprep.subr.bf16.mxu0 %v5112_v61  ;;  %2175 = vmatprep.subr.bf16.mxu1 %v5113_v39 }
 0x6fd   :  { %2135 = vmatpush1.bf16.msra.mxu0 %v5205_v47  ;;  %2176 = vmatpush1.bf16.msra.mxu1 %v5206_v50 }
 0x6fe   :  { %2136 = vmatprep.subr.bf16.mxu0 %v5207_v42  ;;  %2177 = vmatprep.subr.bf16.mxu1 %v5208_v2 }
 0x701   :  { %2137 = vmatpush1.bf16.msra.mxu0 %v5209_v57  ;;  %2178 = vmatpush1.bf16.msra.mxu1 %v5210_v8 }
 0x702   :  { %2138 = vmatprep.subr.bf16.mxu0 %v5211_v34  ;;  %2179 = vmatprep.subr.bf16.mxu1 %v5212_v15 }
 0x705   :  { %2139 = vmatpush1.bf16.msra.mxu0 %v5213_v18  ;;  %2180 = vmatpush1.bf16.msra.mxu1 %v5214_v6 }
 0x706   :  { %2140 = vmatprep.subr.bf16.mxu0 %v5124_v30  ;;  %2181 = vmatprep.subr.bf16.mxu1 %v5125_v45 }
 0x709   :  { %2141 = vmatpush1.bf16.msra.mxu0 %v5126_v55  ;;  %2182 = vmatpush1.bf16.msra.mxu1 %v5215_v11 }
 0x70a   :  { %2142 = vmatprep.subr.bf16.mxu0 %v5216_v1  ;;  %2183 = vmatprep.subr.bf16.mxu1 %v5129_v37 }
 0x70d   :  { %2143 = vmatpush1.bf16.msra.mxu0 %v5407_v41  ;;  %2184 = vmatpush1.bf16.msra.mxu1 %v5408_v60 }
 0x70e   :  { %2144 = vmatprep.subr.bf16.mxu0 %v5409_v27  ;;  %2185 = vmatprep.subr.bf16.mxu1 %v5410_v32 }
 0x711   :  { %2145 = vmatpush1.bf16.msra.mxu0 %v5411_v21  ;;  %2186 = vmatpush1.bf16.msra.mxu1 %v5412_v5  ;;  %v5508_v5 = vld [vmem:[#allocation83_spill] sm:$0xff] }
 0x712   :  { %2146 = vmatprep.subr.bf16.mxu0 %v5413_v26  ;;  %2187 = vmatprep.subr.bf16.mxu1 %v5414_v52 }
 0x715   :  { %2147 = vmatpush1.bf16.msra.mxu0 %v5415_v46  ;;  %2188 = vmatpush1.bf16.msra.mxu1 %v5416_v16 }
 0x716   :  { %2148 = vmatprep.subr.bf16.mxu0 %v5417_v33  ;;  %2189 = vmatprep.subr.bf16.mxu1 %v5418_v24  ;;  %v5429_v24 = vld [vmem:[#allocation138_spill] sm:$0xff] }
 0x719   :  { %2149 = vmatpush1.bf16.msra.mxu0 %v5419_v54  ;;  %2190 = vmatpush1.bf16.msra.mxu1 %v5420_v36  ;;  %v5430_v54 = vld [vmem:[#allocation139_spill] sm:$0xff]  ;;  %v5431_v36 = vld [vmem:[#allocation140_spill] sm:$0xff] }
 0x71a   :  { %2150 = vmatprep.subr.bf16.mxu0 %v5421_v14  ;;  %2191 = vmatprep.subr.bf16.mxu1 %v5422_v29  ;;  %v5432_v14 = vld [vmem:[#allocation141_spill] sm:$0xff]  ;;  %v5433_v29 = vld [vmem:[#allocation142_spill] sm:$0xff] }
 0x71d   :  { %2151 = vmatpush1.bf16.msra.mxu0 %v5423_v22  ;;  %2192 = vmatpush1.bf16.msra.mxu1 %v5424_v0  ;;  %v5434_v22 = vld [vmem:[#allocation143_spill] sm:$0xff]  ;;  %v5435_v0 = vld [vmem:[#allocation144_spill] sm:$0xff] }
 0x71e   :  { %2152 = vmatprep.subr.bf16.mxu0 %v5425_v38  ;;  %2193 = vmatprep.subr.bf16.mxu1 %v5426_v31  ;;  %v5436_v38 = vld [vmem:[#allocation145_spill] sm:$0xff]  ;;  %v5437_v31 = vld [vmem:[#allocation6_spill] sm:$0xff] }
 0x721   :  { %2153 = vmatpush1.bf16.msra.mxu0 %v5427_v53  ;;  %2194 = vmatpush1.bf16.msra.mxu1 %v5428_v17  ;;  %v5438_v53 = vld [vmem:[#allocation8_spill] sm:$0xff] }
 0x722   :  { %2154 = vmatprep.subr.bf16.mxu0 %v5429_v24  ;;  %2195 = vmatprep.subr.bf16.mxu1 %v5430_v54  ;;  %v5439_v54 = vld [vmem:[#allocation7_spill] sm:$0xff]  ;;  %v5448_v24 = vld [vmem:[#allocation17_spill] sm:$0xff] }
 0x725   :  { %2155 = vmatpush1.bf16.msra.mxu0 %v5431_v36  ;;  %2196 = vmatpush1.bf16.msra.mxu1 %v5432_v14  ;;  %v5440_v36 = vld [vmem:[#allocation9_spill] sm:$0xff]  ;;  %v5441_v14 = vld [vmem:[#allocation10_spill] sm:$0xff] }
 0x726   :  { %2156 = vmatprep.subr.bf16.mxu0 %v5433_v29  ;;  %2197 = vmatprep.subr.bf16.mxu1 %v5434_v22  ;;  %v5442_v29 = vld [vmem:[#allocation11_spill] sm:$0xff]  ;;  %v5443_v22 = vld [vmem:[#allocation12_spill] sm:$0xff] }
 0x729   :  { %2157 = vmatpush1.bf16.msra.mxu0 %v5435_v0  ;;  %2198 = vmatpush1.bf16.msra.mxu1 %v5436_v38  ;;  %v5444_v0 = vld [vmem:[#allocation13_spill] sm:$0xff]  ;;  %v5445_v38 = vld [vmem:[#allocation14_spill] sm:$0xff] }
 0x72a   :  { %2254 = vmatprep.subr.bf16.mxu0 %v5437_v31  ;;  %2295 = vmatprep.subr.bf16.mxu1 %v5438_v53  ;;  %v5446_v31 = vld [vmem:[#allocation15_spill] sm:$0xff]  ;;  %v5447_v53 = vld [vmem:[#allocation16_spill] sm:$0xff] }
 0x72c   :  { %2159 = vmatmul.mubr.bf16.vlgmr.msra.gmra.mrb[44].mxu0 %v4195_v28  ;;  %2200 = vmatmul.mubr.bf16.vlgmr.msra.gmra.mrb[44].mxu1 %v4195_v28  ;;  %v5449_v28 = vld [vmem:[#allocation18_spill] sm:$0xff] }
 0x72d   :  { %2255 = vmatpush1.bf16.msra.mxu0 %v5439_v54  ;;  %2296 = vmatpush1.bf16.msra.mxu1 %v5440_v36  ;;  %v5450_v54 = vld [vmem:[#allocation19_spill] sm:$0xff]  ;;  %v5451_v36 = vld [vmem:[#allocation20_spill] sm:$0xff] }
 0x72e   :  { %2256 = vmatprep.subr.bf16.mxu0 %v5441_v14  ;;  %2297 = vmatprep.subr.bf16.mxu1 %v5442_v29  ;;  %v5452_v14 = vld [vmem:[#allocation21_spill] sm:$0xff]  ;;  %v5453_v29 = vld [vmem:[#allocation22_spill] sm:$0xff] }
 0x731   :  { %2257 = vmatpush1.bf16.msra.mxu0 %v5443_v22  ;;  %2298 = vmatpush1.bf16.msra.mxu1 %v5444_v0  ;;  %v5454_v22 = vld [vmem:[#allocation23_spill] sm:$0xff]  ;;  %v5455_v0 = vld [vmem:[#allocation24_spill] sm:$0xff] }
 0x732   :  { %2258 = vmatprep.subr.bf16.mxu0 %v5445_v38  ;;  %2299 = vmatprep.subr.bf16.mxu1 %v5446_v31  ;;  %v5456_v38 = vld [vmem:[#allocation25_spill] sm:$0xff]  ;;  %v5457_v31 = vld [vmem:[#allocation26_spill] sm:$0xff] }
 0x735   :  { %2259 = vmatpush1.bf16.msra.mxu0 %v5447_v53  ;;  %2300 = vmatpush1.bf16.msra.mxu1 %v5448_v24  ;;  %v5458_v53 = vld [vmem:[#allocation27_spill] sm:$0xff]  ;;  %v5459_v24 = vld [vmem:[#allocation28_spill] sm:$0xff] }
 0x736   :  { %2260 = vmatprep.subr.bf16.mxu0 %v5449_v28  ;;  %2301 = vmatprep.subr.bf16.mxu1 %v5450_v54  ;;  %v5460_v28 = vld [vmem:[#allocation29_spill] sm:$0xff]  ;;  %v5461_v54 = vld [vmem:[#allocation30_spill] sm:$0xff] }
 0x739   :  { %2261 = vmatpush1.bf16.msra.mxu0 %v5451_v36  ;;  %2302 = vmatpush1.bf16.msra.mxu1 %v5452_v14  ;;  %v5462_v36 = vld [vmem:[#allocation31_spill] sm:$0xff]  ;;  %v5463_v14 = vld [vmem:[#allocation32_spill] sm:$0xff] }
 0x73a   :  { %2262 = vmatprep.subr.bf16.mxu0 %v5453_v29  ;;  %2303 = vmatprep.subr.bf16.mxu1 %v5454_v22  ;;  %v5464_v29 = vld [vmem:[#allocation33_spill] sm:$0xff]  ;;  %v5465_v22 = vld [vmem:[#allocation34_spill] sm:$0xff] }
 0x73d   :  { %2263 = vmatpush1.bf16.msra.mxu0 %v5455_v0  ;;  %2304 = vmatpush1.bf16.msra.mxu1 %v5456_v38  ;;  %v5466_v0 = vld [vmem:[#allocation35_spill] sm:$0xff]  ;;  %v5467_v38 = vld [vmem:[#allocation36_spill] sm:$0xff] }
 0x73e   :  { %2264 = vmatprep.subr.bf16.mxu0 %v5457_v31  ;;  %2305 = vmatprep.subr.bf16.mxu1 %v5458_v53  ;;  %v5468_v31 = vld [vmem:[#allocation37_spill] sm:$0xff]  ;;  %v5469_v53 = vld [vmem:[#allocation38_spill] sm:$0xff] }
 0x741   :  { %2265 = vmatpush1.bf16.msra.mxu0 %v5459_v24  ;;  %2306 = vmatpush1.bf16.msra.mxu1 %v5460_v28  ;;  %v5470_v24 = vld [vmem:[#allocation39_spill] sm:$0xff]  ;;  %v5471_v28 = vld [vmem:[#allocation40_spill] sm:$0xff] }
 0x742   :  { %2266 = vmatprep.subr.bf16.mxu0 %v5461_v54  ;;  %2307 = vmatprep.subr.bf16.mxu1 %v5462_v36  ;;  %v5472_v54 = vld [vmem:[#allocation41_spill] sm:$0xff]  ;;  %v5473_v36 = vld [vmem:[#allocation42_spill] sm:$0xff] }
 0x745   :  { %2267 = vmatpush1.bf16.msra.mxu0 %v5463_v14  ;;  %2308 = vmatpush1.bf16.msra.mxu1 %v5464_v29  ;;  %v5474_v14 = vld [vmem:[#allocation43_spill] sm:$0xff]  ;;  %v5475_v29 = vld [vmem:[#allocation44_spill] sm:$0xff] }
 0x746   :  { %2268 = vmatprep.subr.bf16.mxu0 %v5465_v22  ;;  %2309 = vmatprep.subr.bf16.mxu1 %v5466_v0  ;;  %v5476_v22 = vld [vmem:[#allocation45_spill] sm:$0xff]  ;;  %v5477_v0 = vld [vmem:[#allocation46_spill] sm:$0xff] }
 0x749   :  { %2269 = vmatpush1.bf16.msra.mxu0 %v5467_v38  ;;  %2310 = vmatpush1.bf16.msra.mxu1 %v5468_v31  ;;  %v5478_v38 = vld [vmem:[#allocation47_spill] sm:$0xff]  ;;  %v5479_v31 = vld [vmem:[#allocation48_spill] sm:$0xff] }
 0x74a   :  { %2270 = vmatprep.subr.bf16.mxu0 %v5469_v53  ;;  %2311 = vmatprep.subr.bf16.mxu1 %v5470_v24  ;;  %v5480_v53 = vld [vmem:[#allocation49_spill] sm:$0xff]  ;;  %v5481_v24 = vld [vmem:[#allocation50_spill] sm:$0xff] }
 0x74d   :  { %2271 = vmatpush1.bf16.msra.mxu0 %v5471_v28  ;;  %2312 = vmatpush1.bf16.msra.mxu1 %v5472_v54  ;;  %v5482_v28 = vld [vmem:[#allocation52_spill] sm:$0xff]  ;;  %v5483_v54 = vld [vmem:[#allocation53_spill] sm:$0xff] }
 0x74e   :  { %2272 = vmatprep.subr.bf16.mxu0 %v5473_v36  ;;  %2313 = vmatprep.subr.bf16.mxu1 %v5474_v14  ;;  %v5484_v36 = vld [vmem:[#allocation54_spill] sm:$0xff]  ;;  %v5485_v14 = vld [vmem:[#allocation55_spill] sm:$0xff] }
 0x751   :  { %2273 = vmatpush1.bf16.msra.mxu0 %v5475_v29  ;;  %2314 = vmatpush1.bf16.msra.mxu1 %v5476_v22  ;;  %v5486_v29 = vld [vmem:[#allocation56_spill] sm:$0xff]  ;;  %v5487_v22 = vld [vmem:[#allocation57_spill] sm:$0xff] }
 0x752   :  { %2274 = vmatprep.subr.bf16.mxu0 %v5477_v0  ;;  %2315 = vmatprep.subr.bf16.mxu1 %v5478_v38  ;;  %v5488_v0 = vld [vmem:[#allocation58_spill] sm:$0xff]  ;;  %v5489_v38 = vld [vmem:[#allocation59_spill] sm:$0xff] }
 0x755   :  { %2275 = vmatpush1.bf16.msra.mxu0 %v5479_v31  ;;  %2316 = vmatpush1.bf16.msra.mxu1 %v5480_v53  ;;  %v5490_v31 = vld [vmem:[#allocation60_spill] sm:$0xff]  ;;  %v5491_v53 = vld [vmem:[#allocation61_spill] sm:$0xff] }
 0x756   :  { %2276 = vmatprep.subr.bf16.mxu0 %v5481_v24  ;;  %2317 = vmatprep.subr.bf16.mxu1 %v5482_v28  ;;  %v5492_v24 = vld [vmem:[#allocation62_spill] sm:$0xff]  ;;  %v5493_v28 = vld [vmem:[#allocation63_spill] sm:$0xff] }
 0x759   :  { %2277 = vmatpush1.bf16.msra.mxu0 %v5483_v54  ;;  %2318 = vmatpush1.bf16.msra.mxu1 %v5484_v36  ;;  %v5494_v54 = vld [vmem:[#allocation64_spill] sm:$0xff]  ;;  %v5495_v36 = vld [vmem:[#allocation65_spill] sm:$0xff] }
 0x75a   :  { %2278 = vmatprep.subr.bf16.mxu0 %v5485_v14  ;;  %2319 = vmatprep.subr.bf16.mxu1 %v5486_v29  ;;  %v5496_v14 = vld [vmem:[#allocation66_spill] sm:$0xff]  ;;  %v5497_v29 = vld [vmem:[#allocation67_spill] sm:$0xff] }
 0x75d   :  { %2279 = vmatpush1.bf16.msra.mxu0 %v5487_v22  ;;  %2320 = vmatpush1.bf16.msra.mxu1 %v5488_v0  ;;  %v5498_v22 = vld [vmem:[#allocation68_spill] sm:$0xff]  ;;  %v5499_v0 = vld [vmem:[#allocation69_spill] sm:$0xff] }
 0x75e   :  { %2280 = vmatprep.subr.bf16.mxu0 %v5489_v38  ;;  %2321 = vmatprep.subr.bf16.mxu1 %v5490_v31  ;;  %v5500_v38 = vld [vmem:[#allocation70_spill] sm:$0xff]  ;;  %v5501_v31 = vld [vmem:[#allocation71_spill] sm:$0xff] }
 0x761   :  { %2281 = vmatpush1.bf16.msra.mxu0 %v5491_v53  ;;  %2322 = vmatpush1.bf16.msra.mxu1 %v5492_v24  ;;  %v5502_v53 = vld [vmem:[#allocation72_spill] sm:$0xff]  ;;  %v292_v24 = vpop.permute.xlu1 %291 }
 0x762   :  { %2282 = vmatprep.subr.bf16.mxu0 %v5493_v28  ;;  %2323 = vmatprep.subr.bf16.mxu1 %v5494_v54  ;;  %v5503_v28 = vld [vmem:[#allocation76_spill] sm:$0xff]  ;;  %v5504_v54 = vld [vmem:[#allocation77_spill] sm:$0xff] }
 0x763   :  { %v294_v17 = vmul.f32 %v292_v24, %v5503_v28  ;;  %v295_v33 = vmul.f32 %v292_v24, %v5504_v54 }
 0x765   :  { %2283 = vmatpush1.bf16.msra.mxu0 %v5495_v36  ;;  %2324 = vmatpush1.bf16.msra.mxu1 %v5496_v14  ;;  %v5505_v36 = vld [vmem:[#allocation80_spill] sm:$0xff]  ;;  %v5506_v14 = vld [vmem:[#allocation79_spill] sm:$0xff] }
 0x766   :  { %2284 = vmatprep.subr.bf16.mxu0 %v5497_v29  ;;  %2325 = vmatprep.subr.bf16.mxu1 %v5498_v22  ;;  %v298_v16 = vadd.f32 %v294_v17, %v5505_v36  ;;  %v296_v46 = vmul.f32 %v292_v24, %v5506_v14  ;;  %v5507_v29 = vld [vmem:[#allocation81_spill] sm:$0xff] }
 0x767   :  { %v299_v52 = vadd.f32 %v295_v33, %v5507_v29 }
 0x769   :  { %2285 = vmatpush1.bf16.msra.mxu0 %v5499_v0  ;;  %2326 = vmatpush1.bf16.msra.mxu1 %v5500_v38  ;;  %v300_v38 = vadd.f32 %v296_v46, %v5508_v5 }
 0x76a   :  { %2336 = vmatprep.subr.bf16.mxu0 %v5501_v31  ;;  %2377 = vmatprep.subr.bf16.mxu1 %v5502_v53 }
 0x7bf   :  { %v2078_v22 = vpop.f32.mrb[40].mxu0  ;;  %v2119_v26 = vpop.f32.mrb[40].mxu1 }
 0x7c0   :  { %v2208_v0 = vadd.f32 %v2078_v22, %v298_v16  ;;  %v2080_v21 = vpop.f32.mrb[41].mxu0  ;;  %v2121_v31 = vpop.f32.mrb[41].mxu1  ;;  %v2210_v17 = vadd.f32 %v2119_v26, %v300_v38 }
 0x7c1   :  { %v2209_v32 = vadd.f32 %v2080_v21, %v299_v52  ;;  %v2082_v53 = vpop.f32.mrb[42].mxu0  ;;  %v2123_v27 = vpop.f32.mrb[42].mxu1 }
 0x7c2   :  { %v2212_v60 = vmul.f32 0.5, %v2208_v0  ;;  %v2083_v28 = vpop.f32.mrb[43].mxu0  ;;  %v2124_v41 = vpop.f32.mrb[43].mxu1  ;;  %v2941_v27 = vmov 7  }
 0x7c3   :  { %v2216_v54 = vmul.f32 0.5, %v2209_v32  ;;  %2743 = vset.pattern.permute.xlu1 %v2941_v27  ;;  %2744 = vset.pattern.permute.xlu0 %v2941_v27  ;;  %v297_v41 = vmul.f32 %v292_v24, %v5103_v20  ;;  %v5541_v20 = vld [vmem:[#allocation71_spill] sm:$0xff] }
 0x7c4   :  { %2855 = vtanh.f32 %v2212_v60  ;;  %303 = vperm.xlu1 %2743, %v4026_v44  }
 0x7c5   :  { %2857 = vtanh.f32 %v2216_v54  ;;  %v301_v0 = vadd.f32 %v297_v41, %v5005_v12  ;;  %v5540_v12 = vld [vmem:[#allocation145_spill] sm:$0xff] }
 0x7c6   :  { %2859 = vtanh.f32 %v2210_v17 }
 0x7c7   :  { %v2211_v24 = vadd.f32 %v2121_v31, %v301_v0 }
 0x7ce   :  { %v2856_v36 = vpop.eup %2855 }
 0x7cf   :  { %v2858_v33 = vpop.eup %2857  ;;  %v2214_v29 = vmul.f32 0.5, %v2856_v36 }
 0x7d0   :  { %v2218_v14 = vmul.f32 0.5, %v2858_v33  ;;  %v2860_v22 = vpop.eup %2859  ;;  %v2221_v33 = vmul.f32 0.5, %v2211_v24 }
 0x7d1   :  { %v2215_v16 = vadd.f32 0.5, %v2214_v29 }
 0x7d2   :  { %v2219_v46 = vadd.f32 0.5, %v2218_v14 }
 0x7d3   :  { %v2226_v5 = vmul.f32 %v2860_v22, %v2215_v16 }
 0x7d4   :  { %v2225_v21 = vmul.f32 %v2219_v46, %v4181_v10 }
 0x7d6   :  { %v4336_v52 = vadd.f32 %v2226_v5, %v2225_v21 }
 0x7d8   :  { %5509 = vst [vmem:[#allocation51_spill] sm:$0xff] %v4336_v52 }
 0x7ff   :  { %v2160_v60 = vpop.f32.mrb[44].mxu0  ;;  %v2201_v32 = vpop.f32.mrb[44].mxu1 }
 0x800   :  { %v2230_v26 = vadd.f32 %v2160_v60, %v5204_v35  ;;  %v2162_v53 = vpop.f32.mrb[45].mxu0  ;;  %v2203_v28 = vpop.f32.mrb[45].mxu1  ;;  %v2232_v44 = vadd.f32 %v2201_v32, %v5105_v40  ;;  %v5536_v40 = vld [vmem:[#allocation141_spill] sm:$0xff]  ;;  %v5538_v35 = vld [vmem:[#allocation143_spill] sm:$0xff] }
 0x801   :  { %v2231_v54 = vadd.f32 %v2162_v53, %v3552_v62  ;;  %v2164_v36 = vpop.f32.mrb[46].mxu0  ;;  %v2205_v14 = vpop.f32.mrb[46].mxu1  ;;  %v2233_v17 = vadd.f32 %v2203_v28, %v3563_v59  ;;  %v5535_v59 = vld [vmem:[#allocation140_spill] sm:$0xff]  ;;  %v5537_v62 = vld [vmem:[#allocation142_spill] sm:$0xff] }
 0x802   :  { %v2234_v10 = vmul.f32 0.5, %v2230_v26  ;;  %v2165_v5 = vpop.f32.mrb[47].mxu0  ;;  %v2206_v29 = vpop.f32.mrb[47].mxu1 }
 0x803   :  { %v2238_v38 = vmul.f32 0.5, %v2231_v54  ;;  %v2243_v16 = vmul.f32 0.5, %v2233_v17 }
 0x804   :  { %2861 = vtanh.f32 %v2234_v10 }
 0x805   :  { %2863 = vtanh.f32 %v2238_v38 }
 0x806   :  { %2865 = vtanh.f32 %v2232_v44 }
 0x807   :  { %2867 = vtanh.f32 %v2221_v33  ;;  %v5512_v33 = vld [vmem:[#allocation117_spill] sm:$0xff] }
 0x808   :  { %2869 = vtanh.f32 %v2243_v16  ;;  %v5513_v16 = vld [vmem:[#allocation118_spill] sm:$0xff] }
 0x809   :  { %2871 = vtanh.f32 %v4336_v52  ;;  %v5539_v52 = vld [vmem:[#allocation144_spill] sm:$0xff] }
 0x80e   :  { %v2862_v22 = vpop.eup %2861 }
 0x80f   :  { %v2864_v46 = vpop.eup %2863  ;;  %v2236_v21 = vmul.f32 0.5, %v2862_v22  ;;  %v5514_v22 = vld [vmem:[#allocation119_spill] sm:$0xff] }
 0x810   :  { %v2240_v27 = vmul.f32 0.5, %v2864_v46  ;;  %v2866_v26 = vpop.eup %2865  ;;  %v5515_v46 = vld [vmem:[#allocation120_spill] sm:$0xff] }
 0x811   :  { %v2237_v60 = vadd.f32 0.5, %v2236_v21  ;;  %v2868_v32 = vpop.eup %2867  ;;  %v5516_v21 = vld [vmem:[#allocation121_spill] sm:$0xff] }
 0x812   :  { %v2241_v41 = vadd.f32 0.5, %v2240_v27  ;;  %v2870_v28 = vpop.eup %2869  ;;  %v2223_v36 = vmul.f32 0.5, %v2868_v32  ;;  %v5517_v27 = vld [vmem:[#allocation122_spill] sm:$0xff]  ;;  %v5523_v32 = vld [vmem:[#allocation128_spill] sm:$0xff] }
 0x813   :  { %v2248_v53 = vmul.f32 %v2866_v26, %v2237_v60  ;;  %v2245_v14 = vmul.f32 0.5, %v2870_v28  ;;  %v2872_v10 = vpop.eup %2871  ;;  %v5518_v60 = vld [vmem:[#allocation123_spill] sm:$0xff]  ;;  %v5519_v26 = vld [vmem:[#allocation124_spill] sm:$0xff]  ;;  %v5524_v28 = vld [vmem:[#allocation129_spill] sm:$0xff] }
 0x814   :  { %v2247_v54 = vmul.f32 %v2241_v41, %v4192_v43  ;;  %v2224_v5 = vadd.f32 0.5, %v2223_v36  ;;  %v5511_v43 = vld [vmem:[#allocation116_spill] sm:$0xff]  ;;  %v5520_v41 = vld [vmem:[#allocation125_spill] sm:$0xff]  ;;  %v5525_v36 = vld [vmem:[#allocation130_spill] sm:$0xff] }
 0x815   :  { %v2246_v29 = vadd.f32 0.5, %v2245_v14  ;;  %v5526_v14 = vld [vmem:[#allocation131_spill] sm:$0xff] }
 0x816   :  { %v4347_v31 = vadd.f32 %v2248_v53, %v2247_v54  ;;  %v2229_v38 = vmul.f32 %v2872_v10, %v2224_v5  ;;  %v5521_v53 = vld [vmem:[#allocation126_spill] sm:$0xff]  ;;  %v5522_v54 = vld [vmem:[#allocation127_spill] sm:$0xff]  ;;  %v5527_v10 = vld [vmem:[#allocation132_spill] sm:$0xff] }
 0x817   :  { %v5528_v5 = vld [vmem:[#allocation133_spill] sm:$0xff] }
 0x818   :  { %5510 = vst [vmem:[#allocation86_spill] sm:$0xff] %v4347_v31  ;;  %2873 = vtanh.f32 %v4347_v31  ;;  %v4350_v17 = vpack.c.bf16 %v2229_v38, %v2229_v38  ;;  %v5531_v38 = vld [vmem:[#allocation136_spill] sm:$0xff]  ;;  %v5534_v31 = vld [vmem:[#allocation139_spill] sm:$0xff] }
 0x822   :  { %v2874_v0 = vpop.eup %2873 }
 0x823   :  { %v2251_v44 = vmul.f32 %v2874_v0, %v2246_v29  ;;  %v5529_v29 = vld [vmem:[#allocation134_spill] sm:$0xff]  ;;  %v5530_v0 = vld [vmem:[#allocation135_spill] sm:$0xff] }
 0x825   :  { %v2253_v24 = vpack.c.bf16 %v2251_v44, %v2251_v44  ;;  %v5532_v44 = vld [vmem:[#allocation137_spill] sm:$0xff] }
 0x827   :  { %2286 = vmatprep.mubr.bf16.mxu0 %v2253_v24  ;;  %2327 = vmatprep.mubr.bf16.mxu1 %v2253_v24 }
 0x828   :  { %2287 = vmatmul.mubr.bf16.vlgmr.msra.gmra.mrb[48].mxu0 %v4350_v17  ;;  %2328 = vmatmul.mubr.bf16.vlgmr.msra.gmra.mrb[48].mxu1 %v4350_v17 }
 0x829   :  { %2337 = vmatpush1.bf16.msra.mxu0 %v3147_v7  ;;  %2378 = vmatpush1.bf16.msra.mxu1 %v5008_v4 }
 0x82a   :  { %2368 = vmatprep.mubr.bf16.mxu0 %v2253_v24  ;;  %2409 = vmatprep.mubr.bf16.mxu1 %v2253_v24  ;;  %v5533_v24 = vld [vmem:[#allocation138_spill] sm:$0xff] }
 0x82b   :  { %2338 = vmatprep.subr.bf16.mxu0 %v5009_v13  ;;  %2379 = vmatprep.subr.bf16.mxu1 %v5010_v9 }
 0x82d   :  { %2339 = vmatpush1.bf16.msra.mxu0 %v5011_v49  ;;  %2380 = vmatpush1.bf16.msra.mxu1 %v5012_v3 }
 0x82e   :  { %2340 = vmatprep.subr.bf16.mxu0 %v5013_v58  ;;  %2381 = vmatprep.subr.bf16.mxu1 %v5014_v19 }
 0x831   :  { %2341 = vmatpush1.bf16.msra.mxu0 %v5106_v63  ;;  %2382 = vmatpush1.bf16.msra.mxu1 %v5107_v56 }
 0x832   :  { %2342 = vmatprep.subr.bf16.mxu0 %v5108_v48  ;;  %2383 = vmatprep.subr.bf16.mxu1 %v5109_v51 }
 0x835   :  { %2343 = vmatpush1.bf16.msra.mxu0 %v5110_v25  ;;  %2384 = vmatpush1.bf16.msra.mxu1 %v5111_v23 }
 0x836   :  { %2344 = vmatprep.subr.bf16.mxu0 %v5112_v61  ;;  %2385 = vmatprep.subr.bf16.mxu1 %v5113_v39 }
 0x839   :  { %2345 = vmatpush1.bf16.msra.mxu0 %v5205_v47  ;;  %2386 = vmatpush1.bf16.msra.mxu1 %v5206_v50 }
 0x83a   :  { %2346 = vmatprep.subr.bf16.mxu0 %v5207_v42  ;;  %2387 = vmatprep.subr.bf16.mxu1 %v5208_v2 }
 0x83d   :  { %2347 = vmatpush1.bf16.msra.mxu0 %v5209_v57  ;;  %2388 = vmatpush1.bf16.msra.mxu1 %v5210_v8 }
 0x83e   :  { %2348 = vmatprep.subr.bf16.mxu0 %v5211_v34  ;;  %2389 = vmatprep.subr.bf16.mxu1 %v5212_v15 }
 0x841   :  { %2349 = vmatpush1.bf16.msra.mxu0 %v5213_v18  ;;  %2390 = vmatpush1.bf16.msra.mxu1 %v5214_v6 }
 0x842   :  { %2350 = vmatprep.subr.bf16.mxu0 %v5124_v30  ;;  %2391 = vmatprep.subr.bf16.mxu1 %v5125_v45 }
 0x845   :  { %2351 = vmatpush1.bf16.msra.mxu0 %v5126_v55  ;;  %2392 = vmatpush1.bf16.msra.mxu1 %v5215_v11 }
 0x846   :  { %2352 = vmatprep.subr.bf16.mxu0 %v5216_v1  ;;  %2393 = vmatprep.subr.bf16.mxu1 %v5129_v37 }
 0x849   :  { %2353 = vmatpush1.bf16.msra.mxu0 %v5511_v43  ;;  %2394 = vmatpush1.bf16.msra.mxu1 %v5512_v33 }
 0x84a   :  { %2354 = vmatprep.subr.bf16.mxu0 %v5513_v16  ;;  %2395 = vmatprep.subr.bf16.mxu1 %v5514_v22 }
 0x84d   :  { %2355 = vmatpush1.bf16.msra.mxu0 %v5515_v46  ;;  %2396 = vmatpush1.bf16.msra.mxu1 %v5516_v21 }
 0x84e   :  { %2356 = vmatprep.subr.bf16.mxu0 %v5517_v27  ;;  %2397 = vmatprep.subr.bf16.mxu1 %v5518_v60 }
 0x851   :  { %2357 = vmatpush1.bf16.msra.mxu0 %v5519_v26  ;;  %2398 = vmatpush1.bf16.msra.mxu1 %v5520_v41 }
 0x852   :  { %2358 = vmatprep.subr.bf16.mxu0 %v5521_v53  ;;  %2399 = vmatprep.subr.bf16.mxu1 %v5522_v54 }
 0x855   :  { %2359 = vmatpush1.bf16.msra.mxu0 %v5523_v32  ;;  %2400 = vmatpush1.bf16.msra.mxu1 %v5524_v28 }
 0x856   :  { %2360 = vmatprep.subr.bf16.mxu0 %v5525_v36  ;;  %2401 = vmatprep.subr.bf16.mxu1 %v5526_v14 }
 0x859   :  { %2361 = vmatpush1.bf16.msra.mxu0 %v5527_v10  ;;  %2402 = vmatpush1.bf16.msra.mxu1 %v5528_v5 }
 0x85a   :  { %2362 = vmatprep.subr.bf16.mxu0 %v5529_v29  ;;  %2403 = vmatprep.subr.bf16.mxu1 %v5530_v0 }
 0x85d   :  { %2363 = vmatpush1.bf16.msra.mxu0 %v5531_v38  ;;  %2404 = vmatpush1.bf16.msra.mxu1 %v5532_v44  ;;  %v5542_v38 = vld [vmem:[#allocation72_spill] sm:$0xff] }
 0x85e   :  { %2364 = vmatprep.subr.bf16.mxu0 %v5533_v24  ;;  %2405 = vmatprep.subr.bf16.mxu1 %v5534_v31 }
 0x861   :  { %2365 = vmatpush1.bf16.msra.mxu0 %v5535_v59  ;;  %2406 = vmatpush1.bf16.msra.mxu1 %v5536_v40 }
 0x862   :  { %2366 = vmatprep.subr.bf16.mxu0 %v5537_v62  ;;  %2407 = vmatprep.subr.bf16.mxu1 %v5538_v35 }
 0x865   :  { %2367 = vmatpush1.bf16.msra.mxu0 %v5539_v52  ;;  %2408 = vmatpush1.bf16.msra.mxu1 %v5540_v12 }
 0x866   :  { %2464 = vmatprep.subr.bf16.mxu0 %v5541_v20  ;;  %2505 = vmatprep.subr.bf16.mxu1 %v5542_v38  ;;  %v5547_v20 = vld [vmem:[#allocation80_spill] sm:$0xff] }
 0x868   :  { %2369 = vmatmul.mubr.bf16.vlgmr.msra.gmra.mrb[52].mxu0 %v4350_v17  ;;  %2410 = vmatmul.mubr.bf16.vlgmr.msra.gmra.mrb[52].mxu1 %v4350_v17 }
 0x869   :  { %2465 = vmatpush1.bf16.msra.mxu0 %v3147_v7  ;;  %2506 = vmatpush1.bf16.msra.mxu1 %v5008_v4  ;;  %v5543_v7 = vld [vmem:[#allocation136_spill] sm:$0xff]  ;;  %v304_v4 = vpop.permute.xlu1 %303 }
 0x86a   :  { %2466 = vmatprep.subr.bf16.mxu0 %v5009_v13  ;;  %2507 = vmatprep.subr.bf16.mxu1 %v5010_v9  ;;  %v5544_v13 = vld [vmem:[#allocation76_spill] sm:$0xff] }
 0x86b   :  { %v306_v9 = vmul.f32 %v304_v4, %v5544_v13 }
 0x86d   :  { %2467 = vmatpush1.bf16.msra.mxu0 %v5011_v49  ;;  %2508 = vmatpush1.bf16.msra.mxu1 %v5012_v3  ;;  %v5545_v49 = vld [vmem:[#allocation77_spill] sm:$0xff] }
 0x86e   :  { %2468 = vmatprep.subr.bf16.mxu0 %v5013_v58  ;;  %2509 = vmatprep.subr.bf16.mxu1 %v5014_v19  ;;  %v307_v3 = vmul.f32 %v304_v4, %v5545_v49  ;;  %v5546_v58 = vld [vmem:[#allocation79_spill] sm:$0xff] }
 0x86f   :  { %v308_v19 = vmul.f32 %v304_v4, %v5546_v58 }
 0x871   :  { %2469 = vmatpush1.bf16.msra.mxu0 %v5106_v63  ;;  %2510 = vmatpush1.bf16.msra.mxu1 %v5107_v56  ;;  %v310_v63 = vadd.f32 %v306_v9, %v5547_v20 }
 0x872   :  { %2470 = vmatprep.subr.bf16.mxu0 %v5108_v48  ;;  %2511 = vmatprep.subr.bf16.mxu1 %v5109_v51 }
 0x875   :  { %2471 = vmatpush1.bf16.msra.mxu0 %v5110_v25  ;;  %2512 = vmatpush1.bf16.msra.mxu1 %v5111_v23  ;;  %v5550_v23 = vld [vmem:[#allocation83_spill] sm:$0xff] }
 0x876   :  { %2472 = vmatprep.subr.bf16.mxu0 %v5112_v61  ;;  %2513 = vmatprep.subr.bf16.mxu1 %v5113_v39  ;;  %v312_v61 = vadd.f32 %v308_v19, %v5550_v23 }
 0x879   :  { %2473 = vmatpush1.bf16.msra.mxu0 %v5205_v47  ;;  %2514 = vmatpush1.bf16.msra.mxu1 %v5206_v50 }
 0x87a   :  { %2474 = vmatprep.subr.bf16.mxu0 %v5207_v42  ;;  %2515 = vmatprep.subr.bf16.mxu1 %v5208_v2  ;;  %v5551_v2 = vld [vmem:[#allocation84_spill] sm:$0xff] }
 0x87d   :  { %2475 = vmatpush1.bf16.msra.mxu0 %v5209_v57  ;;  %2516 = vmatpush1.bf16.msra.mxu1 %v5210_v8 }
 0x87e   :  { %2476 = vmatprep.subr.bf16.mxu0 %v5211_v34  ;;  %2517 = vmatprep.subr.bf16.mxu1 %v5212_v15 }
 0x881   :  { %2477 = vmatpush1.bf16.msra.mxu0 %v5213_v18  ;;  %2518 = vmatpush1.bf16.msra.mxu1 %v5214_v6 }
 0x882   :  { %2478 = vmatprep.subr.bf16.mxu0 %v5124_v30  ;;  %2519 = vmatprep.subr.bf16.mxu1 %v5125_v45 }
 0x885   :  { %2479 = vmatpush1.bf16.msra.mxu0 %v5126_v55  ;;  %2520 = vmatpush1.bf16.msra.mxu1 %v5215_v11 }
 0x886   :  { %2480 = vmatprep.subr.bf16.mxu0 %v5216_v1  ;;  %2521 = vmatprep.subr.bf16.mxu1 %v5129_v37 }
 0x889   :  { %2481 = vmatpush1.bf16.msra.mxu0 %v5511_v43  ;;  %2522 = vmatpush1.bf16.msra.mxu1 %v5512_v33  ;;  %v5552_v43 = vld [vmem:[#allocation51_spill] sm:$0xff] }
 0x88a   :  { %2482 = vmatprep.subr.bf16.mxu0 %v5513_v16  ;;  %2523 = vmatprep.subr.bf16.mxu1 %v5514_v22 }
 0x88d   :  { %2483 = vmatpush1.bf16.msra.mxu0 %v5515_v46  ;;  %2524 = vmatpush1.bf16.msra.mxu1 %v5516_v21 }
 0x88e   :  { %2484 = vmatprep.subr.bf16.mxu0 %v5517_v27  ;;  %2525 = vmatprep.subr.bf16.mxu1 %v5518_v60 }
 0x891   :  { %2485 = vmatpush1.bf16.msra.mxu0 %v5519_v26  ;;  %2526 = vmatpush1.bf16.msra.mxu1 %v5520_v41 }
 0x892   :  { %2486 = vmatprep.subr.bf16.mxu0 %v5521_v53  ;;  %2527 = vmatprep.subr.bf16.mxu1 %v5522_v54  ;;  %v5553_v53 = vld [vmem:[#allocation73_spill] sm:$0xff] }
 0x895   :  { %2487 = vmatpush1.bf16.msra.mxu0 %v5523_v32  ;;  %2528 = vmatpush1.bf16.msra.mxu1 %v5524_v28 }
 0x896   :  { %2488 = vmatprep.subr.bf16.mxu0 %v5525_v36  ;;  %2529 = vmatprep.subr.bf16.mxu1 %v5526_v14  ;;  %v5554_v36 = vld [vmem:[#allocation74_spill] sm:$0xff] }
 0x899   :  { %2489 = vmatpush1.bf16.msra.mxu0 %v5527_v10  ;;  %2530 = vmatpush1.bf16.msra.mxu1 %v5528_v5 }
 0x89a   :  { %2490 = vmatprep.subr.bf16.mxu0 %v5529_v29  ;;  %2531 = vmatprep.subr.bf16.mxu1 %v5530_v0 }
 0x89d   :  { %2491 = vmatpush1.bf16.msra.mxu0 %v5543_v7  ;;  %2532 = vmatpush1.bf16.msra.mxu1 %v5532_v44 }
 0x89e   :  { %2492 = vmatprep.subr.bf16.mxu0 %v5533_v24  ;;  %2533 = vmatprep.subr.bf16.mxu1 %v5534_v31  ;;  %v5555_v24 = vld [vmem:[#allocation75_spill] sm:$0xff] }
 0x8a1   :  { %2493 = vmatpush1.bf16.msra.mxu0 %v5535_v59  ;;  %2534 = vmatpush1.bf16.msra.mxu1 %v5536_v40  ;;  %v5548_v59 = vld [vmem:[#allocation81_spill] sm:$0xff] }
 0x8a2   :  { %2494 = vmatprep.subr.bf16.mxu0 %v5537_v62  ;;  %2535 = vmatprep.subr.bf16.mxu1 %v5538_v35  ;;  %v311_v56 = vadd.f32 %v307_v3, %v5548_v59  ;;  %v5549_v62 = vld [vmem:[#allocation82_spill] sm:$0xff] }
 0x8a3   :  { %v309_v51 = vmul.f32 %v304_v4, %v5549_v62  ;;  %v5556_v4 = vld [vmem:[#allocation78_spill] sm:$0xff] }
 0x8a5   :  { %2495 = vmatpush1.bf16.msra.mxu0 %v5539_v52  ;;  %2536 = vmatpush1.bf16.msra.mxu1 %v5540_v12  ;;  %v313_v57 = vadd.f32 %v309_v51, %v5551_v2 }
 0x8fb   :  { %v2288_v40 = vpop.f32.mrb[48].mxu0  ;;  %v2329_v48 = vpop.f32.mrb[48].mxu1 }
 0x8fc   :  { %v2418_v25 = vadd.f32 %v2288_v40, %v310_v63  ;;  %v2290_v39 = vpop.f32.mrb[49].mxu0  ;;  %v2331_v12 = vpop.f32.mrb[49].mxu1  ;;  %v2420_v42 = vadd.f32 %v2329_v48, %v312_v61  ;;  %v5557_v40 = vld [vmem:[#allocation86_spill] sm:$0xff] }
 0x8fd   :  { %v2419_v45 = vadd.f32 %v2290_v39, %v311_v56  ;;  %v2292_v55 = vpop.f32.mrb[50].mxu0  ;;  %v2333_v37 = vpop.f32.mrb[50].mxu1  ;;  %v2421_v8 = vadd.f32 %v2331_v12, %v313_v57 }
 0x8fe   :  { %v2422_v30 = vmul.f32 0.5, %v2418_v25  ;;  %v2293_v35 = vpop.f32.mrb[51].mxu0  ;;  %v2334_v47 = vpop.f32.mrb[51].mxu1 }
 0x8ff   :  { %v2426_v50 = vmul.f32 0.5, %v2419_v45  ;;  %v2431_v34 = vmul.f32 0.5, %v2421_v8 }
 0x900   :  { %2875 = vtanh.f32 %v2422_v30 }
 0x901   :  { %2877 = vtanh.f32 %v2426_v50 }
 0x902   :  { %2879 = vtanh.f32 %v2420_v42 }
 0x903   :  { %2881 = vtanh.f32 %v2431_v34 }
 0x90a   :  { %v2876_v15 = vpop.eup %2875 }
 0x90b   :  { %v2878_v18 = vpop.eup %2877  ;;  %v2424_v6 = vmul.f32 0.5, %v2876_v15 }
 0x90c   :  { %v2428_v11 = vmul.f32 0.5, %v2878_v18  ;;  %v2880_v52 = vpop.eup %2879 }
 0x90d   :  { %v2425_v1 = vadd.f32 0.5, %v2424_v6  ;;  %v2882_v22 = vpop.eup %2881 }
 0x90e   :  { %v2429_v31 = vadd.f32 0.5, %v2428_v11  ;;  %v2433_v46 = vmul.f32 0.5, %v2882_v22 }
 0x90f   :  { %v2436_v17 = vmul.f32 %v2880_v52, %v2425_v1 }
 0x910   :  { %v2435_v33 = vmul.f32 %v2429_v31, %v5552_v43  ;;  %v2434_v21 = vadd.f32 0.5, %v2433_v46 }
 0x912   :  { %v2437_v16 = vadd.f32 %v2436_v17, %v2435_v33 }
 0x914   :  { %2883 = vtanh.f32 %v2437_v16 }
 0x91e   :  { %v2884_v27 = vpop.eup %2883 }
 0x91f   :  { %v2439_v60 = vmul.f32 %v2884_v27, %v2434_v21 }
 0x921   :  { %v2462_v45 = vpack.c.bf16 %v2439_v60, %v2439_v60 }
 0x93b   :  { %v2370_v26 = vpop.f32.mrb[52].mxu0  ;;  %v2411_v41 = vpop.f32.mrb[52].mxu1 }
 0x93c   :  { %v2440_v54 = vadd.f32 %v2370_v26, %v5553_v53  ;;  %v2372_v32 = vpop.f32.mrb[53].mxu0  ;;  %v2413_v28 = vpop.f32.mrb[53].mxu1  ;;  %v2442_v7 = vadd.f32 %v2411_v41, %v5555_v24 }
 0x93d   :  { %v2441_v14 = vadd.f32 %v2372_v32, %v5554_v36  ;;  %v2374_v10 = vpop.f32.mrb[54].mxu0  ;;  %v2415_v5 = vpop.f32.mrb[54].mxu1  ;;  %v2443_v13 = vadd.f32 %v2413_v28, %v5556_v4 }
 0x93e   :  { %v2444_v29 = vmul.f32 0.5, %v2440_v54  ;;  %v2375_v0 = vpop.f32.mrb[55].mxu0  ;;  %v2416_v38 = vpop.f32.mrb[55].mxu1 }
 0x93f   :  { %v2448_v44 = vmul.f32 0.5, %v2441_v14  ;;  %v2453_v9 = vmul.f32 0.5, %v2443_v13 }
 0x940   :  { %2885 = vtanh.f32 %v2444_v29 }
 0x941   :  { %2887 = vtanh.f32 %v2448_v44 }
 0x942   :  { %2889 = vtanh.f32 %v2442_v7 }
 0x943   :  { %2891 = vtanh.f32 %v2453_v9 }
 0x94a   :  { %v2886_v49 = vpop.eup %2885 }
 0x94b   :  { %v2888_v3 = vpop.eup %2887  ;;  %v2446_v58 = vmul.f32 0.5, %v2886_v49 }
 0x94c   :  { %v2450_v19 = vmul.f32 0.5, %v2888_v3  ;;  %v2890_v63 = vpop.eup %2889 }
 0x94d   :  { %v2447_v20 = vadd.f32 0.5, %v2446_v58  ;;  %v2892_v51 = vpop.eup %2891 }
 0x94e   :  { %v2451_v59 = vadd.f32 0.5, %v2450_v19  ;;  %v2455_v25 = vmul.f32 0.5, %v2892_v51 }
 0x94f   :  { %v2458_v56 = vmul.f32 %v2890_v63, %v2447_v20 }
 0x950   :  { %v2457_v48 = vmul.f32 %v2451_v59, %v5557_v40  ;;  %v2456_v23 = vadd.f32 0.5, %v2455_v25 }
 0x952   :  { %v2459_v62 = vadd.f32 %v2458_v56, %v2457_v48 }
 0x954   :  { %2893 = vtanh.f32 %v2459_v62 }
 0x95e   :  { %v2894_v61 = vpop.eup %2893 }
 0x95f   :  { %v2461_v39 = vmul.f32 %v2894_v61, %v2456_v23 }
 0x961   :  { %v2463_v12 = vpack.c.bf16 %v2461_v39, %v2461_v39 }
 0x963   :  { %2496 = vmatprep.mubr.bf16.mxu0 %v2463_v12  ;;  %2537 = vmatprep.mubr.bf16.mxu1 %v2463_v12 }
 0x964   :  { %2497 = vmatmul.mubr.bf16.vlgmr.msra.gmra.mrb[56].mxu0 %v2462_v45  ;;  %2538 = vmatmul.mubr.bf16.vlgmr.msra.gmra.mrb[56].mxu1 %v2462_v45 }
 0xa37   :  { %v2498_v55 = vpop.f32.mrb[56].mxu0  ;;  %v2539_v37 = vpop.f32.mrb[56].mxu1 }
 0xa38   :  { %v2546_v30 = vadd.f32 %v2498_v55, %v5553_v53  ;;  %v2500_v35 = vpop.f32.mrb[57].mxu0  ;;  %v2541_v47 = vpop.f32.mrb[57].mxu1  ;;  %v2548_v18 = vadd.f32 %v2539_v37, %v5555_v24  ;;  %v2723_v53 = vld [vmem:[%s4511_s5] ss:$0 sm:$0xff] }
 0xa39   :  { %v2547_v50 = vadd.f32 %v2500_v35, %v5554_v36  ;;  %v2502_v42 = vpop.f32.mrb[58].mxu0  ;;  %v2543_v2 = vpop.f32.mrb[58].mxu1  ;;  %v2549_v6 = vadd.f32 %v2541_v47, %v5556_v4  ;;  %v2724_v36 = vld [vmem:[#allocation2] ss:$0 sm:$0xff] }
 0xa3a   :  { %v2550_v57 = vmul.f32 0.5, %v2546_v30  ;;  %v2503_v8 = vpop.f32.mrb[59].mxu0  ;;  %v2544_v34 = vpop.f32.mrb[59].mxu1 }
 0xa3b   :  { %v2554_v15 = vmul.f32 0.5, %v2547_v50  ;;  %v2559_v11 = vmul.f32 0.5, %v2549_v6 }
 0xa3c   :  { %2895 = vtanh.f32 %v2550_v57 }
 0xa3d   :  { %2897 = vtanh.f32 %v2554_v15 }
 0xa3e   :  { %2899 = vtanh.f32 %v2548_v18 }
 0xa3f   :  { %2901 = vtanh.f32 %v2559_v11 }
 0xa46   :  { %v2896_v1 = vpop.eup %2895 }
 0xa47   :  { %v2898_v52 = vpop.eup %2897  ;;  %v2552_v31 = vmul.f32 0.5, %v2896_v1 }
 0xa48   :  { %v2556_v17 = vmul.f32 0.5, %v2898_v52  ;;  %v2900_v33 = vpop.eup %2899 }
 0xa49   :  { %v2553_v43 = vadd.f32 0.5, %v2552_v31  ;;  %v2902_v27 = vpop.eup %2901 }
 0xa4a   :  { %v2557_v16 = vadd.f32 0.5, %v2556_v17  ;;  %v2561_v60 = vmul.f32 0.5, %v2902_v27 }
 0xa4b   :  { %v2564_v22 = vmul.f32 %v2900_v33, %v2553_v43 }
 0xa4c   :  { %v2563_v46 = vmul.f32 %v2557_v16, %v2459_v62  ;;  %v2562_v26 = vadd.f32 0.5, %v2561_v60 }
 0xa4e   :  { %v2565_v21 = vadd.f32 %v2564_v22, %v2563_v46 }
 0xa50   :  { %2903 = vtanh.f32 %v2565_v21 }
 0xa5a   :  { %v2904_v41 = vpop.eup %2903 }
 0xa5b   :  { %v2567_v54 = vmul.f32 %v2904_v41, %v2562_v26 }
 0xa5d   :  { %v2575_v32 = vmul.f32 %v2723_v53, %v2567_v54 }
 0xa5f   :  { %v2577_v28 = vsel %vm2576_vm0, %v2575_v32, 0.0 }
 0xa60   :  { %2578 = vadd.xlane.f32.xlu0 %v2577_v28 }
 0xaed   :  { %v2579_v14 = vpop.xlane.xlu0 %2578 }
 0xaee   :  { %v2587_v10 = vadd.f32 %v2724_v36, %v2579_v14 }
 0xaf0   :  { %2589 = vst.msk [vmem:[%s4513_s7] sm:$0x3] %vm2588_vm1, %v2587_v10 }
 0xaf1   :  { %2594 = vsyncpa [#allocation4], 1 }

</bundles_post_ra>
